<compile_context>
chip_gen: v7x
topology: tpu7x:2x2x1
jax: 0.10.0
libtpu: 0.0.40
codegen_flags: <defaults>
</compile_context>

<pallas_src>
import functools

import jax
import jax.numpy as jnp
import numpy as np
from jax.experimental import pallas as pl
from jax.experimental.pallas import tpu as pltpu


def _dsconv_kernel(xp_ref, wdw_ref, wpw_ref, bpw_ref, o_ref, *,
                   t_tile, kt, kh, kw, ho, wo):
    """One (batch, T-tile) output block.

    xp_ref : (1, Tp, Hp, Wp, Cin)   zero-padded channels-last input (VMEM, resident)
    wdw_ref: (kt*kh*kw, Cin)        depthwise weights, one (Cin,) lane-row per tap
    wpw_ref: (Cin, Cout)            pointwise weights (pre-transposed)
    bpw_ref: (1, Cout)              effective bias = Wp @ b_dw + b_p
    o_ref  : (1, t_tile*ho*wo, Cout)
    """
    ti = pl.program_id(1)
    cin = xp_ref.shape[-1]
    t0 = ti * t_tile

    w_all = wdw_ref[...].astype(jnp.float32)          # (taps, Cin)

    # Depthwise conv: unrolled tap loop of per-lane (per-channel) FMAs (VPU).
    acc = None
    tap = 0
    for dt in range(kt):
        for dh in range(kh):
            for dw in range(kw):
                xs = xp_ref[0,
                            pl.ds(t0 + dt, t_tile),
                            pl.ds(dh, ho),
                            pl.ds(dw, wo),
                            :].astype(jnp.float32)     # (t_tile, ho, wo, Cin)
                term = xs * w_all[tap:tap + 1]         # (1, Cin) broadcasts over lanes
                acc = term if acc is None else acc + term
                tap += 1

    # Pointwise 1x1x1 conv == channel-mixing matmul on the MXU.
    dwo = acc.reshape(t_tile * ho * wo, cin)           # leading-dim collapse only
    out = jnp.dot(dwo, wpw_ref[...].astype(jnp.float32),
                  preferred_element_type=jnp.float32)
    out = out + bpw_ref[...].astype(jnp.float32)
    o_ref[0] = out.astype(o_ref.dtype)


def _pick_t_tile(t_out, ho, wo, t_tile):
    if t_tile is None or t_tile > t_out:
        t_tile = t_out
    while t_out % t_tile != 0:
        t_tile -= 1
    if (t_tile * ho * wo) % 8 != 0:        # keep output blocks sublane-aligned
        t_tile = t_out
    return max(t_tile, 1)


@functools.partial(jax.jit, static_argnames=("padding", "t_tile"))
def depthwise_separable_conv(x, dw_w, dw_b, pw_w, pw_b, *, padding, t_tile=None):
    """x: (B, Cin, T, H, W); dw_w: (Cin, 1, kt, kh, kw); dw_b: (Cin,);
    pw_w: (Cout, Cin, 1, 1, 1); pw_b: (Cout,).  Returns (B, Cout, To, Ho, Wo)."""
    B, Cin, T, H, W = x.shape
    Cout = pw_w.shape[0]
    kt, kh, kw = dw_w.shape[2:]
    pt, ph, pw_ = padding
    To = T + 2 * pt - kt + 1
    Ho = H + 2 * ph - kh + 1
    Wo = W + 2 * pw_ - kw + 1

    t_tile = _pick_t_tile(To, Ho, Wo, t_tile)
    n_t = To // t_tile

    # channels-last + zero padding once on the host side (no in-kernel zero fills)
    xp = jnp.pad(jnp.transpose(x, (0, 2, 3, 4, 1)),
                 ((0, 0), (pt, pt), (ph, ph), (pw_, pw_), (0, 0)))
    Tp, Hp, Wp = xp.shape[1:4]

    # depthwise weights: one (Cin,) lane-vector per tap, tap = (dt*kh + dh)*kw + dw
    wdw = jnp.transpose(dw_w[:, 0].reshape(Cin, kt * kh * kw), (1, 0))
    # pointwise weights transposed for (THW,Cin)@(Cin,Cout); depthwise bias folded in
    wp2d = pw_w[:, :, 0, 0, 0]                                   # (Cout, Cin)
    wpw_t = jnp.transpose(wp2d, (1, 0))                          # (Cin, Cout)
    bp_eff = ((wp2d * dw_b[None, :]).sum(axis=1) + pw_b).reshape(1, Cout)

    kern = functools.partial(_dsconv_kernel, t_tile=t_tile,
                             kt=kt, kh=kh, kw=kw, ho=Ho, wo=Wo)

    out = pl.pallas_call(
        kern,
        out_shape=jax.ShapeDtypeStruct((B, To * Ho * Wo, Cout), x.dtype),
        grid_spec=pltpu.PrefetchScalarGridSpec(
            num_scalar_prefetch=0,
            grid=(B, n_t),
            in_specs=[
                pl.BlockSpec((1, Tp, Hp, Wp, Cin), lambda b, t: (b, 0, 0, 0, 0)),
                pl.BlockSpec((kt * kh * kw, Cin), lambda b, t: (0, 0)),
                pl.BlockSpec((Cin, Cout), lambda b, t: (0, 0)),
                pl.BlockSpec((1, Cout), lambda b, t: (0, 0)),
            ],
            out_specs=pl.BlockSpec((1, t_tile * Ho * Wo, Cout),
                                   lambda b, t: (b, t, 0)),
        ),
        compiler_params=pltpu.CompilerParams(
            dimension_semantics=("parallel", "arbitrary"),
            vmem_limit_bytes=64 * 1024 * 1024,
        ),
    )(xp, wdw, wpw_t, bp_eff)

    out = out.reshape(B, To, Ho, Wo, Cout)
    return jnp.transpose(out, (0, 4, 1, 2, 3))


def ref_forward(x, dw_w, dw_b, pw_w, pw_b, padding):
    """Pure-JAX reference of the PyTorch forward (depthwise conv -> pointwise conv)."""
    B, Cin, T, H, W = x.shape
    kt, kh, kw = dw_w.shape[2:]
    pt, ph, pw_ = padding
    To = T + 2 * pt - kt + 1
    Ho = H + 2 * ph - kh + 1
    Wo = W + 2 * pw_ - kw + 1
    xp = jnp.pad(x, ((0, 0), (0, 0), (pt, pt), (ph, ph), (pw_, pw_)))
    y = jnp.broadcast_to(dw_b[None, :, None, None, None],
                         (B, Cin, To, Ho, Wo)).astype(jnp.float32)
    for dt in range(kt):
        for dh in range(kh):
            for dw in range(kw):
                w_tap = dw_w[:, 0, dt, dh, dw][None, :, None, None, None]
                y = y + w_tap * xp[:, :, dt:dt + To, dh:dh + Ho, dw:dw + Wo]
    wp = pw_w[:, :, 0, 0, 0]
    z = jnp.einsum("oc,bcthw->bothw", wp, y,
                   precision=jax.lax.Precision.HIGHEST)
    return z + pw_b[None, :, None, None, None]


if __name__ == "__main__":
    key = jax.random.PRNGKey(0)
    kx, k1, k2, k3, k4 = jax.random.split(key, 5)

    # Small shapes consistent with the module: B=2, Cin=8, Cout=16, T=8, H=W=8, k=3, p=1
    B, Cin, Cout, T, H, W = 2, 8, 16, 8, 8, 8
    ksz, pad = 3, 1

    x = jax.random.normal(kx, (B, Cin, T, H, W), jnp.float32)
    dw_w = jax.random.uniform(k1, (Cin, 1, ksz, ksz, ksz), jnp.float32, -0.25, 0.25)
    dw_b = jax.random.uniform(k2, (Cin,), jnp.float32, -0.25, 0.25)
    pw_w = jax.random.uniform(k3, (Cout, Cin, 1, 1, 1), jnp.float32, -0.35, 0.35)
    pw_b = jax.random.uniform(k4, (Cout,), jnp.float32, -0.35, 0.35)

    out = depthwise_separable_conv(x, dw_w, dw_b, pw_w, pw_b,
                                   padding=(pad, pad, pad), t_tile=4)
    out = jax.block_until_ready(out)

    ref = ref_forward(x, dw_w, dw_b, pw_w, pw_b, (pad, pad, pad))
    np.testing.assert_allclose(np.asarray(out), np.asarray(ref),
                               rtol=1e-3, atol=1e-4)
    print("KERNEL_OK")
</pallas_src>

<mosaic_0001>
module attributes {stable_mosaic.version = 11 : i64} {
  func.func @_dsconv_kernel(%arg0: i32, %arg1: i32, %arg2: memref<1x10x10x10x8xf32, #tpu.memory_space<vmem>>, %arg3: memref<27x8xf32, #tpu.memory_space<vmem>>, %arg4: memref<8x16xf32, #tpu.memory_space<vmem>>, %arg5: memref<1x16xf32, #tpu.memory_space<vmem>>, %arg6: memref<1x256x16xf32, #tpu.memory_space<vmem>>) attributes {dimension_semantics = [#tpu.dimension_semantics<parallel>, #tpu.dimension_semantics<arbitrary>], iteration_bounds = array<i64: 2, 2>, scalar_prefetch = 0 : i64, scratch_operands = 0 : i64, tpu.core_type = #tpu.core_type<tc>, window_params = [{transform_indices = @transform_0, window_bounds = array<i64: 1, 10, 10, 10, 8>}, {pipeline_mode = #tpu.pipeline_mode<synchronous>, transform_indices = @transform_1, window_bounds = array<i64: 27, 8>}, {pipeline_mode = #tpu.pipeline_mode<synchronous>, transform_indices = @transform_2, window_bounds = array<i64: 8, 16>}, {pipeline_mode = #tpu.pipeline_mode<synchronous>, transform_indices = @transform_3, window_bounds = array<i64: 1, 16>}, {transform_indices = @transform_4, window_bounds = array<i64: 1, 256, 16>}]} {
    %c4_i32 = arith.constant 4 : i32
    %0 = arith.muli %arg1, %c4_i32 : i32
    %c0 = arith.constant 0 : index
    %c0_0 = arith.constant 0 : index
    %1 = vector.load %arg3[%c0, %c0_0] : memref<27x8xf32, #tpu.memory_space<vmem>>, vector<27x8xf32>
    %c0_i32 = arith.constant 0 : i32
    %2 = arith.addi %0, %c0_i32 : i32
    %c0_1 = arith.constant 0 : index
    %3 = arith.index_cast %2 : i32 to index
    %c0_2 = arith.constant 0 : index
    %c0_3 = arith.constant 0 : index
    %c0_4 = arith.constant 0 : index
    %4 = vector.load %arg2[%c0_1, %3, %c0_2, %c0_3, %c0_4] : memref<1x10x10x10x8xf32, #tpu.memory_space<vmem>>, vector<1x4x8x8x8xf32>
    %5 = vector.shape_cast %4 : vector<1x4x8x8x8xf32> to vector<4x8x8x8xf32>
    %6 = vector.extract_strided_slice %1 {offsets = [0, 0], sizes = [1, 8], strides = [1, 1]} : vector<27x8xf32> to vector<1x8xf32>
    %7 = vector.shape_cast %6 : vector<1x8xf32> to vector<1x1x1x8xf32>
    %8 = vector.broadcast %7 : vector<1x1x1x8xf32> to vector<4x8x8x8xf32>
    %9 = arith.mulf %5, %8 : vector<4x8x8x8xf32>
    %c0_i32_5 = arith.constant 0 : i32
    %10 = arith.addi %0, %c0_i32_5 : i32
    %c0_6 = arith.constant 0 : index
    %11 = arith.index_cast %10 : i32 to index
    %c0_7 = arith.constant 0 : index
    %c1 = arith.constant 1 : index
    %c0_8 = arith.constant 0 : index
    %12 = vector.load %arg2[%c0_6, %11, %c0_7, %c1, %c0_8] : memref<1x10x10x10x8xf32, #tpu.memory_space<vmem>>, vector<1x4x8x8x8xf32>
    %13 = vector.shape_cast %12 : vector<1x4x8x8x8xf32> to vector<4x8x8x8xf32>
    %14 = vector.extract_strided_slice %1 {offsets = [1, 0], sizes = [1, 8], strides = [1, 1]} : vector<27x8xf32> to vector<1x8xf32>
    %15 = vector.shape_cast %14 : vector<1x8xf32> to vector<1x1x1x8xf32>
    %16 = vector.broadcast %15 : vector<1x1x1x8xf32> to vector<4x8x8x8xf32>
    %17 = arith.mulf %13, %16 : vector<4x8x8x8xf32>
    %18 = arith.addf %9, %17 : vector<4x8x8x8xf32>
    %c0_i32_9 = arith.constant 0 : i32
    %19 = arith.addi %0, %c0_i32_9 : i32
    %c0_10 = arith.constant 0 : index
    %20 = arith.index_cast %19 : i32 to index
    %c0_11 = arith.constant 0 : index
    %c2 = arith.constant 2 : index
    %c0_12 = arith.constant 0 : index
    %21 = vector.load %arg2[%c0_10, %20, %c0_11, %c2, %c0_12] : memref<1x10x10x10x8xf32, #tpu.memory_space<vmem>>, vector<1x4x8x8x8xf32>
    %22 = vector.shape_cast %21 : vector<1x4x8x8x8xf32> to vector<4x8x8x8xf32>
    %23 = vector.extract_strided_slice %1 {offsets = [2, 0], sizes = [1, 8], strides = [1, 1]} : vector<27x8xf32> to vector<1x8xf32>
    %24 = vector.shape_cast %23 : vector<1x8xf32> to vector<1x1x1x8xf32>
    %25 = vector.broadcast %24 : vector<1x1x1x8xf32> to vector<4x8x8x8xf32>
    %26 = arith.mulf %22, %25 : vector<4x8x8x8xf32>
    %27 = arith.addf %18, %26 : vector<4x8x8x8xf32>
    %c0_i32_13 = arith.constant 0 : i32
    %28 = arith.addi %0, %c0_i32_13 : i32
    %c0_14 = arith.constant 0 : index
    %29 = arith.index_cast %28 : i32 to index
    %c1_15 = arith.constant 1 : index
    %c0_16 = arith.constant 0 : index
    %c0_17 = arith.constant 0 : index
    %30 = vector.load %arg2[%c0_14, %29, %c1_15, %c0_16, %c0_17] : memref<1x10x10x10x8xf32, #tpu.memory_space<vmem>>, vector<1x4x8x8x8xf32>
    %31 = vector.shape_cast %30 : vector<1x4x8x8x8xf32> to vector<4x8x8x8xf32>
    %32 = vector.extract_strided_slice %1 {offsets = [3, 0], sizes = [1, 8], strides = [1, 1]} : vector<27x8xf32> to vector<1x8xf32>
    %33 = vector.shape_cast %32 : vector<1x8xf32> to vector<1x1x1x8xf32>
    %34 = vector.broadcast %33 : vector<1x1x1x8xf32> to vector<4x8x8x8xf32>
    %35 = arith.mulf %31, %34 : vector<4x8x8x8xf32>
    %36 = arith.addf %27, %35 : vector<4x8x8x8xf32>
    %c0_i32_18 = arith.constant 0 : i32
    %37 = arith.addi %0, %c0_i32_18 : i32
    %c0_19 = arith.constant 0 : index
    %38 = arith.index_cast %37 : i32 to index
    %c1_20 = arith.constant 1 : index
    %c1_21 = arith.constant 1 : index
    %c0_22 = arith.constant 0 : index
    %39 = vector.load %arg2[%c0_19, %38, %c1_20, %c1_21, %c0_22] : memref<1x10x10x10x8xf32, #tpu.memory_space<vmem>>, vector<1x4x8x8x8xf32>
    %40 = vector.shape_cast %39 : vector<1x4x8x8x8xf32> to vector<4x8x8x8xf32>
    %41 = vector.extract_strided_slice %1 {offsets = [4, 0], sizes = [1, 8], strides = [1, 1]} : vector<27x8xf32> to vector<1x8xf32>
    %42 = vector.shape_cast %41 : vector<1x8xf32> to vector<1x1x1x8xf32>
    %43 = vector.broadcast %42 : vector<1x1x1x8xf32> to vector<4x8x8x8xf32>
    %44 = arith.mulf %40, %43 : vector<4x8x8x8xf32>
    %45 = arith.addf %36, %44 : vector<4x8x8x8xf32>
    %c0_i32_23 = arith.constant 0 : i32
    %46 = arith.addi %0, %c0_i32_23 : i32
    %c0_24 = arith.constant 0 : index
    %47 = arith.index_cast %46 : i32 to index
    %c1_25 = arith.constant 1 : index
    %c2_26 = arith.constant 2 : index
    %c0_27 = arith.constant 0 : index
    %48 = vector.load %arg2[%c0_24, %47, %c1_25, %c2_26, %c0_27] : memref<1x10x10x10x8xf32, #tpu.memory_space<vmem>>, vector<1x4x8x8x8xf32>
    %49 = vector.shape_cast %48 : vector<1x4x8x8x8xf32> to vector<4x8x8x8xf32>
    %50 = vector.extract_strided_slice %1 {offsets = [5, 0], sizes = [1, 8], strides = [1, 1]} : vector<27x8xf32> to vector<1x8xf32>
    %51 = vector.shape_cast %50 : vector<1x8xf32> to vector<1x1x1x8xf32>
    %52 = vector.broadcast %51 : vector<1x1x1x8xf32> to vector<4x8x8x8xf32>
    %53 = arith.mulf %49, %52 : vector<4x8x8x8xf32>
    %54 = arith.addf %45, %53 : vector<4x8x8x8xf32>
    %c0_i32_28 = arith.constant 0 : i32
    %55 = arith.addi %0, %c0_i32_28 : i32
    %c0_29 = arith.constant 0 : index
    %56 = arith.index_cast %55 : i32 to index
    %c2_30 = arith.constant 2 : index
    %c0_31 = arith.constant 0 : index
    %c0_32 = arith.constant 0 : index
    %57 = vector.load %arg2[%c0_29, %56, %c2_30, %c0_31, %c0_32] : memref<1x10x10x10x8xf32, #tpu.memory_space<vmem>>, vector<1x4x8x8x8xf32>
    %58 = vector.shape_cast %57 : vector<1x4x8x8x8xf32> to vector<4x8x8x8xf32>
    %59 = vector.extract_strided_slice %1 {offsets = [6, 0], sizes = [1, 8], strides = [1, 1]} : vector<27x8xf32> to vector<1x8xf32>
    %60 = vector.shape_cast %59 : vector<1x8xf32> to vector<1x1x1x8xf32>
    %61 = vector.broadcast %60 : vector<1x1x1x8xf32> to vector<4x8x8x8xf32>
    %62 = arith.mulf %58, %61 : vector<4x8x8x8xf32>
    %63 = arith.addf %54, %62 : vector<4x8x8x8xf32>
    %c0_i32_33 = arith.constant 0 : i32
    %64 = arith.addi %0, %c0_i32_33 : i32
    %c0_34 = arith.constant 0 : index
    %65 = arith.index_cast %64 : i32 to index
    %c2_35 = arith.constant 2 : index
    %c1_36 = arith.constant 1 : index
    %c0_37 = arith.constant 0 : index
    %66 = vector.load %arg2[%c0_34, %65, %c2_35, %c1_36, %c0_37] : memref<1x10x10x10x8xf32, #tpu.memory_space<vmem>>, vector<1x4x8x8x8xf32>
    %67 = vector.shape_cast %66 : vector<1x4x8x8x8xf32> to vector<4x8x8x8xf32>
    %68 = vector.extract_strided_slice %1 {offsets = [7, 0], sizes = [1, 8], strides = [1, 1]} : vector<27x8xf32> to vector<1x8xf32>
    %69 = vector.shape_cast %68 : vector<1x8xf32> to vector<1x1x1x8xf32>
    %70 = vector.broadcast %69 : vector<1x1x1x8xf32> to vector<4x8x8x8xf32>
    %71 = arith.mulf %67, %70 : vector<4x8x8x8xf32>
    %72 = arith.addf %63, %71 : vector<4x8x8x8xf32>
    %c0_i32_38 = arith.constant 0 : i32
    %73 = arith.addi %0, %c0_i32_38 : i32
    %c0_39 = arith.constant 0 : index
    %74 = arith.index_cast %73 : i32 to index
    %c2_40 = arith.constant 2 : index
    %c2_41 = arith.constant 2 : index
    %c0_42 = arith.constant 0 : index
    %75 = vector.load %arg2[%c0_39, %74, %c2_40, %c2_41, %c0_42] : memref<1x10x10x10x8xf32, #tpu.memory_space<vmem>>, vector<1x4x8x8x8xf32>
    %76 = vector.shape_cast %75 : vector<1x4x8x8x8xf32> to vector<4x8x8x8xf32>
    %77 = vector.extract_strided_slice %1 {offsets = [8, 0], sizes = [1, 8], strides = [1, 1]} : vector<27x8xf32> to vector<1x8xf32>
    %78 = vector.shape_cast %77 : vector<1x8xf32> to vector<1x1x1x8xf32>
    %79 = vector.broadcast %78 : vector<1x1x1x8xf32> to vector<4x8x8x8xf32>
    %80 = arith.mulf %76, %79 : vector<4x8x8x8xf32>
    %81 = arith.addf %72, %80 : vector<4x8x8x8xf32>
    %c1_i32 = arith.constant 1 : i32
    %82 = arith.addi %0, %c1_i32 : i32
    %c0_43 = arith.constant 0 : index
    %83 = arith.index_cast %82 : i32 to index
    %c0_44 = arith.constant 0 : index
    %c0_45 = arith.constant 0 : index
    %c0_46 = arith.constant 0 : index
    %84 = vector.load %arg2[%c0_43, %83, %c0_44, %c0_45, %c0_46] : memref<1x10x10x10x8xf32, #tpu.memory_space<vmem>>, vector<1x4x8x8x8xf32>
    %85 = vector.shape_cast %84 : vector<1x4x8x8x8xf32> to vector<4x8x8x8xf32>
    %86 = vector.extract_strided_slice %1 {offsets = [9, 0], sizes = [1, 8], strides = [1, 1]} : vector<27x8xf32> to vector<1x8xf32>
    %87 = vector.shape_cast %86 : vector<1x8xf32> to vector<1x1x1x8xf32>
    %88 = vector.broadcast %87 : vector<1x1x1x8xf32> to vector<4x8x8x8xf32>
    %89 = arith.mulf %85, %88 : vector<4x8x8x8xf32>
    %90 = arith.addf %81, %89 : vector<4x8x8x8xf32>
    %c1_i32_47 = arith.constant 1 : i32
    %91 = arith.addi %0, %c1_i32_47 : i32
    %c0_48 = arith.constant 0 : index
    %92 = arith.index_cast %91 : i32 to index
    %c0_49 = arith.constant 0 : index
    %c1_50 = arith.constant 1 : index
    %c0_51 = arith.constant 0 : index
    %93 = vector.load %arg2[%c0_48, %92, %c0_49, %c1_50, %c0_51] : memref<1x10x10x10x8xf32, #tpu.memory_space<vmem>>, vector<1x4x8x8x8xf32>
    %94 = vector.shape_cast %93 : vector<1x4x8x8x8xf32> to vector<4x8x8x8xf32>
    %95 = vector.extract_strided_slice %1 {offsets = [10, 0], sizes = [1, 8], strides = [1, 1]} : vector<27x8xf32> to vector<1x8xf32>
    %96 = vector.shape_cast %95 : vector<1x8xf32> to vector<1x1x1x8xf32>
    %97 = vector.broadcast %96 : vector<1x1x1x8xf32> to vector<4x8x8x8xf32>
    %98 = arith.mulf %94, %97 : vector<4x8x8x8xf32>
    %99 = arith.addf %90, %98 : vector<4x8x8x8xf32>
    %c1_i32_52 = arith.constant 1 : i32
    %100 = arith.addi %0, %c1_i32_52 : i32
    %c0_53 = arith.constant 0 : index
    %101 = arith.index_cast %100 : i32 to index
    %c0_54 = arith.constant 0 : index
    %c2_55 = arith.constant 2 : index
    %c0_56 = arith.constant 0 : index
    %102 = vector.load %arg2[%c0_53, %101, %c0_54, %c2_55, %c0_56] : memref<1x10x10x10x8xf32, #tpu.memory_space<vmem>>, vector<1x4x8x8x8xf32>
    %103 = vector.shape_cast %102 : vector<1x4x8x8x8xf32> to vector<4x8x8x8xf32>
    %104 = vector.extract_strided_slice %1 {offsets = [11, 0], sizes = [1, 8], strides = [1, 1]} : vector<27x8xf32> to vector<1x8xf32>
    %105 = vector.shape_cast %104 : vector<1x8xf32> to vector<1x1x1x8xf32>
    %106 = vector.broadcast %105 : vector<1x1x1x8xf32> to vector<4x8x8x8xf32>
    %107 = arith.mulf %103, %106 : vector<4x8x8x8xf32>
    %108 = arith.addf %99, %107 : vector<4x8x8x8xf32>
    %c1_i32_57 = arith.constant 1 : i32
    %109 = arith.addi %0, %c1_i32_57 : i32
    %c0_58 = arith.constant 0 : index
    %110 = arith.index_cast %109 : i32 to index
    %c1_59 = arith.constant 1 : index
    %c0_60 = arith.constant 0 : index
    %c0_61 = arith.constant 0 : index
    %111 = vector.load %arg2[%c0_58, %110, %c1_59, %c0_60, %c0_61] : memref<1x10x10x10x8xf32, #tpu.memory_space<vmem>>, vector<1x4x8x8x8xf32>
    %112 = vector.shape_cast %111 : vector<1x4x8x8x8xf32> to vector<4x8x8x8xf32>
    %113 = vector.extract_strided_slice %1 {offsets = [12, 0], sizes = [1, 8], strides = [1, 1]} : vector<27x8xf32> to vector<1x8xf32>
    %114 = vector.shape_cast %113 : vector<1x8xf32> to vector<1x1x1x8xf32>
    %115 = vector.broadcast %114 : vector<1x1x1x8xf32> to vector<4x8x8x8xf32>
    %116 = arith.mulf %112, %115 : vector<4x8x8x8xf32>
    %117 = arith.addf %108, %116 : vector<4x8x8x8xf32>
    %c1_i32_62 = arith.constant 1 : i32
    %118 = arith.addi %0, %c1_i32_62 : i32
    %c0_63 = arith.constant 0 : index
    %119 = arith.index_cast %118 : i32 to index
    %c1_64 = arith.constant 1 : index
    %c1_65 = arith.constant 1 : index
    %c0_66 = arith.constant 0 : index
    %120 = vector.load %arg2[%c0_63, %119, %c1_64, %c1_65, %c0_66] : memref<1x10x10x10x8xf32, #tpu.memory_space<vmem>>, vector<1x4x8x8x8xf32>
    %121 = vector.shape_cast %120 : vector<1x4x8x8x8xf32> to vector<4x8x8x8xf32>
    %122 = vector.extract_strided_slice %1 {offsets = [13, 0], sizes = [1, 8], strides = [1, 1]} : vector<27x8xf32> to vector<1x8xf32>
    %123 = vector.shape_cast %122 : vector<1x8xf32> to vector<1x1x1x8xf32>
    %124 = vector.broadcast %123 : vector<1x1x1x8xf32> to vector<4x8x8x8xf32>
    %125 = arith.mulf %121, %124 : vector<4x8x8x8xf32>
    %126 = arith.addf %117, %125 : vector<4x8x8x8xf32>
    %c1_i32_67 = arith.constant 1 : i32
    %127 = arith.addi %0, %c1_i32_67 : i32
    %c0_68 = arith.constant 0 : index
    %128 = arith.index_cast %127 : i32 to index
    %c1_69 = arith.constant 1 : index
    %c2_70 = arith.constant 2 : index
    %c0_71 = arith.constant 0 : index
    %129 = vector.load %arg2[%c0_68, %128, %c1_69, %c2_70, %c0_71] : memref<1x10x10x10x8xf32, #tpu.memory_space<vmem>>, vector<1x4x8x8x8xf32>
    %130 = vector.shape_cast %129 : vector<1x4x8x8x8xf32> to vector<4x8x8x8xf32>
    %131 = vector.extract_strided_slice %1 {offsets = [14, 0], sizes = [1, 8], strides = [1, 1]} : vector<27x8xf32> to vector<1x8xf32>
    %132 = vector.shape_cast %131 : vector<1x8xf32> to vector<1x1x1x8xf32>
    %133 = vector.broadcast %132 : vector<1x1x1x8xf32> to vector<4x8x8x8xf32>
    %134 = arith.mulf %130, %133 : vector<4x8x8x8xf32>
    %135 = arith.addf %126, %134 : vector<4x8x8x8xf32>
    %c1_i32_72 = arith.constant 1 : i32
    %136 = arith.addi %0, %c1_i32_72 : i32
    %c0_73 = arith.constant 0 : index
    %137 = arith.index_cast %136 : i32 to index
    %c2_74 = arith.constant 2 : index
    %c0_75 = arith.constant 0 : index
    %c0_76 = arith.constant 0 : index
    %138 = vector.load %arg2[%c0_73, %137, %c2_74, %c0_75, %c0_76] : memref<1x10x10x10x8xf32, #tpu.memory_space<vmem>>, vector<1x4x8x8x8xf32>
    %139 = vector.shape_cast %138 : vector<1x4x8x8x8xf32> to vector<4x8x8x8xf32>
    %140 = vector.extract_strided_slice %1 {offsets = [15, 0], sizes = [1, 8], strides = [1, 1]} : vector<27x8xf32> to vector<1x8xf32>
    %141 = vector.shape_cast %140 : vector<1x8xf32> to vector<1x1x1x8xf32>
    %142 = vector.broadcast %141 : vector<1x1x1x8xf32> to vector<4x8x8x8xf32>
    %143 = arith.mulf %139, %142 : vector<4x8x8x8xf32>
    %144 = arith.addf %135, %143 : vector<4x8x8x8xf32>
    %c1_i32_77 = arith.constant 1 : i32
    %145 = arith.addi %0, %c1_i32_77 : i32
    %c0_78 = arith.constant 0 : index
    %146 = arith.index_cast %145 : i32 to index
    %c2_79 = arith.constant 2 : index
    %c1_80 = arith.constant 1 : index
    %c0_81 = arith.constant 0 : index
    %147 = vector.load %arg2[%c0_78, %146, %c2_79, %c1_80, %c0_81] : memref<1x10x10x10x8xf32, #tpu.memory_space<vmem>>, vector<1x4x8x8x8xf32>
    %148 = vector.shape_cast %147 : vector<1x4x8x8x8xf32> to vector<4x8x8x8xf32>
    %149 = vector.extract_strided_slice %1 {offsets = [16, 0], sizes = [1, 8], strides = [1, 1]} : vector<27x8xf32> to vector<1x8xf32>
    %150 = vector.shape_cast %149 : vector<1x8xf32> to vector<1x1x1x8xf32>
    %151 = vector.broadcast %150 : vector<1x1x1x8xf32> to vector<4x8x8x8xf32>
    %152 = arith.mulf %148, %151 : vector<4x8x8x8xf32>
    %153 = arith.addf %144, %152 : vector<4x8x8x8xf32>
    %c1_i32_82 = arith.constant 1 : i32
    %154 = arith.addi %0, %c1_i32_82 : i32
    %c0_83 = arith.constant 0 : index
    %155 = arith.index_cast %154 : i32 to index
    %c2_84 = arith.constant 2 : index
    %c2_85 = arith.constant 2 : index
    %c0_86 = arith.constant 0 : index
    %156 = vector.load %arg2[%c0_83, %155, %c2_84, %c2_85, %c0_86] : memref<1x10x10x10x8xf32, #tpu.memory_space<vmem>>, vector<1x4x8x8x8xf32>
    %157 = vector.shape_cast %156 : vector<1x4x8x8x8xf32> to vector<4x8x8x8xf32>
    %158 = vector.extract_strided_slice %1 {offsets = [17, 0], sizes = [1, 8], strides = [1, 1]} : vector<27x8xf32> to vector<1x8xf32>
    %159 = vector.shape_cast %158 : vector<1x8xf32> to vector<1x1x1x8xf32>
    %160 = vector.broadcast %159 : vector<1x1x1x8xf32> to vector<4x8x8x8xf32>
    %161 = arith.mulf %157, %160 : vector<4x8x8x8xf32>
    %162 = arith.addf %153, %161 : vector<4x8x8x8xf32>
    %c2_i32 = arith.constant 2 : i32
    %163 = arith.addi %0, %c2_i32 : i32
    %c0_87 = arith.constant 0 : index
    %164 = arith.index_cast %163 : i32 to index
    %c0_88 = arith.constant 0 : index
    %c0_89 = arith.constant 0 : index
    %c0_90 = arith.constant 0 : index
    %165 = vector.load %arg2[%c0_87, %164, %c0_88, %c0_89, %c0_90] : memref<1x10x10x10x8xf32, #tpu.memory_space<vmem>>, vector<1x4x8x8x8xf32>
    %166 = vector.shape_cast %165 : vector<1x4x8x8x8xf32> to vector<4x8x8x8xf32>
    %167 = vector.extract_strided_slice %1 {offsets = [18, 0], sizes = [1, 8], strides = [1, 1]} : vector<27x8xf32> to vector<1x8xf32>
    %168 = vector.shape_cast %167 : vector<1x8xf32> to vector<1x1x1x8xf32>
    %169 = vector.broadcast %168 : vector<1x1x1x8xf32> to vector<4x8x8x8xf32>
    %170 = arith.mulf %166, %169 : vector<4x8x8x8xf32>
    %171 = arith.addf %162, %170 : vector<4x8x8x8xf32>
    %c2_i32_91 = arith.constant 2 : i32
    %172 = arith.addi %0, %c2_i32_91 : i32
    %c0_92 = arith.constant 0 : index
    %173 = arith.index_cast %172 : i32 to index
    %c0_93 = arith.constant 0 : index
    %c1_94 = arith.constant 1 : index
    %c0_95 = arith.constant 0 : index
    %174 = vector.load %arg2[%c0_92, %173, %c0_93, %c1_94, %c0_95] : memref<1x10x10x10x8xf32, #tpu.memory_space<vmem>>, vector<1x4x8x8x8xf32>
    %175 = vector.shape_cast %174 : vector<1x4x8x8x8xf32> to vector<4x8x8x8xf32>
    %176 = vector.extract_strided_slice %1 {offsets = [19, 0], sizes = [1, 8], strides = [1, 1]} : vector<27x8xf32> to vector<1x8xf32>
    %177 = vector.shape_cast %176 : vector<1x8xf32> to vector<1x1x1x8xf32>
    %178 = vector.broadcast %177 : vector<1x1x1x8xf32> to vector<4x8x8x8xf32>
    %179 = arith.mulf %175, %178 : vector<4x8x8x8xf32>
    %180 = arith.addf %171, %179 : vector<4x8x8x8xf32>
    %c2_i32_96 = arith.constant 2 : i32
    %181 = arith.addi %0, %c2_i32_96 : i32
    %c0_97 = arith.constant 0 : index
    %182 = arith.index_cast %181 : i32 to index
    %c0_98 = arith.constant 0 : index
    %c2_99 = arith.constant 2 : index
    %c0_100 = arith.constant 0 : index
    %183 = vector.load %arg2[%c0_97, %182, %c0_98, %c2_99, %c0_100] : memref<1x10x10x10x8xf32, #tpu.memory_space<vmem>>, vector<1x4x8x8x8xf32>
    %184 = vector.shape_cast %183 : vector<1x4x8x8x8xf32> to vector<4x8x8x8xf32>
    %185 = vector.extract_strided_slice %1 {offsets = [20, 0], sizes = [1, 8], strides = [1, 1]} : vector<27x8xf32> to vector<1x8xf32>
    %186 = vector.shape_cast %185 : vector<1x8xf32> to vector<1x1x1x8xf32>
    %187 = vector.broadcast %186 : vector<1x1x1x8xf32> to vector<4x8x8x8xf32>
    %188 = arith.mulf %184, %187 : vector<4x8x8x8xf32>
    %189 = arith.addf %180, %188 : vector<4x8x8x8xf32>
    %c2_i32_101 = arith.constant 2 : i32
    %190 = arith.addi %0, %c2_i32_101 : i32
    %c0_102 = arith.constant 0 : index
    %191 = arith.index_cast %190 : i32 to index
    %c1_103 = arith.constant 1 : index
    %c0_104 = arith.constant 0 : index
    %c0_105 = arith.constant 0 : index
    %192 = vector.load %arg2[%c0_102, %191, %c1_103, %c0_104, %c0_105] : memref<1x10x10x10x8xf32, #tpu.memory_space<vmem>>, vector<1x4x8x8x8xf32>
    %193 = vector.shape_cast %192 : vector<1x4x8x8x8xf32> to vector<4x8x8x8xf32>
    %194 = vector.extract_strided_slice %1 {offsets = [21, 0], sizes = [1, 8], strides = [1, 1]} : vector<27x8xf32> to vector<1x8xf32>
    %195 = vector.shape_cast %194 : vector<1x8xf32> to vector<1x1x1x8xf32>
    %196 = vector.broadcast %195 : vector<1x1x1x8xf32> to vector<4x8x8x8xf32>
    %197 = arith.mulf %193, %196 : vector<4x8x8x8xf32>
    %198 = arith.addf %189, %197 : vector<4x8x8x8xf32>
    %c2_i32_106 = arith.constant 2 : i32
    %199 = arith.addi %0, %c2_i32_106 : i32
    %c0_107 = arith.constant 0 : index
    %200 = arith.index_cast %199 : i32 to index
    %c1_108 = arith.constant 1 : index
    %c1_109 = arith.constant 1 : index
    %c0_110 = arith.constant 0 : index
    %201 = vector.load %arg2[%c0_107, %200, %c1_108, %c1_109, %c0_110] : memref<1x10x10x10x8xf32, #tpu.memory_space<vmem>>, vector<1x4x8x8x8xf32>
    %202 = vector.shape_cast %201 : vector<1x4x8x8x8xf32> to vector<4x8x8x8xf32>
    %203 = vector.extract_strided_slice %1 {offsets = [22, 0], sizes = [1, 8], strides = [1, 1]} : vector<27x8xf32> to vector<1x8xf32>
    %204 = vector.shape_cast %203 : vector<1x8xf32> to vector<1x1x1x8xf32>
    %205 = vector.broadcast %204 : vector<1x1x1x8xf32> to vector<4x8x8x8xf32>
    %206 = arith.mulf %202, %205 : vector<4x8x8x8xf32>
    %207 = arith.addf %198, %206 : vector<4x8x8x8xf32>
    %c2_i32_111 = arith.constant 2 : i32
    %208 = arith.addi %0, %c2_i32_111 : i32
    %c0_112 = arith.constant 0 : index
    %209 = arith.index_cast %208 : i32 to index
    %c1_113 = arith.constant 1 : index
    %c2_114 = arith.constant 2 : index
    %c0_115 = arith.constant 0 : index
    %210 = vector.load %arg2[%c0_112, %209, %c1_113, %c2_114, %c0_115] : memref<1x10x10x10x8xf32, #tpu.memory_space<vmem>>, vector<1x4x8x8x8xf32>
    %211 = vector.shape_cast %210 : vector<1x4x8x8x8xf32> to vector<4x8x8x8xf32>
    %212 = vector.extract_strided_slice %1 {offsets = [23, 0], sizes = [1, 8], strides = [1, 1]} : vector<27x8xf32> to vector<1x8xf32>
    %213 = vector.shape_cast %212 : vector<1x8xf32> to vector<1x1x1x8xf32>
    %214 = vector.broadcast %213 : vector<1x1x1x8xf32> to vector<4x8x8x8xf32>
    %215 = arith.mulf %211, %214 : vector<4x8x8x8xf32>
    %216 = arith.addf %207, %215 : vector<4x8x8x8xf32>
    %c2_i32_116 = arith.constant 2 : i32
    %217 = arith.addi %0, %c2_i32_116 : i32
    %c0_117 = arith.constant 0 : index
    %218 = arith.index_cast %217 : i32 to index
    %c2_118 = arith.constant 2 : index
    %c0_119 = arith.constant 0 : index
    %c0_120 = arith.constant 0 : index
    %219 = vector.load %arg2[%c0_117, %218, %c2_118, %c0_119, %c0_120] : memref<1x10x10x10x8xf32, #tpu.memory_space<vmem>>, vector<1x4x8x8x8xf32>
    %220 = vector.shape_cast %219 : vector<1x4x8x8x8xf32> to vector<4x8x8x8xf32>
    %221 = vector.extract_strided_slice %1 {offsets = [24, 0], sizes = [1, 8], strides = [1, 1]} : vector<27x8xf32> to vector<1x8xf32>
    %222 = vector.shape_cast %221 : vector<1x8xf32> to vector<1x1x1x8xf32>
    %223 = vector.broadcast %222 : vector<1x1x1x8xf32> to vector<4x8x8x8xf32>
    %224 = arith.mulf %220, %223 : vector<4x8x8x8xf32>
    %225 = arith.addf %216, %224 : vector<4x8x8x8xf32>
    %c2_i32_121 = arith.constant 2 : i32
    %226 = arith.addi %0, %c2_i32_121 : i32
    %c0_122 = arith.constant 0 : index
    %227 = arith.index_cast %226 : i32 to index
    %c2_123 = arith.constant 2 : index
    %c1_124 = arith.constant 1 : index
    %c0_125 = arith.constant 0 : index
    %228 = vector.load %arg2[%c0_122, %227, %c2_123, %c1_124, %c0_125] : memref<1x10x10x10x8xf32, #tpu.memory_space<vmem>>, vector<1x4x8x8x8xf32>
    %229 = vector.shape_cast %228 : vector<1x4x8x8x8xf32> to vector<4x8x8x8xf32>
    %230 = vector.extract_strided_slice %1 {offsets = [25, 0], sizes = [1, 8], strides = [1, 1]} : vector<27x8xf32> to vector<1x8xf32>
    %231 = vector.shape_cast %230 : vector<1x8xf32> to vector<1x1x1x8xf32>
    %232 = vector.broadcast %231 : vector<1x1x1x8xf32> to vector<4x8x8x8xf32>
    %233 = arith.mulf %229, %232 : vector<4x8x8x8xf32>
    %234 = arith.addf %225, %233 : vector<4x8x8x8xf32>
    %c2_i32_126 = arith.constant 2 : i32
    %235 = arith.addi %0, %c2_i32_126 : i32
    %c0_127 = arith.constant 0 : index
    %236 = arith.index_cast %235 : i32 to index
    %c2_128 = arith.constant 2 : index
    %c2_129 = arith.constant 2 : index
    %c0_130 = arith.constant 0 : index
    %237 = vector.load %arg2[%c0_127, %236, %c2_128, %c2_129, %c0_130] : memref<1x10x10x10x8xf32, #tpu.memory_space<vmem>>, vector<1x4x8x8x8xf32>
    %238 = vector.shape_cast %237 : vector<1x4x8x8x8xf32> to vector<4x8x8x8xf32>
    %239 = vector.extract_strided_slice %1 {offsets = [26, 0], sizes = [1, 8], strides = [1, 1]} : vector<27x8xf32> to vector<1x8xf32>
    %240 = vector.shape_cast %239 : vector<1x8xf32> to vector<1x1x1x8xf32>
    %241 = vector.broadcast %240 : vector<1x1x1x8xf32> to vector<4x8x8x8xf32>
    %242 = arith.mulf %238, %241 : vector<4x8x8x8xf32>
    %243 = arith.addf %234, %242 : vector<4x8x8x8xf32>
    %244 = vector.shape_cast %243 : vector<4x8x8x8xf32> to vector<256x8xf32>
    %c0_131 = arith.constant 0 : index
    %c0_132 = arith.constant 0 : index
    %245 = vector.load %arg4[%c0_131, %c0_132] : memref<8x16xf32, #tpu.memory_space<vmem>>, vector<8x16xf32>
    %cst = arith.constant dense<0.000000e+00> : vector<256x16xf32>
    %246 = tpu.matmul %244, %245, %cst {dimension_numbers = #tpu.dot_dimension_numbers<[1], [0], [0], [1], [0, 0, 1, 1], [], []>} : vector<256x8xf32>, vector<8x16xf32>, vector<256x16xf32> -> vector<256x16xf32>
    %c0_133 = arith.constant 0 : index
    %c0_134 = arith.constant 0 : index
    %247 = vector.load %arg5[%c0_133, %c0_134] : memref<1x16xf32, #tpu.memory_space<vmem>>, vector<1x16xf32>
    %248 = vector.broadcast %247 : vector<1x16xf32> to vector<256x16xf32>
    %249 = arith.addf %246, %248 : vector<256x16xf32>
    %c0_135 = arith.constant 0 : index
    %c0_136 = arith.constant 0 : index
    %c0_137 = arith.constant 0 : index
    %250 = vector.load %arg6[%c0_135, %c0_136, %c0_137] : memref<1x256x16xf32, #tpu.memory_space<vmem>>, vector<1x256x16xf32>
    %251 = vector.shape_cast %250 : vector<1x256x16xf32> to vector<256x16xf32>
    %252 = vector.shape_cast %249 : vector<256x16xf32> to vector<1x256x16xf32>
    tpu.vector_store %arg6[%c0_135, %c0_136, %c0_137], %252 {strides = array<i32>} : memref<1x256x16xf32, #tpu.memory_space<vmem>>, vector<1x256x16xf32>,
    return
  }
  func.func @transform_0(%arg0: i32, %arg1: i32) -> (i32, i32, i32, i32, i32) {
    %c0_i32 = arith.constant 0 : i32
    %c0_i32_0 = arith.constant 0 : i32
    %c0_i32_1 = arith.constant 0 : i32
    %c0_i32_2 = arith.constant 0 : i32
    %c0_i32_3 = arith.constant 0 : i32
    return %arg0, %c0_i32, %c0_i32_0, %c0_i32_1, %c0_i32_2 : i32, i32, i32, i32, i32
  }
  func.func @transform_1(%arg0: i32, %arg1: i32) -> (i32, i32) {
    %c0_i32 = arith.constant 0 : i32
    %c0_i32_0 = arith.constant 0 : i32
    %c0_i32_1 = arith.constant 0 : i32
    return %c0_i32, %c0_i32_0 : i32, i32
  }
  func.func @transform_2(%arg0: i32, %arg1: i32) -> (i32, i32) {
    %c0_i32 = arith.constant 0 : i32
    %c0_i32_0 = arith.constant 0 : i32
    %c0_i32_1 = arith.constant 0 : i32
    return %c0_i32, %c0_i32_0 : i32, i32
  }
  func.func @transform_3(%arg0: i32, %arg1: i32) -> (i32, i32) {
    %c0_i32 = arith.constant 0 : i32
    %c0_i32_0 = arith.constant 0 : i32
    %c0_i32_1 = arith.constant 0 : i32
    return %c0_i32, %c0_i32_0 : i32, i32
  }
  func.func @transform_4(%arg0: i32, %arg1: i32) -> (i32, i32, i32) {
    %c0_i32 = arith.constant 0 : i32
    %c0_i32_0 = arith.constant 0 : i32
    return %arg0, %arg1, %c0_i32 : i32, i32, i32
  }
}

</mosaic_0001>

<bundles_post_ra>
// kernel: squeeze.2
= control target key start
LH: loop header
LB: loop body
LE: loop exit
PB: predicated region body
PF: predicated region fallthrough
CT: control target
= control target key end

     0   :  { %2 = vsyncpa [#allocation1], 0  ;;  %vm47_vm0 = vcmask 64512   ;;  %s198_s0 = inlined_call_operand.vmem [shape: f32[8,3,3,3], index: 0, kind: input, shape index: {}]   ;;  %s199_s1 = inlined_call_operand.hbm [shape: f32[8,27], index: 1, kind: output, shape index: {}]  }
   0x1   :  { %v106_v0 = vld [vmem:[%s198_s0 + $0x20] sm:$0xf]  ;;  %v107_v1 = vld [vmem:[%s198_s0 + $0x1c] sm:$0xf]  ;;  %v108_v2 = vld [vmem:[%s198_s0 + $0x18] sm:$0xf] }
   0x2   :  { %9 = vst [vmem:[#allocation2 + $0x40] sm:$0xf] %v106_v0  ;;  %14 = vst [vmem:[#allocation2 + $0x38] sm:$0xf] %v107_v1  ;;  %v109_v3 = vld [vmem:[%s198_s0 + $0x14] sm:$0xf] }
   0x3   :  { %v110_v4 = vld [vmem:[%s198_s0 + $0x10] sm:$0xf]  ;;  %19 = vst [vmem:[#allocation2 + $0x30] sm:$0xf] %v108_v2  ;;  %24 = vst [vmem:[#allocation2 + $0x28] sm:$0xf] %v109_v3 }
   0x4   :  { %29 = vst [vmem:[#allocation2 + $0x20] sm:$0xf] %v110_v4  ;;  %v111_v5 = vld [vmem:[%s198_s0 + $0xc] sm:$0xf]  ;;  %v112_v6 = vld [vmem:[%s198_s0 + $0x8] sm:$0xf] }
   0x5   :  { %v113_v7 = vld [vmem:[%s198_s0 + $0x4] sm:$0xf]  ;;  %34 = vst [vmem:[#allocation2 + $0x18] sm:$0xf] %v111_v5  ;;  %39 = vst [vmem:[#allocation2 + $0x10] sm:$0xf] %v112_v6 }
   0x6   :  { %43 = vst [vmem:[#allocation2 + $0x8] sm:$0xf] %v113_v7  ;;  %v44_v8 = vld [vmem:[%s198_s0] sm:$0xf]  ;;  %s139_s0 = smov [#allocation0]  }
   0x7   :  { %45 = vst [vmem:[#allocation2] sm:$0xf] %v44_v8  ;;  %s93_s24 = sshll.u32 %s139_s0, 4  ;;  %s94_s24 = int_to_ptr.vmem [resolvable:$true] %s93_s24 }
   0x8   :  { %s115_s25 = scalar_lea.vmem %s94_s24, 512  ;;  %p120_p1 = scmp.lt.s32.totalorder %s94_s24, %s94_s24 }
   0x9   :  { %v80_v9 = vld [vmem:[#allocation2 + $0x38] sm:$0x7]   ;;  %v85_v10 = vld [vmem:[#allocation2 + $0x40] sm:$0x7]   ;;  %p116_p0 = scmp.ne.s32.totalorder %s94_s24, %s115_s25  ;;  %p121_p2 = scmp.lt.s32.totalorder %s115_s25, %s115_s25 }
   0xa   :  { %v70_v12 = vld [vmem:[#allocation2 + $0x28] sm:$0x7]   ;;  %v75_v13 = vld [vmem:[#allocation2 + $0x30] sm:$0x7]   ;;  %83 = vst.msk [vmem:[#allocation0 + $0x15] sm:$0x7] %vm47_vm0, %v80_v9  }
   0xb   :  { %v65_v11 = vld [vmem:[#allocation2 + $0x20] sm:$0x7]   ;;  %88 = vst.msk [vmem:[#allocation0 + $0x18] sm:$0x7] %vm47_vm0, %v85_v10   ;;  %73 = vst.msk [vmem:[#allocation0 + $0xf] sm:$0x7] %vm47_vm0, %v70_v12   ;;  %p122_p3 = por %p121_p2, %p120_p1 }
   0xc   :  { %v55_v15 = vld [vmem:[#allocation2 + $0x10] sm:$0x7]   ;;  %v60_v16 = vld [vmem:[#allocation2 + $0x18] sm:$0x7]   ;;  %68 = vst.msk [vmem:[#allocation0 + $0xc] sm:$0x7] %vm47_vm0, %v65_v11  }
   0xd   :  { %v50_v14 = vld [vmem:[#allocation2 + $0x8] sm:$0x7]   ;;  %78 = vst.msk [vmem:[#allocation0 + $0x12] sm:$0x7] %vm47_vm0, %v75_v13   ;;  %58 = vst.msk [vmem:[#allocation0 + $0x6] sm:$0x7] %vm47_vm0, %v55_v15   ;;  %p123_p4 = pnand %p122_p3, %p116_p0 }
   0xe   :  { %v46_v17 = vld [vmem:[#allocation2] sm:$0x7]   ;;  %53 = vst.msk [vmem:[#allocation0 + $0x3] sm:$0x7] %vm47_vm0, %v50_v14   ;;  %63 = vst.msk [vmem:[#allocation0 + $0x9] sm:$0x7] %vm47_vm0, %v60_v16  }
   0xf   :  { %48 = vst.msk [vmem:[#allocation0] sm:$0x7] %vm47_vm0, %v46_v17  }
  0x10   :  { %126 = shalt.err (!%p123_p4)
}
  0x11   :  { %s127_s28 = scalar_lea.hbm %s199_s1, 512 }
  0x12   :  { %p128_p5 = scmp.ne.s32.totalorder %s199_s1, %s127_s28  ;;  %p131_p6 = scmp.lt.u32.totalorder %s127_s28, %s199_s1 }
  0x14   :  { %p133_p7 = pnand %p131_p6, %p128_p5 }
  0x16   :  { %136 = shalt.err (!%p133_p7)
}
  0x17   :  { %96 = dma.vmem_to_hbm [thread:$0]  %s94_s24, 512, %s199_s1, [#allocation1]  }
  0x18   :  { %137 = dma.done.wait [#allocation1], 512  }
  0x19   :  { %138 = vsyncadd [#allocation1], 4294966784 }
  0x1a   :  { %98 = vsyncpa [#allocation1], 1 }

// kernel: depthwise_separable_conv.1
= control target key start
LH: loop header
LB: loop body
LE: loop exit
PB: predicated region body
PF: predicated region fallthrough
CT: control target
= control target key end

     0   :  { %s8219_s0 = inlined_call_operand.hbm [shape: f32[2,10,10,10,8], index: 0, kind: input, shape index: {}]   ;;  %s8220_s1 = inlined_call_operand.hbm [shape: f32[27,8], index: 1, kind: input, shape index: {}]   ;;  %s8221_s2 = inlined_call_operand.hbm [shape: f32[8,16], index: 2, kind: input, shape index: {}]   ;;  %s8222_s3 = inlined_call_operand.hbm [shape: f32[1,16], index: 3, kind: input, shape index: {}]   ;;  %s8223_s4 = inlined_call_operand.hbm [shape: f32[2,512,16], index: 4, kind: output, shape index: {}]  }
   0x1   :  { %8642 = sst [smem:[#allocation76_spill]] %s8220_s1 }
   0x2   :  { %8643 = sst [smem:[#allocation77_spill]] %s8221_s2 }
   0x3   :  { %8644 = sst [smem:[#allocation78_spill]] %s8223_s4 }
   0x4   :  { %9 = vsyncpa [#allocation3], 0 }
   0x5   :  { %11 = vsyncpa [#allocation3 + $0x1], 0 }
   0x6   :  { %12 = vsyncpa [#allocation6], 0 }
   0x7   :  { %13 = vsyncpa [#allocation9], 0 }
   0x8   :  { %14 = vsyncpa [#allocation4], 0 }
   0x9   :  { %16 = vsyncpa [#allocation4 + $0x1], 0  ;;  %s4830_s15 = smov 0   ;;  %s4832_s16 = smov 0  }
   0xa   :  { %s4834_s17 = smov 0   ;;  %s4836_s18 = smov 0  }
   0xb   :  { %s4838_s19 = smov 0   ;;  %s4840_s20 = smov 0  }
   0xc   :  { %s4842_s21 = smov 0   ;;  %s4844_s22 = smov 0  }
   0xd   :  { %s4846_s23 = smov 0   ;;  %s4848_s24 = smov 0  }
   0xe   :  { %s4850_s25 = smov 0  }
   0xf LB: > { %8645 = sst [smem:[#allocation15_spill]] %s4754_s15  ;;  %s3491_s26 = sadd.s32 4294967295, %s4794_s25   ;;  %s4794_s25 = sphi %s4850_s25, %s22_s25   ;;  %s4790_s24 = sphi %s4848_s24, %s9330_s24   ;;  %s4786_s23 = sphi %s4846_s23, %s9329_s23   ;;  %s4782_s22 = sphi %s4844_s22, %s9328_s22   ;;  %s4778_s21 = sphi %s4842_s21, %s9327_s21   ;;  %s4774_s20 = sphi %s4840_s20, %s9326_s20   ;;  %s4770_s19 = sphi %s4838_s19, %s9325_s19   ;;  %s4766_s18 = sphi %s4836_s18, %s9324_s18   ;;  %s4762_s17 = sphi %s4834_s17, %s9323_s17   ;;  %s4758_s16 = sphi %s4832_s16, %s9322_s16   ;;  %s4754_s15 = sphi %s4830_s15, %s9321_s15  }
  0x10   : > { %8646 = sst [smem:[#allocation16_spill]] %s4782_s22  ;;  %s3492_s27 = sadd.s32 4294967294, %s4794_s25  }
  0x11   : > { %p54_p0 = scmp.ne.s32.totalorder %s4770_s19, %s4766_s18  ;;  %p4886_p1 = scmp.eq.s32.totalorder %s3491_s26, 0 }
  0x12   : > { %p142_p2 = scmp.ne.s32.totalorder %s4762_s17, %s4758_s16  ;;  %p143_p4 = scmp.eq.s32.totalorder %s3491_s26, 3 }
  0x13   : > { %s8647_s28 = scalar_select %p4886_p1, 1, 0 }
  0x14   : > { %p4895_p3 = por %p4886_p1, %p54_p0  ;;  %p148_p5 = scmp.ne.s32.totalorder %s4758_s16, %s4754_s15 }
  0x15   : > { %p149_p6 = scmp.eq.s32.totalorder %s3492_s27, 3  ;;  %p4901_p7 = por %p143_p4, %p142_p2 }
  0x16   : > { %s8648_s30 = scalar_select %p4895_p3, 1, 0 }
  0x17   : > { %s8649_s5 = scalar_select %p4901_p7, 1, 0 }
  0x18   : > { %p3493_p8 = scmp.ge.s32.totalorder %s4794_s25, 1  ;;  %p4906_p9 = por %p149_p6, %p148_p5 }
  0x19   : > { %8650 = sst [smem:[#allocation17_spill]] %s8649_s5  ;;  %p156_p10 = scmp.lt.s32.totalorder %s4794_s25, 5 }
  0x1a   : > { %s8651_s6 = scalar_select %p4906_p9, 1, 0 }
  0x1b   : > { %p4911_p11 = pnand %p3493_p8, %p156_p10  ;;  %s4796_s8 = smov [#allocation5]  }
  0x1c   : > { %8652 = sst [smem:[#allocation18_spill]] %s8651_s6  ;;  %s168_s9 = sshll.u32 %s4796_s8, 4  ;;  %s4915_s9 = int_to_ptr.vmem [resolvable:$true] %s168_s9 }
  0x1d   : > { %s8653_s7 = scalar_select %p4911_p11, 1, 0 }
  0x1e   : > { %p4429_p12 = pneg %p4911_p11  ;;  %s4797_s11 = smov [#allocation7]  }
  0x1f   : > { %s182_s12 = sshll.u32 %s4797_s11, 4  ;;  %s4798_s13 = smov [#allocation8]   ;;  %s4925_s12 = int_to_ptr.vmem [resolvable:$true] %s182_s12 }
  0x20   : > { %p4921_p13 = pnand %p4429_p12, %p4886_p1  ;;  %s4927_s14 = sshll.u32 %s4798_s13, 4  ;;  %s194_s14 = int_to_ptr.vmem [resolvable:$true] %s4927_s14 }
  0x21   : > { %s8655_s1 = sld [smem:[#allocation76_spill]] }
  0x22   : > { %p4937_p2 = pneg %p4921_p13 }
  0x27   : > { %s4550_s27 = scalar_lea.hbm %s8655_s1, 512 }
  0x28   : > { %p4551_p0 = scmp.ne.s32.totalorder %s8655_s1, %s4550_s27  ;;  %p4557_p6 = scmp.lt.u32.totalorder %s4550_s27, %s8655_s1 }
  0x2a   : > { %p4553_p4 = pnand %p4937_p2, %p4551_p0 }
  0x2c   : > { %p4554_p5 = pneg %p4553_p4 }
  0x2e   : > { %p4559_p8 = pnand %p4557_p6, %p4554_p5 }
  0x30   : > { %4562 = shalt.err (!%p4559_p8)
}
  0x31   : > { %s4563_s29 = scalar_lea.vmem %s4915_s9, 512  ;;  %p4571_p7 = scmp.lt.s32.totalorder %s4915_s9, %s4915_s9 }
  0x32   : > { %p4564_p10 = scmp.ne.s32.totalorder %s4915_s9, %s4563_s29  ;;  %p4572_p1 = scmp.lt.s32.totalorder %s4563_s29, %s4563_s29 }
  0x34   : > { %p4566_p12 = pnand %p4564_p10, %p4937_p2  ;;  %p4573_p0 = por %p4572_p1, %p4571_p7 }
  0x36   : > { %p4567_p9 = pneg %p4566_p12 }
  0x38   : > { %p4574_p4 = pnand %p4573_p0, %p4567_p9 }
  0x3a   : > { %4577 = shalt.err (!%p4574_p4)
}
  0x3b   : > { %s8234_s18 = smov 128   ;;  %s8235_s26 = smov 8  }
  0x3c   : > { %4432 = dma.hbm_to_vmem [thread:$0]  (!%p4921_p13), %s8655_s1, 512, %s4915_s9, [#allocation6], %s8234_s18, %s8234_s18, %s8235_s26  }
  0x3d   : > { %s8657_s2 = sld [smem:[#allocation77_spill]] }
  0x43   : > { %s4578_s29 = scalar_lea.hbm %s8657_s2, 128 }
  0x44   : > { %p4579_p1 = scmp.ne.s32.totalorder %s8657_s2, %s4578_s29  ;;  %p4585_p5 = scmp.lt.u32.totalorder %s4578_s29, %s8657_s2 }
  0x46   : > { %p4581_p7 = pnand %p4579_p1, %p4937_p2 }
  0x48   : > { %p4582_p9 = pneg %p4581_p7 }
  0x4a   : > { %p4587_p6 = pnand %p4585_p5, %p4582_p9 }
  0x4c   : > { %4590 = shalt.err (!%p4587_p6)
}
  0x4d   : > { %s4591_s9 = scalar_lea.vmem %s4925_s12, 128  ;;  %p4599_p0 = scmp.lt.s32.totalorder %s4925_s12, %s4925_s12 }
  0x4e   : > { %p4592_p8 = scmp.ne.s32.totalorder %s4925_s12, %s4591_s9  ;;  %p4600_p4 = scmp.lt.s32.totalorder %s4591_s9, %s4591_s9 }
  0x50   : > { %p4594_p10 = pnand %p4592_p8, %p4937_p2  ;;  %p4601_p1 = por %p4600_p4, %p4599_p0 }
  0x52   : > { %p4595_p12 = pneg %p4594_p10 }
  0x54   : > { %p4602_p7 = pnand %p4601_p1, %p4595_p12 }
  0x56   : > { %4605 = shalt.err (!%p4602_p7)
}
  0x57   : > { %4435 = dma.hbm_to_vmem [thread:$0]  (!%p4921_p13), %s8657_s2, 128, %s4925_s12, [#allocation6]  }
  0x58   : > { %s4606_s27 = scalar_lea.hbm %s8222_s3, 16 }
  0x59   : > { %p4607_p9 = scmp.ne.s32.totalorder %s8222_s3, %s4606_s27  ;;  %p4613_p8 = scmp.lt.u32.totalorder %s4606_s27, %s8222_s3 }
  0x5b   : > { %p4609_p5 = pnand %p4607_p9, %p4937_p2 }
  0x5d   : > { %p4610_p6 = pneg %p4609_p5 }
  0x5f   : > { %p4615_p10 = pnand %p4613_p8, %p4610_p6 }
  0x61   : > { %4618 = shalt.err (!%p4615_p10)
}
  0x62   : > { %s4619_s9 = scalar_lea.vmem %s194_s14, 16  ;;  %s4626_s12 = scalar_lea.vmem %s194_s14, 32 }
  0x63   : > { %p4620_p12 = scmp.ne.s32.totalorder %s194_s14, %s4619_s9  ;;  %p4627_p1 = scmp.lt.s32.totalorder %s194_s14, %s194_s14 }
  0x64   : > { %p4628_p7 = scmp.lt.s32.totalorder %s4626_s12, %s4619_s9 }
  0x65   : > { %p4622_p0 = pnand %p4620_p12, %p4937_p2 }
  0x66   : > { %p4629_p3 = por %p4628_p7, %p4627_p1 }
  0x67   : > { %p4623_p4 = pneg %p4622_p0 }
  0x69   : > { %p4630_p11 = pnand %p4629_p3, %p4623_p4 }
  0x6b   : > { %4633 = shalt.err (!%p4630_p11)
}
  0x6c   : > { %4438 = dma.hbm_to_vmem [thread:$0]  (!%p4921_p13), %s8222_s3, 16, %s194_s14, [#allocation9]  }
  0x6d   : > { %s31_s6 = sadd.s32 1, %s4786_s23  ;;  %s34_s22 = sadd.s32 1, %s4790_s24 }
  0x6e   : > { %p32_p3 = scmp.ge.s32.totalorder %s31_s6, 2  ;;  %s41_s10 = sadd.s32 1, %s4774_s20 }
  0x6f   : > { %p48_p11 = scmp.ne.s32.totalorder %s4774_s20, %s4770_s19  ;;  %p49_p2 = scmp.eq.s32.totalorder %s4794_s25, 0 }
  0x70   : > { %s9332_s6 = smov (%p32_p3, %s31_s6), 0  ;;  %s9334_s22 = smov (!%p32_p3, %s34_s22), %s4790_s24 }
  0x71   : > { %s128_s5 = ssub.s32 %s4786_s23, %s9332_s6  ;;  %p36_p9 = scmp.ge.s32.totalorder %s9334_s22, 2 }
  0x72   : > { %p4450_p5 = scmp.lt.s32.totalorder %s4794_s25, 4  ;;  %p5015_p13 = por %p49_p2, %p48_p11 }
  0x73   : > { %s204_s27 = sand.u32 1, %s4774_s20   ;;  %s9336_s22 = smov (%p36_p9, %s9334_s22), 0 }
  0x74   : > { %s4410_s8 = smul.u32 1600, %s204_s27  ;;  %s38_s11 = ssub.s32 %s4790_s24, %s9336_s22 }
  0x75   : > { %s4411_s13 = smul.u32 25600, %s4790_s24  ;;  %p39_p6 = scmp.eq.s32.totalorder %s38_s11, 0 }
  0x76   : > { %s129_s29 = sor.u32 %s128_s5, %s38_s11  ;;  %s8659_s12 = sadd.s32 1, %s4762_s17 }
  0x77   : > { %p130_p8 = scmp.eq.s32.totalorder %s129_s29, 0  ;;  %s5036_s26 = scalar_lea.hbm %s8219_s0, %s4411_s13 }
  0x78   : > { %s5026_s9 = scalar_select %p39_p6, %s4774_s20, %s41_s10  }
  0x79   : > { %s5031_s4 = scalar_select %p130_p8, %s4762_s17, %s8659_s12  }
  0x7a   : > { %s208_s1 = scalar_lea.vmem [#allocation2], %s4410_s8  ;;  %p5044_p10 = pnand %p4450_p5, %p5015_p13 }
  0x7b   : > { %s215_s2 = sshll.u32 %s208_s1, 4  ;;  %s5048_s5 = scalar_lea.sflag [#allocation3], %s204_s27  ;;  %s5038_s2 = int_to_ptr.vmem [resolvable:$true] %s215_s2 }
  0x7c   : > { %s4634_s18 = scalar_lea.hbm %s5036_s26, 25600  ;;  %p4636_p0 = pneg %p5044_p10 }
  0x7d   : > { %p4635_p12 = scmp.ne.s32.totalorder %s5036_s26, %s4634_s18  ;;  %s4639_s14 = scalar_lea.hbm %s8219_s0, 51200 }
  0x7e   : > { %p4640_p7 = scmp.lt.u32.totalorder %s5036_s26, %s8219_s0  ;;  %p4641_p3 = scmp.lt.u32.totalorder %s4639_s14, %s4634_s18 }
  0x7f   : > { %p4637_p4 = pnand %p4636_p0, %p4635_p12  ;;  %p4643_p2 = scmp.lt.u32.totalorder %s4634_s18, %s5036_s26 }
  0x80   : > { %p4642_p11 = por %p4641_p3, %p4640_p7 }
  0x81   : > { %p4638_p1 = pneg %p4637_p4 }
  0x82   : > { %p4644_p9 = por %p4643_p2, %p4642_p11 }
  0x84   : > { %p4645_p5 = pnand %p4644_p9, %p4638_p1 }
  0x86   : > { %4648 = shalt.err (!%p4645_p5)
}
  0x87   : > { %s4649_s27 = scalar_lea.vmem %s5038_s2, 25600  ;;  %s4801_s29 = smov [#allocation2]  }
  0x88   : > { %p4650_p13 = scmp.ne.s32.totalorder %s5038_s2, %s4649_s27  ;;  %s4654_s12 = sshll.u32 %s4801_s29, 4  ;;  %s4655_s12 = int_to_ptr.vmem [resolvable:$false] %s4654_s12 }
  0x89   : > { %s4656_s15 = scalar_lea.vmem %s4655_s12, 51200  ;;  %p4657_p12 = scmp.lt.s32.totalorder %s5038_s2, %s4655_s12 }
  0x8a   : > { %p4652_p6 = pnand %p4650_p13, %p4636_p0  ;;  %p4658_p4 = scmp.lt.s32.totalorder %s4656_s15, %s4649_s27 }
  0x8c   : > { %p4653_p8 = pneg %p4652_p6  ;;  %p4659_p7 = por %p4658_p4, %p4657_p12 }
  0x8e   : > { %p4660_p3 = pnand %p4659_p7, %p4653_p8 }
  0x90   : > { %4663 = shalt.err (!%p4660_p3)
}
  0x91   : > { %s8661_s18 = smov 8   ;;  %s8662_s1 = smov 128  }
  0x92   : > { %4442 = dma.hbm_to_vmem [thread:$0]  (!%p5044_p10), %s5036_s26, 25600, %s5038_s2, %s5048_s5, %s8662_s1, %s8662_s1, %s8661_s18  }
  0x93   : > { %p8663_p0 = scmp.ne.s32.totalorder %s8653_s7, 0 }
  0x95   : > { %227 = sbr.rel (%p8663_p0) target bundleno = 871 (0x367), region = 36 }
  0x9c   : > { %s229_s8 = sand.u32 1, %s4770_s19   ;;  %p8664_p1 = scmp.ne.s32.totalorder %s8648_s30, 0 }
  0x9d   : > { %s4412_s14 = smul.u32 1600, %s229_s8  ;;  %s230_s11 = scalar_lea.sflag [#allocation3], %s229_s8 }
  0x9f   : > { %s233_s13 = scalar_lea.vmem [#allocation2], %s4412_s14 }
  0xa0   : > { %4737 = dma.done.wait (%p8664_p1), %s230_s11, 25600  }
  0xa1   : > { %4739 = vsyncadd (%p8664_p1), %s230_s11, 4294941696  ;;  %p8665_p11 = scmp.ne.s32.totalorder %s8647_s28, 0 }
  0xa3   : > { %4741 = dma.done.wait (%p8665_p11), [#allocation6], 640  }
  0xa4   : > { %4743 = vsyncadd (%p8665_p11), [#allocation6], 4294966656 }
  0xa5   : > { %4745 = dma.done.wait (%p8665_p11), [#allocation9], 16  }
  0xa6   : > { %4747 = vsyncadd (%p8665_p11), [#allocation9], 4294967280  ;;  %v310_v0 = vlaneseq  ;;  %s3505_s2 = smul.u32 640, %s4778_s21  ;;  %v2964_v7 = vld [vmem:[#allocation7] sm:$0xff]  ;;  %v273_v28 = vld [vmem:[#allocation5 + $0x8] sm:$0xff]  ;;  %vm2972_vm0 = vcmask 64512  }
  0xa7   : > { %v272_v8 = vld [vmem:[#allocation5] sm:$0xff]  ;;  %4358 = vmatprep.subr.mxu0 %v2964_v7  ;;  %4408 = vmatprep.subr.mxu1 %v2964_v7  ;;  %v274_v50 = vld [vmem:[#allocation5 + $0x10] sm:$0xff]  ;;  %s267_s28 = sand.u32 1, %s4758_s16   ;;  %vm3294_vm1 = vcmask 130048   ;;  %s9313_s10 = sld [smem:[#allocation16_spill]] }
  0xa8   : > { %v311_v1 = vshrl.u32 %v310_v0, 7  ;;  %s5101_s30 = scalar_lea.vmem %s233_s13, %s3505_s2 [#allocation2]  ;;  %4359 = vmatpush3.msra.mxu0 %v2964_v7  ;;  %4409 = vmatpush3.msra.mxu1 %v2964_v7  ;;  %s3503_s7 = sshll.u32 %s267_s28, 8 }
  0xa9   : > { %v278_v9 = vld [vmem:[%s5101_s30] sm:$0xff]  ;;  %v5133_v22 = vld [vmem:[%s5101_s30 + $0x10] sm:$0xff]  ;;  %s7986_s26 = scalar_lea.vmem [#allocation10], %s3503_s7  ;;  %s4320_s5 = sshll.u32 %s4778_s21, 5 }
  0xaa   : > { %v5095_v2 = vsub.s32 0, %v311_v1  ;;  %v5097_v3 = vsub.s32 1, %v311_v1  ;;  %v5099_v4 = vsub.s32 2, %v311_v1  ;;  %v5103_v5 = vsub.s32 3, %v311_v1  ;;  %v346_v14 = vld [vmem:[%s5101_s30 + $0x1] sm:$0xff]  ;;  %v5143_v27 = vld [vmem:[%s5101_s30 + $0x11] sm:$0xff] }
  0xab   : > { %v5105_v6 = vsub.s32 4, %v311_v1  ;;  %v5117_v13 = vsub.s32 5, %v311_v1  ;;  %v446_v15 = vld [vmem:[%s5101_s30 + $0x2] sm:$0xff]  ;;  %v5124_v17 = vsub.s32 6, %v311_v1  ;;  %v5140_v26 = vsub.s32 7, %v311_v1  ;;  %v5151_v32 = vld [vmem:[%s5101_s30 + $0x12] sm:$0xff] }
  0xac   : > { %v5109_v10 = vrot.slane %v272_v8, %v5095_v2  ;;  %v5112_v11 = vrot.slane %v272_v8, %v5097_v3  ;;  %v5115_v12 = vrot.slane %v272_v8, %v5099_v4  ;;  %v5122_v16 = vrot.slane %v272_v8, %v5103_v5  ;;  %v5159_v36 = vld [vmem:[%s5101_s30 + $0x20] sm:$0xff]  ;;  %s9314_s27 = sld [smem:[#allocation17_spill]]  ;;  %s3343_s18 = sshll.u32 %s7986_s26, 4  ;;  %s8149_s18 = int_to_ptr.vmem [resolvable:$true] %s3343_s18 }
  0xad   : > { %v5130_v21 = vrot.slane %v272_v8, %v5105_v6  ;;  %v5138_v25 = vrot.slane %v272_v8, %v5117_v13  ;;  %v5148_v31 = vrot.slane %v272_v8, %v5124_v17  ;;  %v5156_v35 = vrot.slane %v272_v8, %v5140_v26  ;;  %8670 = vst [vmem:[#allocation23_spill] sm:$0xff] %v5159_v36  ;;  %v5170_v41 = vld [vmem:[%s5101_s30 + $0x21] sm:$0xff]  ;;  %v5214_v8 = vld [vmem:[%s5101_s30 + $0x150] sm:$0xff]  ;;  %s4321_s29 = sshll.u32 %s9313_s10, 6  ;;  %s9315_s14 = sld [smem:[#allocation78_spill]] }
  0xae   : > { %8666 = vst [vmem:[#allocation19_spill] sm:$0xff] %v5109_v10  ;;  %8667 = vst [vmem:[#allocation20_spill] sm:$0xff] %v5112_v11  ;;  %v314_v18 = vmul.f32 %v5109_v10, %v278_v9  ;;  %v382_v19 = vmul.f32 %v5112_v11, %v346_v14  ;;  %v482_v20 = vmul.f32 %v5115_v12, %v446_v15  ;;  %v3700_v42 = vld [vmem:[%s5101_s30 + $0xa0] sm:$0xff]  ;;  %v5218_v14 = vld [vmem:[%s5101_s30 + $0xb0] sm:$0xff]  ;;  %s3340_s12 = sadd.s32 %s4321_s29, %s4320_s5  ;;  %s8158_s21 = scalar_lea.sflag [#allocation4], %s267_s28 }
  0xaf   : > { %v584_v24 = vmul.f32 %v5133_v22, %v5122_v16  ;;  %v684_v30 = vmul.f32 %v5143_v27, %v5130_v21  ;;  %8668 = vst [vmem:[#allocation21_spill] sm:$0xff] %v5148_v31  ;;  %v784_v34 = vmul.f32 %v5151_v32, %v5138_v25  ;;  %8669 = vst [vmem:[#allocation22_spill] sm:$0xff] %v5156_v35  ;;  %v3994_v44 = vld [vmem:[%s5101_s30 + $0x140] sm:$0xff]  ;;  %s4322_s15 = sshll.u32 %s3340_s12, 7  ;;  %s4664_s13 = scalar_lea.vmem %s8149_s18, 4096 }
  0xb0   : > { %v414_v23 = vadd.f32 %v382_v19, %v314_v18  ;;  %v5162_v37 = vrot.slane %v273_v28, %v5095_v2  ;;  %v886_v39 = vmul.f32 %v5159_v36, %v5148_v31  ;;  %v5167_v40 = vrot.slane %v273_v28, %v5097_v3  ;;  %8673 = vst [vmem:[#allocation26_spill] sm:$0xff] %v5170_v41  ;;  %v5180_v47 = vld [vmem:[%s5101_s30 + $0x22] sm:$0xff]  ;;  %p4665_p10 = scmp.ne.s32.totalorder %s8149_s18, %s4664_s13  ;;  %s4802_s2 = smov [#allocation10]  }
  0xb1   : > { %v5174_v43 = vrot.slane %v273_v28, %v5099_v4  ;;  %v986_v46 = vmul.f32 %v5170_v41, %v5156_v35  ;;  %8675 = vst [vmem:[#allocation28_spill] sm:$0xff] %v5180_v47  ;;  %v3732_v48 = vld [vmem:[%s5101_s30 + $0xa1] sm:$0xff]  ;;  %v5187_v52 = vrot.slane %v273_v28, %v5103_v5  ;;  %v5190_v53 = vrot.slane %v273_v28, %v5105_v6 }
  0xb2   : > { %v514_v29 = vadd.f32 %v482_v20, %v414_v23  ;;  %8671 = vst [vmem:[#allocation24_spill] sm:$0xff] %v5162_v37  ;;  %8672 = vst [vmem:[#allocation25_spill] sm:$0xff] %v5167_v40  ;;  %v4026_v49 = vld [vmem:[%s5101_s30 + $0x141] sm:$0xff]  ;;  %v1086_v51 = vmul.f32 %v5180_v47, %v5162_v37  ;;  %v1189_v56 = vmul.f32 %v3700_v42, %v5167_v40  ;;  %p9316_p2 = scmp.ne.s32.totalorder %s9314_s27, 0 }
  0xb3   : > { %8674 = vst [vmem:[#allocation27_spill] sm:$0xff] %v5174_v43  ;;  %8676 = vst [vmem:[#allocation29_spill] sm:$0xff] %v5190_v53  ;;  %v4058_v54 = vld [vmem:[%s5101_s30 + $0x142] sm:$0xff]  ;;  %v5195_v57 = vrot.slane %v273_v28, %v5117_v13  ;;  %v330_v58 = vmul.f32 %v3994_v44, %v5109_v10  ;;  %v1289_v59 = vmul.f32 %v3732_v48, %v5174_v43  ;;  %v275_v48 = vld [vmem:[#allocation5 + $0x18] sm:$0x7]  ;;  %s8147_s11 = scalar_lea.hbm %s9315_s14, %s4322_s15 }
  0xb4   : > { %v616_v33 = vadd.f32 %v584_v24, %v514_v29  ;;  %v3764_v60 = vld [vmem:[%s5101_s30 + $0xa2] sm:$0xff]  ;;  %v5201_v61 = vrot.slane %v273_v28, %v5124_v17  ;;  %v5204_v62 = vrot.slane %v273_v28, %v5140_v26  ;;  %v398_v63 = vmul.f32 %v4026_v49, %v5112_v11  ;;  %v5232_v29 = vld [vmem:[%s5101_s30 + $0xb1] sm:$0xff]  ;;  %p4666_p9 = pnand %p4665_p10, %p9316_p2 }
  0xb5   : > { %8677 = vst [vmem:[#allocation30_spill] sm:$0xff] %v5195_v57  ;;  %v5208_v1 = vrot.slane %v274_v50, %v5095_v2  ;;  %v5211_v7 = vrot.slane %v274_v50, %v5097_v3  ;;  %v498_v9 = vmul.f32 %v4058_v54, %v5115_v12  ;;  %v5221_v15 = vrot.slane %v274_v50, %v5099_v4  ;;  %v5251_v42 = vld [vmem:[%s5101_s30 + $0xc1] sm:$0xff] }
  0xb6   : > { %v716_v38 = vadd.f32 %v684_v30, %v616_v33  ;;  %8678 = vst [vmem:[#allocation31_spill] sm:$0xff] %v5201_v61  ;;  %8679 = vst [vmem:[#allocation32_spill] sm:$0xff] %v5204_v62  ;;  %v5224_v18 = vrot.slane %v274_v50, %v5103_v5  ;;  %v430_v19 = vadd.f32 %v398_v63, %v330_v58  ;;  %v5235_v30 = vld [vmem:[%s5101_s30 + $0xb2] sm:$0xff]  ;;  %p4667_p5 = pneg %p4666_p9 }
  0xb7   : > { %8680 = vst [vmem:[#allocation33_spill] sm:$0xff] %v5208_v1  ;;  %8681 = vst [vmem:[#allocation34_spill] sm:$0xff] %v5211_v7  ;;  %v600_v20 = vmul.f32 %v5214_v8, %v5122_v16  ;;  %v1389_v24 = vmul.f32 %v3764_v60, %v5187_v52  ;;  %v1491_v28 = vmul.f32 %v5218_v14, %v5190_v53  ;;  %v5241_v5 = vld [vmem:[%s5101_s30 + $0x151] sm:$0xff] }
  0xb8   : > { %v816_v45 = vadd.f32 %v784_v34, %v716_v38  ;;  %8682 = vst [vmem:[#allocation35_spill] sm:$0xff] %v5221_v15  ;;  %8683 = vst [vmem:[#allocation36_spill] sm:$0xff] %v5235_v30  ;;  %v5238_v33 = vrot.slane %v274_v50, %v5105_v6  ;;  %v1591_v34 = vmul.f32 %v5232_v29, %v5195_v57  ;;  %v5269_v63 = vld [vmem:[%s5101_s30 + $0x152] sm:$0xff] }
  0xb9   : > { %8684 = vst [vmem:[#allocation37_spill] sm:$0xff] %v5241_v5  ;;  %v1691_v38 = vmul.f32 %v5235_v30, %v5201_v61  ;;  %8686 = vst [vmem:[#allocation39_spill] sm:$0xff] %v5251_v42  ;;  %v700_v6 = vmul.f32 %v5241_v5, %v5130_v21  ;;  %v5262_v58 = vmul.f32 %v5251_v42, %v5208_v1  ;;  %v5289_v30 = vld [vmem:[%s5101_s30 + $0x160] sm:$0xff] }
  0xba   : > { %v918_v55 = vadd.f32 %v886_v39, %v816_v45  ;;  %v5248_v39 = vld [vmem:[%s5101_s30 + $0xc0] sm:$0xff]  ;;  %8688 = vst [vmem:[#allocation41_spill] sm:$0xff] %v5269_v63  ;;  %v5280_v42 = vmul.f32 %v4058_v54, %v5238_v33  ;;  %v902_v54 = vmul.f32 %v5289_v30, %v5148_v31 }
  0xbb   : > { %8685 = vst [vmem:[#allocation38_spill] sm:$0xff] %v5248_v39  ;;  %v5254_v45 = vld [vmem:[%s5101_s30 + $0xc2] sm:$0xff] }
  0xbc   : > { %v1018_v0 = vadd.f32 %v986_v46, %v918_v55  ;;  %8687 = vst [vmem:[#allocation40_spill] sm:$0xff] %v5254_v45  ;;  %v530_v46 = vadd.f32 %v498_v9, %v430_v19  ;;  %v1793_v55 = vmul.f32 %v5248_v39, %v5204_v62  ;;  %v5266_v60 = vmul.f32 %v5254_v45, %v5211_v7 }
  0xbd   : > { %v5275_v9 = vmul.f32 %v4026_v49, %v5224_v18  ;;  %v800_v19 = vmul.f32 %v5269_v63, %v5138_v25  ;;  %v5283_v45 = vrot.slane %v274_v50, %v5117_v13  ;;  %v5286_v39 = vrot.slane %v274_v50, %v5124_v17  ;;  %v5300_v13 = vld [vmem:[%s5101_s30 + $0x161] sm:$0xff] }
  0xbe   : > { %v1118_v23 = vadd.f32 %v1086_v51, %v1018_v0  ;;  %v5272_v0 = vmul.f32 %v3994_v44, %v5221_v15  ;;  %v5292_v44 = vrot.slane %v274_v50, %v5140_v26  ;;  %v5295_v49 = vrot.slane %v275_v48, %v5095_v2  ;;  %8690 = vst [vmem:[#allocation43_spill] sm:$0xff] %v5300_v13 }
  0xbf   : > { %v5303_v17 = vrot.slane %v275_v48, %v5097_v3  ;;  %v383_v26 = vmul.f32 %v5143_v27, %v5112_v11  ;;  %v5310_v2 = vrot.slane %v275_v48, %v5099_v4  ;;  %v585_v4 = vmul.f32 %v5159_v36, %v5122_v16 }
  0xc0   : > { %v1221_v51 = vadd.f32 %v1189_v56, %v1118_v23  ;;  %v632_v56 = vadd.f32 %v600_v20, %v530_v46  ;;  %8689 = vst [vmem:[#allocation42_spill] sm:$0xff] %v5295_v49  ;;  %v315_v46 = vmul.f32 %v5133_v22, %v5109_v10  ;;  %v5321_v22 = vld [vmem:[%s5101_s30 + $0x162] sm:$0xff]  ;;  %v5328_v48 = vmul.f32 %v5241_v5, %v5286_v39 }
  0xc1   : > { %8691 = vst [vmem:[#allocation44_spill] sm:$0xff] %v5303_v17  ;;  %8692 = vst [vmem:[#allocation45_spill] sm:$0xff] %v5310_v2  ;;  %v685_v36 = vmul.f32 %v5170_v41, %v5130_v21 }
  0xc2   : > { %v1321_v23 = vadd.f32 %v1289_v59, %v1221_v51  ;;  %v732_v59 = vadd.f32 %v700_v6, %v632_v56  ;;  %v483_v6 = vmul.f32 %v5151_v32, %v5115_v12  ;;  %v5318_v51 = vmul.f32 %v5214_v8, %v5283_v45  ;;  %8693 = vst [vmem:[#allocation46_spill] sm:$0xff] %v5321_v22  ;;  %v3716_v56 = vld [vmem:[%s5101_s30 + $0x1e0] sm:$0xff] }
  0xc3   : > { %v415_v27 = vadd.f32 %v383_v26, %v315_v46  ;;  %8694 = vst [vmem:[#allocation47_spill] sm:$0xff] %v5328_v48  ;;  %v5332_v32 = vmul.f32 %v5269_v63, %v5292_v44  ;;  %v3780_v46 = vld [vmem:[%s5101_s30 + $0x1e2] sm:$0xff] }
  0xc4   : > { %v1421_v20 = vadd.f32 %v1389_v24, %v1321_v23  ;;  %v832_v50 = vadd.f32 %v800_v19, %v732_v59  ;;  %v1002_v24 = vmul.f32 %v5300_v13, %v5156_v35  ;;  %v1102_v19 = vmul.f32 %v5321_v22, %v5162_v37  ;;  %v3748_v23 = vld [vmem:[%s5101_s30 + $0x1e1] sm:$0xff] }
  0xc5   : > { %8695 = vst [vmem:[#allocation48_spill] sm:$0xff] %v5332_v32  ;;  %v515_v26 = vadd.f32 %v483_v6, %v415_v27  ;;  %v5346_v32 = vmul.f32 %v5300_v13, %v5303_v17  ;;  %v1305_v6 = vmul.f32 %v3748_v23, %v5174_v43  ;;  %v5355_v27 = vld [vmem:[%s5101_s30 + $0x1f0] sm:$0xff] }
  0xc6   : > { %v1523_v3 = vadd.f32 %v1491_v28, %v1421_v20  ;;  %v934_v28 = vadd.f32 %v902_v54, %v832_v50  ;;  %v5339_v20 = vmul.f32 %v5289_v30, %v5295_v49  ;;  %v5350_v54 = vmul.f32 %v5321_v22, %v5310_v2  ;;  %8699 = vst [vmem:[#allocation52_spill] sm:$0xff] %v5355_v27  ;;  %v5372_v23 = vld [vmem:[%s5101_s30 + $0x30] sm:$0xff] }
  0xc7   : > { %8697 = vst [vmem:[#allocation50_spill] sm:$0xff] %v5346_v32  ;;  %v1205_v50 = vmul.f32 %v3716_v56, %v5167_v40  ;;  %v617_v41 = vadd.f32 %v585_v4, %v515_v26  ;;  %v785_v32 = vmul.f32 %v5180_v47, %v5138_v25  ;;  %v5368_v56 = vld [vmem:[%s5101_s30 + $0x1f2] sm:$0xff]  ;;  %8702 = vst [vmem:[#allocation55_spill] sm:$0xff] %v5372_v23  ;;  %v5383_v26 = vld [vmem:[%s5101_s30 + $0x202] sm:$0xff] }
  0xc8   : > { %v1623_v59 = vadd.f32 %v1591_v34, %v1523_v3  ;;  %8696 = vst [vmem:[#allocation49_spill] sm:$0xff] %v5339_v20  ;;  %8698 = vst [vmem:[#allocation51_spill] sm:$0xff] %v5350_v54  ;;  %v1034_v34 = vadd.f32 %v1002_v24, %v934_v28  ;;  %v5358_v20 = vld [vmem:[%s5101_s30 + $0x1f1] sm:$0xff]  ;;  %v1405_v54 = vmul.f32 %v3780_v46, %v5187_v52  ;;  %v4010_v28 = vld [vmem:[%s5101_s30 + $0x280] sm:$0xff] }
  0xc9   : > { %8700 = vst [vmem:[#allocation53_spill] sm:$0xff] %v5358_v20  ;;  %v1507_v24 = vmul.f32 %v5355_v27, %v5190_v53  ;;  %8701 = vst [vmem:[#allocation54_spill] sm:$0xff] %v5368_v56  ;;  %v5380_v46 = vld [vmem:[%s5101_s30 + $0x201] sm:$0xff] }
  0xca   : > { %v1723_v3 = vadd.f32 %v1691_v38, %v1623_v59  ;;  %v1134_v48 = vadd.f32 %v1102_v19, %v1034_v34  ;;  %v1607_v38 = vmul.f32 %v5358_v20, %v5195_v57  ;;  %v1707_v19 = vmul.f32 %v5368_v56, %v5201_v61  ;;  %v5377_v59 = vld [vmem:[%s5101_s30 + $0x200] sm:$0xff]  ;;  %8704 = vst [vmem:[#allocation57_spill] sm:$0xff] %v5380_v46  ;;  %v5399_v61 = vld [vmem:[%s5101_s30 + $0x31] sm:$0xff] }
  0xcb   : > { %8703 = vst [vmem:[#allocation56_spill] sm:$0xff] %v5377_v59  ;;  %8705 = vst [vmem:[#allocation58_spill] sm:$0xff] %v5383_v26  ;;  %v717_v34 = vadd.f32 %v685_v36, %v617_v41  ;;  %v887_v20 = vmul.f32 %v5372_v23, %v5148_v31  ;;  %v1809_v27 = vmul.f32 %v5377_v59, %v5204_v62  ;;  %v4042_v56 = vld [vmem:[%s5101_s30 + $0x281] sm:$0xff]  ;;  %v5409_v23 = vld [vmem:[%s5101_s30 + $0x32] sm:$0xff] }
  0xcc   : > { %v1825_v4 = vadd.f32 %v1793_v55, %v1723_v3  ;;  %v1237_v47 = vadd.f32 %v1205_v50, %v1134_v48  ;;  %v5391_v55 = vmul.f32 %v5380_v46, %v5208_v1  ;;  %v5395_v3 = vmul.f32 %v5383_v26, %v5211_v7  ;;  %8707 = vst [vmem:[#allocation60_spill] sm:$0xff] %v5399_v61  ;;  %v4074_v48 = vld [vmem:[%s5101_s30 + $0x282] sm:$0xff] }
  0xcd   : > { %v5403_v41 = vmul.f32 %v4010_v28, %v5221_v15  ;;  %v817_v50 = vadd.f32 %v785_v32, %v717_v34  ;;  %v987_v59 = vmul.f32 %v5399_v61, %v5156_v35  ;;  %8708 = vst [vmem:[#allocation61_spill] sm:$0xff] %v5409_v23  ;;  %v331_v26 = vmul.f32 %v5214_v8, %v5109_v10  ;;  %v5427_v61 = vld [vmem:[%s5101_s30 + $0x290] sm:$0xff] }
  0xce   : > { %8706 = vst [vmem:[#allocation59_spill] sm:$0xff] %v5395_v3  ;;  %v1925_v36 = vadd.f32 %v5262_v58, %v1825_v4  ;;  %v1337_v46 = vadd.f32 %v1305_v6, %v1237_v47  ;;  %v399_v3 = vmul.f32 %v5241_v5, %v5112_v11  ;;  %v499_v58 = vmul.f32 %v5269_v63, %v5115_v12 }
  0xcf   : > { %v5419_v32 = vmul.f32 %v4042_v56, %v5224_v18  ;;  %v919_v4 = vadd.f32 %v887_v20, %v817_v50  ;;  %v1087_v47 = vmul.f32 %v5409_v23, %v5162_v37  ;;  %v5424_v34 = vmul.f32 %v4074_v48, %v5238_v33  ;;  %8709 = vst [vmem:[#allocation62_spill] sm:$0xff] %v5427_v61  ;;  %v5437_v20 = vld [vmem:[%s5101_s30 + $0x291] sm:$0xff] }
  0xd0   : > { %v2025_v28 = vadd.f32 %v5266_v60, %v1925_v36  ;;  %v1437_v6 = vadd.f32 %v1405_v54, %v1337_v46  ;;  %v431_v5 = vadd.f32 %v399_v3, %v331_v26  ;;  %v601_v63 = vmul.f32 %v5289_v30, %v5122_v16  ;;  %8710 = vst [vmem:[#allocation63_spill] sm:$0xff] %v5437_v20  ;;  %v5446_v3 = vld [vmem:[%s5101_s30 + $0x292] sm:$0xff] }
  0xd1   : > { %v5434_v56 = vmul.f32 %v5427_v61, %v5283_v45  ;;  %v1019_v54 = vadd.f32 %v987_v59, %v919_v4  ;;  %v1190_v46 = vmul.f32 %v5218_v14, %v5167_v40  ;;  %v5443_v26 = vmul.f32 %v5437_v20, %v5286_v39  ;;  %8711 = vst [vmem:[#allocation64_spill] sm:$0xff] %v5446_v3  ;;  %v5456_v14 = vld [vmem:[%s5101_s30 + $0x2a0] sm:$0xff] }
  0xd2   : > { %v2128_v60 = vadd.f32 %v5272_v0, %v2025_v28  ;;  %v1539_v36 = vadd.f32 %v1507_v24, %v1437_v6  ;;  %v531_v0 = vadd.f32 %v499_v58, %v431_v5  ;;  %v701_v48 = vmul.f32 %v5300_v13, %v5130_v21  ;;  %8713 = vst [vmem:[#allocation66_spill] sm:$0xff] %v5456_v14  ;;  %v5465_v58 = vld [vmem:[%s5101_s30 + $0x2a1] sm:$0xff] }
  0xd3   : > { %v5453_v59 = vmul.f32 %v5446_v3, %v5292_v44  ;;  %v1119_v24 = vadd.f32 %v1087_v47, %v1019_v54  ;;  %v1290_v28 = vmul.f32 %v5232_v29, %v5174_v43  ;;  %v5462_v5 = vmul.f32 %v5456_v14, %v5295_v49  ;;  %8715 = vst [vmem:[#allocation68_spill] sm:$0xff] %v5465_v58  ;;  %v5475_v54 = vld [vmem:[%s5101_s30 + $0x2a2] sm:$0xff]  ;;  %v5480_v14 = vld [vmem:[%s5101_s30 + $0x170] sm:$0xff] }
  0xd4   : > { %v2228_v50 = vadd.f32 %v5275_v9, %v2128_v60  ;;  %v1639_v4 = vadd.f32 %v1607_v38, %v1539_v36  ;;  %v633_v6 = vadd.f32 %v601_v63, %v531_v0  ;;  %v801_v9 = vmul.f32 %v5321_v22, %v5138_v25  ;;  %8717 = vst [vmem:[#allocation70_spill] sm:$0xff] %v5475_v54  ;;  %v8718_v38 = vld [vmem:[#allocation36_spill] sm:$0xff] }
  0xd5   : > { %8712 = vst [vmem:[#allocation65_spill] sm:$0xff] %v5453_v59  ;;  %8714 = vst [vmem:[#allocation67_spill] sm:$0xff] %v5462_v5  ;;  %v5472_v47 = vmul.f32 %v5465_v58, %v5303_v17  ;;  %v1222_v29 = vadd.f32 %v1190_v46, %v1119_v24  ;;  %v1390_v36 = vmul.f32 %v8718_v38, %v5187_v52  ;;  %v8721_v46 = vld [vmem:[#allocation38_spill] sm:$0xff]  ;;  %v8722_v38 = vld [vmem:[#allocation39_spill] sm:$0xff] }
  0xd6   : > { %v2328_v60 = vadd.f32 %v5280_v42, %v2228_v50  ;;  %8719 = vst [vmem:[#allocation36_spill] sm:$0xff] %v5480_v14  ;;  %v1739_v63 = vadd.f32 %v1707_v19, %v1639_v4  ;;  %v5484_v0 = vmul.f32 %v5475_v54, %v5310_v2  ;;  %v733_v42 = vadd.f32 %v701_v48, %v633_v6  ;;  %v5494_v19 = vld [vmem:[%s5101_s30 + $0x171] sm:$0xff] }
  0xd7   : > { %8716 = vst [vmem:[#allocation69_spill] sm:$0xff] %v5472_v47  ;;  %v903_v50 = vmul.f32 %v5480_v14, %v5148_v31  ;;  %v1322_v3 = vadd.f32 %v1290_v28, %v1222_v29  ;;  %v1492_v24 = vmul.f32 %v8721_v46, %v5190_v53  ;;  %v1592_v20 = vmul.f32 %v8722_v38, %v5195_v57  ;;  %v8724_v54 = vld [vmem:[#allocation31_spill] sm:$0xff]  ;;  %v8725_v48 = vld [vmem:[#allocation40_spill] sm:$0xff] }
  0xd8   : > { %8720 = vst [vmem:[#allocation71_spill] sm:$0xff] %v5484_v0  ;;  %v2430_v58 = vadd.f32 %v5318_v51, %v2328_v60  ;;  %8723 = vst [vmem:[#allocation72_spill] sm:$0xff] %v5494_v19  ;;  %v1841_v4 = vadd.f32 %v1809_v27, %v1739_v63  ;;  %v1692_v6 = vmul.f32 %v8725_v48, %v8724_v54  ;;  %v5499_v2 = vld [vmem:[%s5101_s30 + $0xd0] sm:$0xff] }
  0xd9   : > { %8726 = vst [vmem:[#allocation73_spill] sm:$0xff] %v5499_v2  ;;  %v5502_v0 = vld [vmem:[%s5101_s30 + $0xd1] sm:$0xff]  ;;  %v833_v51 = vadd.f32 %v801_v9, %v733_v42  ;;  %v1003_v28 = vmul.f32 %v5494_v19, %v5156_v35  ;;  %v1422_v61 = vadd.f32 %v1390_v36, %v1322_v3  ;;  %v1794_v47 = vmul.f32 %v5499_v2, %v5204_v62 }
  0xda   : > { %8727 = vst [vmem:[#allocation74_spill] sm:$0xff] %v5502_v0  ;;  %v8728_v60 = vld [vmem:[#allocation47_spill] sm:$0xff]  ;;  %v1894_v27 = vmul.f32 %v5502_v0, %v5208_v1  ;;  %v5512_v63 = vld [vmem:[%s5101_s30 + $0xd2] sm:$0xff]  ;;  %v1941_v38 = vadd.f32 %v5391_v55, %v1841_v4  ;;  %v8733_v0 = vld [vmem:[#allocation26_spill] sm:$0xff] }
  0xdb   : > { %v2530_v29 = vadd.f32 %v8728_v60, %v2430_v58  ;;  %8729 = vst [vmem:[#allocation47_spill] sm:$0xff] %v5512_v63  ;;  %v5515_v48 = vld [vmem:[%s5101_s30 + $0x172] sm:$0xff]  ;;  %v1994_v9 = vmul.f32 %v5512_v63, %v5211_v7  ;;  %v935_v42 = vadd.f32 %v903_v50, %v833_v51  ;;  %v1524_v60 = vadd.f32 %v1492_v24, %v1422_v61  ;;  %v8732_v2 = vld [vmem:[#allocation23_spill] sm:$0xff]  ;;  %v8737_v63 = vld [vmem:[#allocation49_spill] sm:$0xff] }
  0xdc   : > { %8730 = vst [vmem:[#allocation75_spill] sm:$0xff] %v5515_v48  ;;  %v1103_v58 = vmul.f32 %v5515_v48, %v5162_v37  ;;  %v8731_v3 = vld [vmem:[#allocation48_spill] sm:$0xff]  ;;  %v316_v5 = vmul.f32 %v8732_v2, %v5109_v10  ;;  %v384_v46 = vmul.f32 %v8733_v0, %v5112_v11  ;;  %v8734_v1 = vld [vmem:[#allocation59_spill] sm:$0xff]  ;;  %v2097_v0 = vmul.f32 %v5214_v8, %v5221_v15  ;;  %v8743_v8 = vld [vmem:[#allocation54_spill] sm:$0xff] }
  0xdd   : > { %v2630_v36 = vadd.f32 %v8731_v3, %v2530_v29  ;;  %v2041_v62 = vadd.f32 %v8734_v1, %v1941_v38  ;;  %v1035_v59 = vadd.f32 %v1003_v28, %v935_v42  ;;  %v8735_v55 = vld [vmem:[#allocation52_spill] sm:$0xff]  ;;  %v1624_v7 = vadd.f32 %v1592_v20, %v1524_v60  ;;  %v8738_v61 = vld [vmem:[#allocation55_spill] sm:$0xff]  ;;  %v8739_v38 = vld [vmem:[#allocation53_spill] sm:$0xff] }
  0xde   : > { %v1206_v4 = vmul.f32 %v8735_v55, %v5167_v40  ;;  %v8736_v50 = vld [vmem:[#allocation28_spill] sm:$0xff]  ;;  %v416_v29 = vadd.f32 %v384_v46, %v316_v5  ;;  %v586_v24 = vmul.f32 %v8738_v61, %v5122_v16  ;;  %v1306_v28 = vmul.f32 %v8739_v38, %v5174_v43  ;;  %v8740_v42 = vld [vmem:[#allocation50_spill] sm:$0xff] }
  0xdf   : > { %v484_v51 = vmul.f32 %v8736_v50, %v5115_v12  ;;  %v2732_v48 = vadd.f32 %v8737_v63, %v2630_v36  ;;  %v2144_v2 = vadd.f32 %v5403_v41, %v2041_v62  ;;  %v1135_v1 = vadd.f32 %v1103_v58, %v1035_v59  ;;  %v8741_v20 = vld [vmem:[#allocation60_spill] sm:$0xff]  ;;  %v8742_v63 = vld [vmem:[#allocation37_spill] sm:$0xff]  ;;  %v8744_v58 = vld [vmem:[#allocation51_spill] sm:$0xff] }
  0xe0   : > { %v1724_v55 = vadd.f32 %v1692_v6, %v1624_v7  ;;  %v686_v5 = vmul.f32 %v8741_v20, %v5130_v21  ;;  %v2197_v62 = vmul.f32 %v8742_v63, %v5224_v18  ;;  %v1406_v59 = vmul.f32 %v8743_v8, %v5187_v52  ;;  %v8745_v6 = vld [vmem:[#allocation41_spill] sm:$0xff] }
  0xe1   : > { %v2832_v3 = vadd.f32 %v8740_v42, %v2732_v48  ;;  %v516_v50 = vadd.f32 %v484_v51, %v416_v29  ;;  %v2244_v46 = vadd.f32 %v5419_v32, %v2144_v2  ;;  %v1238_v41 = vadd.f32 %v1206_v4, %v1135_v1  ;;  %v8746_v29 = vld [vmem:[#allocation56_spill] sm:$0xff]  ;;  %v5557_v2 = vld [vmem:[%s5101_s30 + $0x40] sm:$0xff] }
  0xe2   : > { %v1826_v60 = vadd.f32 %v1794_v47, %v1724_v55  ;;  %v786_v7 = vmul.f32 %v5409_v23, %v5138_v25  ;;  %v2297_v32 = vmul.f32 %v8745_v6, %v5238_v33  ;;  %v1508_v4 = vmul.f32 %v8746_v29, %v5190_v53  ;;  %8747 = vst [vmem:[#allocation48_spill] sm:$0xff] %v5557_v2  ;;  %v8748_v55 = vld [vmem:[#allocation57_spill] sm:$0xff] }
  0xe3   : > { %v2932_v36 = vadd.f32 %v8744_v58, %v2832_v3  ;;  %v618_v38 = vadd.f32 %v586_v24, %v516_v50  ;;  %v2344_v48 = vadd.f32 %v5424_v34, %v2244_v46  ;;  %v1338_v51 = vadd.f32 %v1306_v28, %v1238_v41  ;;  %v8750_v58 = vld [vmem:[#allocation58_spill] sm:$0xff] }
  0xe4   : > { %v1926_v1 = vadd.f32 %v1894_v27, %v1826_v60  ;;  %v2399_v47 = vmul.f32 %v5289_v30, %v5283_v45  ;;  %v888_v34 = vmul.f32 %v5557_v2, %v5148_v31  ;;  %v2499_v28 = vmul.f32 %v5300_v13, %v5286_v39  ;;  %v5570_v27 = vld [vmem:[%s5101_s30 + $0x41] sm:$0xff] }
  0xe5   : > { %4360 = vmatprep.mubr.msk.f32.mxu0 %vm2972_vm0, %v2932_v36  ;;  %v718_v24 = vadd.f32 %v686_v5, %v618_v38  ;;  %v2446_v42 = vadd.f32 %v5434_v56, %v2344_v48  ;;  %v1438_v3 = vadd.f32 %v1406_v59, %v1338_v51  ;;  %v1608_v50 = vmul.f32 %v8748_v55, %v5195_v57  ;;  %v5582_v60 = vld [vmem:[%s5101_s30 + $0x42] sm:$0xff]  ;;  %v5592_v48 = vld [vmem:[%s5101_s30 + $0x211] sm:$0xff]  ;;  %v8754_v51 = vld [vmem:[#allocation65_spill] sm:$0xff] }
  0xe6   : > { %8749 = vst [vmem:[#allocation23_spill] sm:$0xff] %v5570_v27  ;;  %v2026_v46 = vadd.f32 %v1994_v9, %v1926_v1  ;;  %v2599_v5 = vmul.f32 %v5321_v22, %v5292_v44  ;;  %v988_v41 = vmul.f32 %v5570_v27, %v5156_v35  ;;  %v2701_v8 = vmul.f32 %v5480_v14, %v5295_v49 }
  0xe7   : > { %v818_v63 = vadd.f32 %v786_v7, %v718_v24  ;;  %v2546_v56 = vadd.f32 %v5443_v26, %v2446_v42  ;;  %v1540_v59 = vadd.f32 %v1508_v4, %v1438_v3  ;;  %v1708_v36 = vmul.f32 %v8750_v58, %v8724_v54  ;;  %8751 = vst [vmem:[#allocation26_spill] sm:$0xff] %v5582_v60  ;;  %v5589_v7 = vld [vmem:[%s5101_s30 + $0x210] sm:$0xff]  ;;  %v8756_v3 = vld [vmem:[#allocation33_spill] sm:$0xff]  ;;  %v8758_v58 = vld [vmem:[#allocation34_spill] sm:$0xff] }
  0xe8   : > { %v2129_v9 = vadd.f32 %v2097_v0, %v2026_v46  ;;  %v5586_v38 = vmul.f32 %v5494_v19, %v5303_v17  ;;  %8752 = vst [vmem:[#allocation59_spill] sm:$0xff] %v5589_v7  ;;  %8753 = vst [vmem:[#allocation52_spill] sm:$0xff] %v5592_v48  ;;  %v1088_v26 = vmul.f32 %v5582_v60, %v5162_v37  ;;  %v8755_v24 = vld [vmem:[#allocation32_spill] sm:$0xff]  ;;  %v8760_v60 = vld [vmem:[#allocation67_spill] sm:$0xff] }
  0xe9   : > { %v920_v6 = vadd.f32 %v888_v34, %v818_v63  ;;  %v2646_v4 = vadd.f32 %v8754_v51, %v2546_v56  ;;  %v1640_v1 = vadd.f32 %v1608_v50, %v1540_v59  ;;  %v1810_v42 = vmul.f32 %v5589_v7, %v8755_v24  ;;  %v5602_v46 = vld [vmem:[%s5101_s30 + $0x212] sm:$0xff]  ;;  %v8759_v34 = vld [vmem:[#allocation38_spill] sm:$0xff] }
  0xea   : > { %v1910_v0 = vmul.f32 %v5592_v48, %v8756_v3  ;;  %8757 = vst [vmem:[#allocation28_spill] sm:$0xff] %v5602_v46  ;;  %v2229_v27 = vadd.f32 %v2197_v62, %v2129_v9  ;;  %v2010_v2 = vmul.f32 %v5602_v46, %v8758_v58  ;;  %v1191_v63 = vmul.f32 %v8759_v34, %v5167_v40  ;;  %v8761_v62 = vld [vmem:[#allocation39_spill] sm:$0xff] }
  0xeb   : > { %v1020_v55 = vadd.f32 %v988_v41, %v920_v6  ;;  %v2748_v23 = vadd.f32 %v8760_v60, %v2646_v4  ;;  %v1740_v56 = vadd.f32 %v1708_v36, %v1640_v1  ;;  %v332_v50 = vmul.f32 %v5289_v30, %v5109_v10  ;;  %v8762_v6 = vld [vmem:[#allocation69_spill] sm:$0xff]  ;;  %v8763_v4 = vld [vmem:[#allocation62_spill] sm:$0xff] }
  0xec   : > { %v400_v59 = vmul.f32 %v5300_v13, %v5112_v11  ;;  %v2329_v51 = vadd.f32 %v2297_v32, %v2229_v27  ;;  %v1291_v9 = vmul.f32 %v8761_v62, %v5174_v43  ;;  %v500_v41 = vmul.f32 %v5321_v22, %v5115_v12  ;;  %v8764_v32 = vld [vmem:[#allocation40_spill] sm:$0xff]  ;;  %v8765_v27 = vld [vmem:[#allocation71_spill] sm:$0xff] }
  0xed   : > { %v1120_v48 = vadd.f32 %v1088_v26, %v1020_v55  ;;  %v2848_v46 = vadd.f32 %v8762_v6, %v2748_v23  ;;  %v1842_v34 = vadd.f32 %v1810_v42, %v1740_v56  ;;  %v602_v36 = vmul.f32 %v5480_v14, %v5122_v16  ;;  %v8766_v56 = vld [vmem:[#allocation45_spill] sm:$0xff] }
  0xee   : > { %v432_v7 = vadd.f32 %v400_v59, %v332_v50  ;;  %v2431_v60 = vadd.f32 %v2399_v47, %v2329_v51  ;;  %v2113_v1 = vmul.f32 %v8763_v4, %v5221_v15  ;;  %v1391_v55 = vmul.f32 %v8764_v32, %v5187_v52  ;;  %v8767_v50 = vld [vmem:[#allocation75_spill] sm:$0xff]  ;;  %v8768_v51 = vld [vmem:[#allocation73_spill] sm:$0xff]  ;;  %v8773_v32 = vld [vmem:[#allocation66_spill] sm:$0xff] }
  0xef   : > { %v1223_v13 = vadd.f32 %v1191_v63, %v1120_v48  ;;  %v2948_v26 = vadd.f32 %v8765_v27, %v2848_v46  ;;  %v1942_v62 = vadd.f32 %v1910_v0, %v1842_v34  ;;  %v702_v23 = vmul.f32 %v5494_v19, %v5130_v21  ;;  %v8769_v63 = vld [vmem:[#allocation63_spill] sm:$0xff]  ;;  %v5641_v4 = vld [vmem:[%s5101_s30 + $0x180] sm:$0xff] }
  0xf0   : > { %v532_v22 = vadd.f32 %v500_v41, %v432_v7  ;;  %v2531_v42 = vadd.f32 %v2499_v28, %v2431_v60  ;;  %v2901_v59 = vmul.f32 %v8767_v50, %v8766_v56  ;;  %v1493_v6 = vmul.f32 %v8768_v51, %v5190_v53  ;;  %v8770_v28 = vld [vmem:[#allocation64_spill] sm:$0xff]  ;;  %8772 = vst [vmem:[#allocation49_spill] sm:$0xff] %v5641_v4 }
  0xf1   : > { %v1323_v47 = vadd.f32 %v1291_v9, %v1223_v13  ;;  %4384 = vmatprep.mubr.msk.f32.mxu1 %vm2972_vm0, %v2948_v26  ;;  %v2042_v48 = vadd.f32 %v2010_v2, %v1942_v62  ;;  %v2213_v46 = vmul.f32 %v8769_v63, %v5224_v18  ;;  %v802_v7 = vmul.f32 %v8767_v50, %v5138_v25  ;;  %v8771_v9 = vld [vmem:[#allocation74_spill] sm:$0xff]  ;;  %v8774_v26 = vld [vmem:[#allocation68_spill] sm:$0xff] }
  0xf2   : > { %v634_v0 = vadd.f32 %v602_v36, %v532_v22  ;;  %v2631_v41 = vadd.f32 %v2599_v5, %v2531_v42  ;;  %v2313_v34 = vmul.f32 %v8770_v28, %v5238_v33  ;;  %v1593_v60 = vmul.f32 %v8771_v9, %v5195_v57  ;;  %v8775_v42 = vld [vmem:[#allocation47_spill] sm:$0xff]  ;;  %v5652_v63 = vld [vmem:[%s5101_s30 + $0x181] sm:$0xff] }
  0xf3   : > { %v1423_v13 = vadd.f32 %v1391_v55, %v1323_v47  ;;  %v2145_v2 = vadd.f32 %v2113_v1, %v2042_v48  ;;  %v2415_v27 = vmul.f32 %v8773_v32, %v5283_v45  ;;  %v904_v5 = vmul.f32 %v5641_v4, %v5148_v31  ;;  %8776 = vst [vmem:[#allocation55_spill] sm:$0xff] %v5652_v63  ;;  %v8777_v48 = vld [vmem:[#allocation70_spill] sm:$0xff] }
  0xf4   : > { %v734_v22 = vadd.f32 %v702_v23, %v634_v0  ;;  %v2733_v36 = vadd.f32 %v2701_v8, %v2631_v41  ;;  %v2515_v62 = vmul.f32 %v8774_v26, %v5286_v39  ;;  %v1693_v47 = vmul.f32 %v8775_v42, %v8724_v54  ;;  %v5657_v0 = vld [vmem:[%s5101_s30 + $0x2b0] sm:$0xff]  ;;  %v5660_v28 = vld [vmem:[%s5101_s30 + $0xe0] sm:$0xff] }
  0xf5   : > { %v1525_v55 = vadd.f32 %v1493_v6, %v1423_v13  ;;  %v2245_v1 = vadd.f32 %v2213_v46, %v2145_v2  ;;  %v2615_v23 = vmul.f32 %v8777_v48, %v5292_v44  ;;  %8778 = vst [vmem:[#allocation53_spill] sm:$0xff] %v5657_v0  ;;  %8779 = vst [vmem:[#allocation50_spill] sm:$0xff] %v5660_v28  ;;  %v5668_v42 = vld [vmem:[%s5101_s30 + $0x2b1] sm:$0xff]  ;;  %v5673_v9 = vld [vmem:[%s5101_s30 + $0x182] sm:$0xff] }
  0xf6   : > { %v834_v8 = vadd.f32 %v802_v7, %v734_v22  ;;  %v1004_v41 = vmul.f32 %v5652_v63, %v5156_v35  ;;  %v2833_v6 = vadd.f32 %v5586_v38, %v2733_v36  ;;  %v2717_v13 = vmul.f32 %v5657_v0, %v5295_v49  ;;  %8780 = vst [vmem:[#allocation60_spill] sm:$0xff] %v5668_v42  ;;  %v5678_v22 = vld [vmem:[%s5101_s30 + $0x2b2] sm:$0xff]  ;;  %v5681_v26 = vld [vmem:[%s5101_s30 + $0xe1] sm:$0xff] }
  0xf7   : > { %v1625_v46 = vadd.f32 %v1593_v60, %v1525_v55  ;;  %v1795_v2 = vmul.f32 %v5660_v28, %v8755_v24  ;;  %v2345_v48 = vadd.f32 %v2313_v34, %v2245_v1  ;;  %v2817_v7 = vmul.f32 %v5668_v42, %v5303_v17  ;;  %8781 = vst [vmem:[#allocation37_spill] sm:$0xff] %v5678_v22  ;;  %v5690_v1 = vld [vmem:[%s5101_s30 + $0xe2] sm:$0xff] }
  0xf8   : > { %8782 = vst [vmem:[#allocation54_spill] sm:$0xff] %v5681_v26  ;;  %v936_v38 = vadd.f32 %v904_v5, %v834_v8  ;;  %v1104_v36 = vmul.f32 %v5673_v9, %v5162_v37  ;;  %v2933_v0 = vadd.f32 %v2901_v59, %v2833_v6  ;;  %v2917_v60 = vmul.f32 %v5678_v22, %v8766_v56  ;;  %v8788_v22 = vld [vmem:[#allocation46_spill] sm:$0xff] }
  0xf9   : > { %v1725_v55 = vadd.f32 %v1693_v47, %v1625_v46  ;;  %v1895_v28 = vmul.f32 %v5681_v26, %v8756_v3  ;;  %v2447_v34 = vadd.f32 %v2415_v27, %v2345_v48  ;;  %8783 = vst [vmem:[#allocation51_spill] sm:$0xff] %v5690_v1  ;;  %v1207_v51 = vmul.f32 %v8746_v29, %v5167_v40  ;;  %v8784_v27 = vld [vmem:[#allocation61_spill] sm:$0xff] }
  0xfa   : > { %v1036_v42 = vadd.f32 %v1004_v41, %v936_v38  ;;  %v317_v5 = vmul.f32 %v8738_v61, %v5109_v10  ;;  %4361 = vmatmul.mubr.msk.f32.vlgmr.msra.gmra.mrb[0].mxu0 %vm2972_vm0, %v2933_v0  ;;  %v1995_v8 = vmul.f32 %v5690_v1, %v8758_v58  ;;  %v385_v47 = vmul.f32 %v8741_v20, %v5112_v11  ;;  %v8785_v46 = vld [vmem:[#allocation57_spill] sm:$0xff]  ;;  %v8786_v0 = vld [vmem:[#allocation43_spill] sm:$0xff]  ;;  %v8787_v1 = vld [vmem:[#allocation48_spill] sm:$0xff] }
  0xfb   : > { %v1827_v59 = vadd.f32 %v1795_v2, %v1725_v55  ;;  %v485_v48 = vmul.f32 %v8784_v27, %v5115_v12  ;;  %v2547_v6 = vadd.f32 %v2515_v62, %v2447_v34  ;;  %v2098_v41 = vmul.f32 %v5289_v30, %v5221_v15  ;;  %v8789_v34 = vld [vmem:[#allocation58_spill] sm:$0xff] }
  0xfc   : > { %v1136_v29 = vadd.f32 %v1104_v36, %v1036_v42  ;;  %v1307_v61 = vmul.f32 %v8785_v46, %v5174_v43  ;;  %v2198_v2 = vmul.f32 %v8786_v0, %v5224_v18  ;;  %v417_v55 = vadd.f32 %v385_v47, %v317_v5 }
  0xfd   : > { %v1927_v38 = vadd.f32 %v1895_v28, %v1827_v59  ;;  %v587_v26 = vmul.f32 %v8787_v1, %v5122_v16  ;;  %v2647_v20 = vadd.f32 %v2615_v23, %v2547_v6  ;;  %v2298_v27 = vmul.f32 %v8788_v22, %v5238_v33  ;;  %v8790_v59 = vld [vmem:[#allocation23_spill] sm:$0xff] }
  0xfe   : > { %v1239_v62 = vadd.f32 %v1207_v51, %v1136_v29  ;;  %v1407_v30 = vmul.f32 %v8789_v34, %v5187_v52  ;;  %v2400_v28 = vmul.f32 %v5480_v14, %v5283_v45  ;;  %v517_v36 = vadd.f32 %v485_v48, %v417_v55  ;;  %v8791_v22 = vld [vmem:[#allocation59_spill] sm:$0xff] }
  0xff   : > { %v2027_v42 = vadd.f32 %v1995_v8, %v1927_v38  ;;  %v687_v5 = vmul.f32 %v8790_v59, %v5130_v21  ;;  %v2749_v47 = vadd.f32 %v2717_v13, %v2647_v20  ;;  %v2500_v23 = vmul.f32 %v5494_v19, %v5286_v39  ;;  %v8792_v38 = vld [vmem:[#allocation26_spill] sm:$0xff] }
 0x100   : > { %v1339_v6 = vadd.f32 %v1307_v61, %v1239_v62  ;;  %v1509_v51 = vmul.f32 %v8791_v22, %v5190_v53  ;;  %v2600_v8 = vmul.f32 %v8767_v50, %v5292_v44  ;;  %v619_v46 = vadd.f32 %v587_v26, %v517_v36  ;;  %v8793_v61 = vld [vmem:[#allocation52_spill] sm:$0xff] }
 0x101   : > { %v2130_v29 = vadd.f32 %v2098_v41, %v2027_v42  ;;  %v787_v48 = vmul.f32 %v8792_v38, %v5138_v25  ;;  %v2849_v0 = vadd.f32 %v2817_v7, %v2749_v47  ;;  %v2702_v13 = vmul.f32 %v5641_v4, %v5295_v49  ;;  %v5732_v41 = vld [vmem:[%s5101_s30 + $0x50] sm:$0xff] }
 0x102   : > { %v1439_v55 = vadd.f32 %v1407_v30, %v1339_v6  ;;  %v1609_v20 = vmul.f32 %v8793_v61, %v5195_v57  ;;  %8794 = vst [vmem:[#allocation41_spill] sm:$0xff] %v5732_v41  ;;  %v2802_v26 = vmul.f32 %v5652_v63, %v5303_v17  ;;  %v719_v34 = vadd.f32 %v687_v5, %v619_v46  ;;  %v8795_v47 = vld [vmem:[#allocation28_spill] sm:$0xff]  ;;  %v5743_v61 = vld [vmem:[%s5101_s30 + $0x220] sm:$0xff] }
 0x103   : > { %v2230_v62 = vadd.f32 %v2198_v2, %v2130_v29  ;;  %v889_v7 = vmul.f32 %v5732_v41, %v5148_v31  ;;  %v2949_v42 = vadd.f32 %v2917_v60, %v2849_v0  ;;  %v2902_v36 = vmul.f32 %v5673_v9, %v8766_v56  ;;  %8796 = vst [vmem:[#allocation56_spill] sm:$0xff] %v5743_v61  ;;  %v5746_v22 = vld [vmem:[%s5101_s30 + $0x51] sm:$0xff]  ;;  %v5751_v5 = vld [vmem:[%s5101_s30 + $0x221] sm:$0xff] }
 0x104   : > { %v1541_v30 = vadd.f32 %v1509_v51, %v1439_v55  ;;  %v1709_v6 = vmul.f32 %v8795_v47, %v8724_v54  ;;  %8797 = vst [vmem:[#allocation65_spill] sm:$0xff] %v5746_v22  ;;  %v1811_v29 = vmul.f32 %v5743_v61, %v8755_v24  ;;  %8798 = vst [vmem:[#allocation38_spill] sm:$0xff] %v5751_v5  ;;  %v5754_v46 = vld [vmem:[%s5101_s30 + $0x222] sm:$0xff]  ;;  %v5759_v51 = vld [vmem:[%s5101_s30 + $0x52] sm:$0xff] }
 0x105   : > { %v2330_v2 = vadd.f32 %v2298_v27, %v2230_v62  ;;  %8799 = vst [vmem:[#allocation67_spill] sm:$0xff] %v5754_v46  ;;  %v819_v60 = vadd.f32 %v787_v48, %v719_v34  ;;  %v989_v0 = vmul.f32 %v5746_v22, %v5156_v35  ;;  %8800 = vst [vmem:[#allocation39_spill] sm:$0xff] %v5759_v51  ;;  %4385 = vmatmul.mubr.msk.f32.vlgmr.msra.gmra.mrb[0].mxu1 %vm2972_vm0, %v2949_v42  ;;  %v8801_v42 = vld [vmem:[#allocation73_spill] sm:$0xff] }
 0x106   : > { %v1641_v55 = vadd.f32 %v1609_v20, %v1541_v30  ;;  %v1911_v47 = vmul.f32 %v5751_v5, %v8756_v3  ;;  %v2011_v27 = vmul.f32 %v5754_v46, %v8758_v58  ;;  %v1089_v62 = vmul.f32 %v5759_v51, %v5162_v37 }
 0x107   : > { %v2432_v61 = vadd.f32 %v2400_v28, %v2330_v2  ;;  %v921_v41 = vadd.f32 %v889_v7, %v819_v60  ;;  %v333_v48 = vmul.f32 %v5480_v14, %v5109_v10  ;;  %v401_v34 = vmul.f32 %v5494_v19, %v5112_v11  ;;  %v8802_v60 = vld [vmem:[#allocation68_spill] sm:$0xff]  ;;  %v8804_v19 = vld [vmem:[#allocation74_spill] sm:$0xff] }
 0x108   : > { %v1741_v22 = vadd.f32 %v1709_v6, %v1641_v55  ;;  %v2114_v20 = vmul.f32 %v8773_v32, %v5221_v15  ;;  %v1192_v30 = vmul.f32 %v8801_v42, %v5167_v40  ;;  %v501_v46 = vmul.f32 %v8767_v50, %v5115_v12  ;;  %v8803_v55 = vld [vmem:[#allocation70_spill] sm:$0xff] }
 0x109   : > { %v2532_v5 = vadd.f32 %v2500_v23, %v2432_v61  ;;  %v1021_v51 = vadd.f32 %v989_v0, %v921_v41  ;;  %v433_v28 = vadd.f32 %v401_v34, %v333_v48  ;;  %v603_v7 = vmul.f32 %v5641_v4, %v5122_v16  ;;  %v8806_v0 = vld [vmem:[#allocation60_spill] sm:$0xff]  ;;  %v8807_v34 = vld [vmem:[#allocation47_spill] sm:$0xff] }
 0x10a   : > { %v1843_v2 = vadd.f32 %v1811_v29, %v1741_v22  ;;  %v2214_v6 = vmul.f32 %v8802_v60, %v5224_v18  ;;  %v2314_v32 = vmul.f32 %v8803_v55, %v5238_v33  ;;  %v1292_v42 = vmul.f32 %v8804_v19, %v5174_v43  ;;  %v8805_v22 = vld [vmem:[#allocation53_spill] sm:$0xff]  ;;  %v8810_v55 = vld [vmem:[#allocation50_spill] sm:$0xff] }
 0x10b   : > { %v2632_v40 = vadd.f32 %v2600_v8, %v2532_v5  ;;  %v1121_v14 = vadd.f32 %v1089_v62, %v1021_v51  ;;  %v533_v23 = vadd.f32 %v501_v46, %v433_v28  ;;  %v703_v61 = vmul.f32 %v5652_v63, %v5130_v21  ;;  %v5795_v8 = vld [vmem:[%s5101_s30 + $0x2c0] sm:$0xff] }
 0x10c   : > { %v1943_v41 = vadd.f32 %v1911_v47, %v1843_v2  ;;  %v2416_v29 = vmul.f32 %v8805_v22, %v5283_v45  ;;  %v2516_v48 = vmul.f32 %v8806_v0, %v5286_v39  ;;  %v1392_v60 = vmul.f32 %v8807_v34, %v5187_v52  ;;  %8808 = vst [vmem:[#allocation69_spill] sm:$0xff] %v5795_v8  ;;  %v8809_v62 = vld [vmem:[#allocation37_spill] sm:$0xff]  ;;  %v5829_v0 = vld [vmem:[%s5101_s30 + $0x191] sm:$0xff] }
 0x10d   : > { %v2734_v19 = vadd.f32 %v2702_v13, %v2632_v40  ;;  %v1224_v5 = vadd.f32 %v1192_v30, %v1121_v14  ;;  %v635_v46 = vadd.f32 %v603_v7, %v533_v23  ;;  %v803_v51 = vmul.f32 %v5673_v9, %v5138_v25  ;;  %v5808_v13 = vld [vmem:[%s5101_s30 + $0x190] sm:$0xff]  ;;  %v5811_v30 = vld [vmem:[%s5101_s30 + $0x2c1] sm:$0xff] }
 0x10e   : > { %v2043_v47 = vadd.f32 %v2011_v27, %v1943_v41  ;;  %v2616_v28 = vmul.f32 %v8809_v62, %v5292_v44  ;;  %v5803_v2 = vmul.f32 %v5795_v8, %v5295_v49  ;;  %v1494_v40 = vmul.f32 %v8810_v55, %v5190_v53  ;;  %8811 = vst [vmem:[#allocation62_spill] sm:$0xff] %v5811_v30  ;;  %v5814_v7 = vld [vmem:[%s5101_s30 + $0x2c2] sm:$0xff]  ;;  %v8816_v55 = vld [vmem:[#allocation51_spill] sm:$0xff] }
 0x10f   : > { %v2834_v14 = vadd.f32 %v2802_v26, %v2734_v19  ;;  %8812 = vst [vmem:[#allocation40_spill] sm:$0xff] %v5814_v7  ;;  %v1324_v27 = vadd.f32 %v1292_v42, %v1224_v5  ;;  %v735_v23 = vadd.f32 %v703_v61, %v635_v46  ;;  %v905_v41 = vmul.f32 %v5808_v13, %v5148_v31  ;;  %v8813_v26 = vld [vmem:[#allocation54_spill] sm:$0xff]  ;;  %v5832_v5 = vld [vmem:[%s5101_s30 + $0xf0] sm:$0xff] }
 0x110   : > { %v2146_v34 = vadd.f32 %v2114_v20, %v2043_v47  ;;  %v5820_v8 = vmul.f32 %v5811_v30, %v5303_v17  ;;  %v5824_v62 = vmul.f32 %v5814_v7, %v8766_v56  ;;  %v1594_v19 = vmul.f32 %v8813_v26, %v5195_v57  ;;  %8814 = vst [vmem:[#allocation71_spill] sm:$0xff] %v5832_v5  ;;  %v5835_v46 = vld [vmem:[%s5101_s30 + $0xf1] sm:$0xff] }
 0x111   : > { %v2934_v42 = vadd.f32 %v2902_v36, %v2834_v14  ;;  %v1424_v61 = vadd.f32 %v1392_v60, %v1324_v27  ;;  %8815 = vst [vmem:[#allocation75_spill] sm:$0xff] %v5835_v46  ;;  %v835_v20 = vadd.f32 %v803_v51, %v735_v23  ;;  %v1005_v47 = vmul.f32 %v5829_v0, %v5156_v35  ;;  %v5846_v36 = vld [vmem:[%s5101_s30 + $0xf2] sm:$0xff] }
 0x112   : > { %v2246_v30 = vadd.f32 %v2214_v6, %v2146_v34  ;;  %v1694_v7 = vmul.f32 %v8816_v55, %v8724_v54  ;;  %v1796_v22 = vmul.f32 %v5832_v5, %v8755_v24  ;;  %v1896_v26 = vmul.f32 %v5835_v46, %v8756_v3  ;;  %8817 = vst [vmem:[#allocation63_spill] sm:$0xff] %v5846_v36  ;;  %v5849_v60 = vld [vmem:[%s5101_s30 + $0x192] sm:$0xff] }
 0x113   : > { %8818 = vst [vmem:[#allocation64_spill] sm:$0xff] %v5849_v60  ;;  %4363 = vmatprep.mubr.msk.f32.mxu0 %vm2972_vm0, %v2934_v42  ;;  %v1526_v51 = vadd.f32 %v1494_v40, %v1424_v61  ;;  %v1996_v14 = vmul.f32 %v5846_v36, %v8758_v58  ;;  %v937_v6 = vadd.f32 %v905_v41, %v835_v20  ;;  %v8819_v40 = vld [vmem:[#allocation36_spill] sm:$0xff]  ;;  %v8820_v36 = vld [vmem:[#allocation25_spill] sm:$0xff]  ;;  %v8821_v41 = vld [vmem:[#allocation59_spill] sm:$0xff] }
 0x114   : > { %v1105_v27 = vmul.f32 %v5849_v60, %v5162_v37  ;;  %v2346_v23 = vadd.f32 %v2314_v32, %v2246_v30  ;;  %v318_v34 = vmul.f32 %v8787_v1, %v5109_v10  ;;  %v386_v46 = vmul.f32 %v8790_v59, %v5112_v11  ;;  %v8822_v32 = vld [vmem:[#allocation72_spill] sm:$0xff]  ;;  %v8823_v1 = vld [vmem:[#allocation41_spill] sm:$0xff] }
 0x115   : > { %v486_v5 = vmul.f32 %v8792_v38, %v5115_v12  ;;  %v1626_v55 = vadd.f32 %v1594_v19, %v1526_v51  ;;  %v2099_v42 = vmul.f32 %v8819_v40, %v5221_v15  ;;  %v1037_v61 = vadd.f32 %v1005_v47, %v937_v6  ;;  %v8824_v51 = vld [vmem:[#allocation52_spill] sm:$0xff] }
 0x116   : > { %v1208_v20 = vmul.f32 %v8821_v41, %v8820_v36  ;;  %v2448_v58 = vadd.f32 %v2416_v29, %v2346_v23  ;;  %v2199_v30 = vmul.f32 %v8822_v32, %v5224_v18  ;;  %v418_v37 = vadd.f32 %v386_v46, %v318_v34  ;;  %v8825_v23 = vld [vmem:[#allocation65_spill] sm:$0xff]  ;;  %v8828_v32 = vld [vmem:[#allocation56_spill] sm:$0xff] }
 0x117   : > { %v588_v10 = vmul.f32 %v8823_v1, %v5122_v16  ;;  %v1726_v59 = vadd.f32 %v1694_v7, %v1626_v55  ;;  %v2299_v38 = vmul.f32 %v8767_v50, %v5238_v33  ;;  %v1137_v19 = vadd.f32 %v1105_v27, %v1037_v61  ;;  %v8826_v50 = vld [vmem:[#allocation28_spill] sm:$0xff] }
 0x118   : > { %v1308_v40 = vmul.f32 %v8824_v51, %v5174_v43  ;;  %v2548_v47 = vadd.f32 %v2516_v48, %v2448_v58  ;;  %v2401_v29 = vmul.f32 %v5641_v4, %v5283_v45  ;;  %v518_v6 = vadd.f32 %v486_v5, %v418_v37  ;;  %v8827_v37 = vld [vmem:[#allocation39_spill] sm:$0xff] }
 0x119   : > { %v688_v46 = vmul.f32 %v8825_v23, %v5130_v21  ;;  %v1828_v34 = vadd.f32 %v1796_v22, %v1726_v59  ;;  %v2501_v55 = vmul.f32 %v5652_v63, %v5286_v39  ;;  %v1240_v7 = vadd.f32 %v1208_v20, %v1137_v19  ;;  %v5895_v59 = vld [vmem:[%s5101_s30 + $0x60] sm:$0xff]  ;;  %v8839_v23 = vld [vmem:[#allocation24_spill] sm:$0xff] }
 0x11a   : > { %v1408_v27 = vmul.f32 %v8826_v50, %v5187_v52  ;;  %v2648_v61 = vadd.f32 %v2616_v28, %v2548_v47  ;;  %v5884_v58 = vmul.f32 %v5673_v9, %v5292_v44  ;;  %v620_v48 = vadd.f32 %v588_v10, %v518_v6  ;;  %8829 = vst [vmem:[#allocation66_spill] sm:$0xff] %v5895_v59 }
 0x11b   : > { %v788_v5 = vmul.f32 %v8827_v37, %v5138_v25  ;;  %v1928_v41 = vadd.f32 %v1896_v26, %v1828_v34  ;;  %v5890_v22 = vmul.f32 %v5808_v13, %v5295_v49  ;;  %v1340_v20 = vadd.f32 %v1308_v40, %v1240_v7  ;;  %v8831_v34 = vld [vmem:[#allocation38_spill] sm:$0xff] }
 0x11c   : > { %v1510_v28 = vmul.f32 %v8828_v32, %v5190_v53  ;;  %v2750_v19 = vadd.f32 %v5803_v2, %v2648_v61  ;;  %v5900_v10 = vmul.f32 %v5829_v0, %v5303_v17  ;;  %v720_v51 = vadd.f32 %v688_v46, %v620_v48  ;;  %v5911_v2 = vld [vmem:[%s5101_s30 + $0x61] sm:$0xff]  ;;  %v8833_v46 = vld [vmem:[#allocation67_spill] sm:$0xff] }
 0x11d   : > { %v890_v26 = vmul.f32 %v5895_v59, %v5148_v31  ;;  %v2028_v47 = vadd.f32 %v1996_v14, %v1928_v41  ;;  %v5906_v40 = vmul.f32 %v5849_v60, %v8766_v56  ;;  %v1440_v6 = vadd.f32 %v1408_v27, %v1340_v20  ;;  %8832 = vst [vmem:[#allocation57_spill] sm:$0xff] %v5911_v2  ;;  %v5917_v48 = vld [vmem:[%s5101_s30 + $0x230] sm:$0xff] }
 0x11e   : > { %v1610_v7 = vmul.f32 %v8831_v34, %v5195_v57  ;;  %v2850_v50 = vadd.f32 %v5820_v8, %v2750_v19  ;;  %v1710_v61 = vmul.f32 %v8833_v46, %v8724_v54  ;;  %8834 = vst [vmem:[#allocation43_spill] sm:$0xff] %v5917_v48  ;;  %v5920_v59 = vld [vmem:[%s5101_s30 + $0x231] sm:$0xff]  ;;  %v820_v14 = vadd.f32 %v788_v5, %v720_v51  ;;  %v5932_v19 = vld [vmem:[%s5101_s30 + $0x62] sm:$0xff] }
 0x11f   : > { %8830 = vst [vmem:[#allocation61_spill] sm:$0xff] %v5906_v40  ;;  %8835 = vst [vmem:[#allocation48_spill] sm:$0xff] %v5920_v59  ;;  %v990_v41 = vmul.f32 %v5911_v2, %v5156_v35  ;;  %v2131_v37 = vadd.f32 %v2099_v42, %v2028_v47  ;;  %v1542_v27 = vadd.f32 %v1510_v28, %v1440_v6  ;;  %v5929_v8 = vld [vmem:[%s5101_s30 + $0x232] sm:$0xff]  ;;  %v8838_v40 = vld [vmem:[#allocation34_spill] sm:$0xff] }
 0x120   : > { %v1812_v20 = vmul.f32 %v5917_v48, %v8755_v24  ;;  %v1912_v34 = vmul.f32 %v5920_v59, %v8756_v3  ;;  %8836 = vst [vmem:[#allocation46_spill] sm:$0xff] %v5929_v8  ;;  %8837 = vst [vmem:[#allocation58_spill] sm:$0xff] %v5932_v19  ;;  %v2950_v46 = vadd.f32 %v5824_v62, %v2850_v50  ;;  %v8840_v6 = vld [vmem:[#allocation19_spill] sm:$0xff]  ;;  %v8841_v2 = vld [vmem:[#allocation53_spill] sm:$0xff] }
 0x121   : > { %v2012_v5 = vmul.f32 %v5929_v8, %v8838_v40  ;;  %v922_v51 = vadd.f32 %v890_v26, %v820_v14  ;;  %v1090_v42 = vmul.f32 %v5932_v19, %v8839_v23  ;;  %v2231_v28 = vadd.f32 %v2199_v30, %v2131_v37  ;;  %v8842_v8 = vld [vmem:[#allocation50_spill] sm:$0xff]  ;;  %v8843_v19 = vld [vmem:[#allocation60_spill] sm:$0xff] }
 0x122   : > { %v1642_v47 = vadd.f32 %v1610_v7, %v1542_v27  ;;  %v334_v48 = vmul.f32 %v5641_v4, %v8840_v6  ;;  %v402_v59 = vmul.f32 %v5652_v63, %v5112_v11  ;;  %4387 = vmatprep.mubr.msk.f32.mxu1 %vm2972_vm0, %v2950_v46  ;;  %v2115_v62 = vmul.f32 %v8841_v2, %v5221_v15  ;;  %v8844_v63 = vld [vmem:[#allocation37_spill] sm:$0xff] }
 0x123   : > { %v1022_v50 = vadd.f32 %v990_v41, %v922_v51  ;;  %v1193_v26 = vmul.f32 %v8842_v8, %v8820_v36  ;;  %v502_v14 = vmul.f32 %v5673_v9, %v5115_v12  ;;  %v2331_v30 = vadd.f32 %v2299_v38, %v2231_v28  ;;  %v8845_v51 = vld [vmem:[#allocation54_spill] sm:$0xff] }
 0x124   : > { %v1742_v37 = vadd.f32 %v1710_v61, %v1642_v47  ;;  %v434_v7 = vadd.f32 %v402_v59, %v334_v48  ;;  %v604_v27 = vmul.f32 %v5808_v13, %v5122_v16  ;;  %v2215_v46 = vmul.f32 %v8843_v19, %v5224_v18  ;;  %v8846_v61 = vld [vmem:[#allocation69_spill] sm:$0xff]  ;;  %v8847_v28 = vld [vmem:[#allocation62_spill] sm:$0xff] }
 0x125   : > { %v2315_v2 = vmul.f32 %v8844_v63, %v5238_v33  ;;  %v1122_v41 = vadd.f32 %v1090_v42, %v1022_v50  ;;  %v1293_v8 = vmul.f32 %v8845_v51, %v5174_v43  ;;  %v2433_v4 = vadd.f32 %v2401_v29, %v2331_v30  ;;  %v8848_v42 = vld [vmem:[#allocation51_spill] sm:$0xff] }
 0x126   : > { %v1844_v15 = vadd.f32 %v1812_v20, %v1742_v37  ;;  %v534_v38 = vadd.f32 %v502_v14, %v434_v7  ;;  %v704_v59 = vmul.f32 %v5829_v0, %v5130_v21  ;;  %v2417_v48 = vmul.f32 %v8846_v61, %v5283_v45  ;;  %v5967_v20 = vld [vmem:[%s5101_s30 + $0x2d0] sm:$0xff] }
 0x127   : > { %v2517_v19 = vmul.f32 %v8847_v28, %v5286_v39  ;;  %v1225_v63 = vadd.f32 %v1193_v26, %v1122_v41  ;;  %v1393_v47 = vmul.f32 %v8848_v42, %v5187_v52  ;;  %v2533_v50 = vadd.f32 %v2501_v55, %v2433_v4  ;;  %8849 = vst [vmem:[#allocation23_spill] sm:$0xff] %v5967_v20  ;;  %v8850_v37 = vld [vmem:[#allocation40_spill] sm:$0xff]  ;;  %v8851_v41 = vld [vmem:[#allocation71_spill] sm:$0xff]  ;;  %v6009_v28 = vld [vmem:[%s5101_s30 + $0x101] sm:$0xff] }
 0x128   : > { %v1944_v29 = vadd.f32 %v1912_v34, %v1844_v15  ;;  %v636_v14 = vadd.f32 %v604_v27, %v534_v38  ;;  %v804_v30 = vmul.f32 %v5849_v60, %v5138_v25  ;;  %v2617_v7 = vmul.f32 %v8850_v37, %v5292_v44  ;;  %v5980_v15 = vld [vmem:[%s5101_s30 + $0x1a0] sm:$0xff]  ;;  %v5984_v27 = vld [vmem:[%s5101_s30 + $0x2d1] sm:$0xff]  ;;  %8857 = vst [vmem:[#allocation74_spill] sm:$0xff] %v6009_v28 }
 0x129   : > { %v5975_v51 = vmul.f32 %v5967_v20, %v5295_v49  ;;  %v1325_v26 = vadd.f32 %v1293_v8, %v1225_v63  ;;  %v1495_v4 = vmul.f32 %v8851_v41, %v5190_v53  ;;  %v2633_v55 = vadd.f32 %v5884_v58, %v2533_v50  ;;  %8852 = vst [vmem:[#allocation26_spill] sm:$0xff] %v5984_v27  ;;  %v5987_v38 = vld [vmem:[%s5101_s30 + $0x2d2] sm:$0xff]  ;;  %v8855_v58 = vld [vmem:[#allocation75_spill] sm:$0xff]  ;;  %v6002_v50 = vld [vmem:[%s5101_s30 + $0x1a1] sm:$0xff] }
 0x12a   : > { %v2044_v34 = vadd.f32 %v2012_v5, %v1944_v29  ;;  %8853 = vst [vmem:[#allocation73_spill] sm:$0xff] %v5987_v38  ;;  %v736_v42 = vadd.f32 %v704_v59, %v636_v14  ;;  %v906_v20 = vmul.f32 %v5980_v15, %v5148_v31  ;;  %v5993_v8 = vmul.f32 %v5984_v27, %v5303_v17  ;;  %v6006_v14 = vld [vmem:[%s5101_s30 + $0x100] sm:$0xff] }
 0x12b   : > { %v5997_v63 = vmul.f32 %v5987_v38, %v8766_v56  ;;  %v1425_v37 = vadd.f32 %v1393_v47, %v1325_v26  ;;  %v1595_v5 = vmul.f32 %v8855_v58, %v5195_v57  ;;  %v2735_v59 = vadd.f32 %v5890_v22, %v2633_v55  ;;  %8856 = vst [vmem:[#allocation70_spill] sm:$0xff] %v6006_v14  ;;  %v8858_v47 = vld [vmem:[#allocation63_spill] sm:$0xff] }
 0x12c   : > { %v2147_v29 = vadd.f32 %v2115_v62, %v2044_v34  ;;  %v836_v61 = vadd.f32 %v804_v30, %v736_v42  ;;  %v1006_v27 = vmul.f32 %v6002_v50, %v5156_v35  ;;  %v1695_v26 = vmul.f32 %v8858_v47, %v8724_v54  ;;  %v6020_v62 = vld [vmem:[%s5101_s30 + $0x1a2] sm:$0xff] }
 0x12d   : > { %8854 = vst [vmem:[#allocation68_spill] sm:$0xff] %v5997_v63  ;;  %v1527_v38 = vadd.f32 %v1495_v4, %v1425_v37  ;;  %v1797_v58 = vmul.f32 %v6006_v14, %v8755_v24  ;;  %v1897_v22 = vmul.f32 %v6009_v28, %v8756_v3  ;;  %8859 = vst [vmem:[#allocation47_spill] sm:$0xff] %v6020_v62  ;;  %v8860_v14 = vld [vmem:[#allocation65_spill] sm:$0xff]  ;;  %v6033_v24 = vld [vmem:[%s5101_s30 + $0x102] sm:$0xff] }
 0x12e   : > { %v2835_v55 = vadd.f32 %v5900_v10, %v2735_v59  ;;  %v2247_v34 = vadd.f32 %v2215_v46, %v2147_v29  ;;  %v938_v30 = vadd.f32 %v906_v20, %v836_v61  ;;  %v1106_v42 = vmul.f32 %v6020_v62, %v8839_v23  ;;  %v8861_v28 = vld [vmem:[#allocation61_spill] sm:$0xff]  ;;  %8862 = vst [vmem:[#allocation36_spill] sm:$0xff] %v6033_v24  ;;  %v8863_v46 = vld [vmem:[#allocation39_spill] sm:$0xff] }
 0x12f   : > { %v1627_v41 = vadd.f32 %v1595_v5, %v1527_v38  ;;  %v1209_v37 = vmul.f32 %v8828_v32, %v8820_v36  ;;  %v319_v4 = vmul.f32 %v8823_v1, %v8840_v6  ;;  %v387_v47 = vmul.f32 %v8860_v14, %v5112_v11  ;;  %v8864_v5 = vld [vmem:[#allocation66_spill] sm:$0xff]  ;;  %v8865_v29 = vld [vmem:[#allocation35_spill] sm:$0xff] }
 0x130   : > { %v2935_v3 = vadd.f32 %v8861_v28, %v2835_v55  ;;  %v2347_v63 = vadd.f32 %v2315_v2, %v2247_v34  ;;  %v1038_v10 = vadd.f32 %v1006_v27, %v938_v30  ;;  %v487_v61 = vmul.f32 %v8863_v46, %v5115_v12  ;;  %v8866_v28 = vld [vmem:[#allocation49_spill] sm:$0xff]  ;;  %v8867_v27 = vld [vmem:[#allocation38_spill] sm:$0xff] }
 0x131   : > { %v1727_v20 = vadd.f32 %v1695_v26, %v1627_v41  ;;  %v1997_v38 = vmul.f32 %v6033_v24, %v8838_v40  ;;  %v419_v32 = vadd.f32 %v387_v47, %v319_v4  ;;  %v589_v1 = vmul.f32 %v8864_v5, %v5122_v16  ;;  %v8868_v41 = vld [vmem:[#allocation55_spill] sm:$0xff]  ;;  %v8869_v47 = vld [vmem:[#allocation57_spill] sm:$0xff] }
 0x132   : > { %4364 = vmatmul.mubr.msk.f32.gmra.mrb[2].mxu0 %vm2972_vm0, %v2935_v3  ;;  %v2449_v59 = vadd.f32 %v2417_v48, %v2347_v63  ;;  %v2100_v2 = vmul.f32 %v8866_v28, %v8865_v29  ;;  %v1138_v14 = vadd.f32 %v1106_v42, %v1038_v10  ;;  %v1309_v55 = vmul.f32 %v8867_v27, %v5174_v43  ;;  %v8870_v63 = vld [vmem:[#allocation67_spill] sm:$0xff]  ;;  %v8871_v28 = vld [vmem:[#allocation58_spill] sm:$0xff] }
 0x133   : > { %v1829_v34 = vadd.f32 %v1797_v58, %v1727_v20  ;;  %v2200_v26 = vmul.f32 %v8868_v41, %v5224_v18  ;;  %v519_v30 = vadd.f32 %v487_v61, %v419_v32  ;;  %v689_v4 = vmul.f32 %v8869_v47, %v5130_v21 }
 0x134   : > { %v2549_v46 = vadd.f32 %v2517_v19, %v2449_v59  ;;  %v2300_v3 = vmul.f32 %v5673_v9, %v5238_v33  ;;  %v1241_v48 = vadd.f32 %v1209_v37, %v1138_v14  ;;  %v1409_v42 = vmul.f32 %v8870_v63, %v5187_v52  ;;  %v8872_v9 = vld [vmem:[#allocation43_spill] sm:$0xff] }
 0x135   : > { %v1929_v10 = vadd.f32 %v1897_v22, %v1829_v34  ;;  %v2402_v58 = vmul.f32 %v5808_v13, %v5283_v45  ;;  %v621_v20 = vadd.f32 %v589_v1, %v519_v30  ;;  %v789_v61 = vmul.f32 %v8871_v28, %v5138_v25  ;;  %v6063_v14 = vld [vmem:[%s5101_s30 + $0x70] sm:$0xff] }
 0x136   : > { %v2649_v32 = vadd.f32 %v2617_v7, %v2549_v46  ;;  %v2502_v19 = vmul.f32 %v5829_v0, %v5286_v39  ;;  %v1341_v59 = vadd.f32 %v1309_v55, %v1241_v48  ;;  %v1511_v37 = vmul.f32 %v8872_v9, %v5190_v53  ;;  %8873 = vst [vmem:[#allocation59_spill] sm:$0xff] %v6063_v14  ;;  %v8874_v30 = vld [vmem:[#allocation48_spill] sm:$0xff]  ;;  %v8883_v9 = vld [vmem:[#allocation71_spill] sm:$0xff] }
 0x137   : > { %v2029_v27 = vadd.f32 %v1997_v38, %v1929_v10  ;;  %v2602_v22 = vmul.f32 %v5849_v60, %v5292_v44  ;;  %v721_v34 = vadd.f32 %v689_v4, %v621_v20  ;;  %v891_v1 = vmul.f32 %v6063_v14, %v5148_v31  ;;  %v6075_v38 = vld [vmem:[%s5101_s30 + $0x71] sm:$0xff] }
 0x138   : > { %v2751_v7 = vadd.f32 %v5975_v51, %v2649_v32  ;;  %v2704_v55 = vmul.f32 %v5980_v15, %v5295_v49  ;;  %v1441_v41 = vadd.f32 %v1409_v42, %v1341_v59  ;;  %v1611_v46 = vmul.f32 %v8874_v30, %v5195_v57  ;;  %8875 = vst [vmem:[#allocation72_spill] sm:$0xff] %v6075_v38  ;;  %v8876_v32 = vld [vmem:[#allocation46_spill] sm:$0xff]  ;;  %v8881_v14 = vld [vmem:[#allocation68_spill] sm:$0xff] }
 0x139   : > { %v2132_v48 = vadd.f32 %v2100_v2, %v2029_v27  ;;  %v6079_v4 = vmul.f32 %v6002_v50, %v5303_v17  ;;  %v821_v63 = vadd.f32 %v789_v61, %v721_v34  ;;  %v991_v10 = vmul.f32 %v6075_v38, %v5156_v35  ;;  %v6091_v2 = vld [vmem:[%s5101_s30 + $0x240] sm:$0xff]  ;;  %v6094_v27 = vld [vmem:[%s5101_s30 + $0x72] sm:$0xff] }
 0x13a   : > { %v2851_v51 = vadd.f32 %v5993_v8, %v2751_v7  ;;  %v6086_v42 = vmul.f32 %v6020_v62, %v8766_v56  ;;  %v1543_v20 = vadd.f32 %v1511_v37, %v1441_v41  ;;  %v1711_v59 = vmul.f32 %v8876_v32, %v8724_v54  ;;  %8877 = vst [vmem:[#allocation41_spill] sm:$0xff] %v6091_v2  ;;  %v8879_v61 = vld [vmem:[#allocation32_spill] sm:$0xff]  ;;  %v6099_v38 = vld [vmem:[%s5101_s30 + $0x241] sm:$0xff] }
 0x13b   : > { %8878 = vst [vmem:[#allocation52_spill] sm:$0xff] %v6094_v27  ;;  %v2232_v30 = vadd.f32 %v2200_v26, %v2132_v48  ;;  %v1813_v34 = vmul.f32 %v6091_v2, %v8879_v61  ;;  %8880 = vst [vmem:[#allocation28_spill] sm:$0xff] %v6099_v38  ;;  %v923_v8 = vadd.f32 %v891_v1, %v821_v63  ;;  %v8882_v41 = vld [vmem:[#allocation33_spill] sm:$0xff]  ;;  %v6109_v26 = vld [vmem:[%s5101_s30 + $0x242] sm:$0xff] }
 0x13c   : > { %v1091_v7 = vmul.f32 %v6094_v27, %v8839_v23  ;;  %v2951_v28 = vadd.f32 %v8881_v14, %v2851_v51  ;;  %v1643_v37 = vadd.f32 %v1611_v46, %v1543_v20  ;;  %v1913_v32 = vmul.f32 %v6099_v38, %v8882_v41  ;;  %8884 = vst [vmem:[#allocation56_spill] sm:$0xff] %v6109_v26  ;;  %v8885_v63 = vld [vmem:[#allocation75_spill] sm:$0xff]  ;;  %v8886_v38 = vld [vmem:[#allocation69_spill] sm:$0xff] }
 0x13d   : > { %v1194_v47 = vmul.f32 %v8883_v9, %v8820_v36  ;;  %v2332_v5 = vadd.f32 %v2300_v3, %v2232_v30  ;;  %v1023_v48 = vadd.f32 %v991_v10, %v923_v8  ;;  %v335_v2 = vmul.f32 %v5808_v13, %v8840_v6 }
 0x13e   : > { %v403_v1 = vmul.f32 %v5829_v0, %v5112_v11  ;;  %4388 = vmatmul.mubr.msk.f32.gmra.mrb[2].mxu1 %vm2972_vm0, %v2951_v28  ;;  %v1743_v14 = vadd.f32 %v1711_v59, %v1643_v37  ;;  %v2013_v46 = vmul.f32 %v6109_v26, %v8838_v40  ;;  %v1294_v51 = vmul.f32 %v8885_v63, %v5174_v43  ;;  %v8887_v59 = vld [vmem:[#allocation62_spill] sm:$0xff]  ;;  %v8888_v26 = vld [vmem:[#allocation63_spill] sm:$0xff] }
 0x13f   : > { %v503_v3 = vmul.f32 %v5849_v60, %v5115_v12  ;;  %v2434_v9 = vadd.f32 %v2402_v58, %v2332_v5  ;;  %v1123_v30 = vadd.f32 %v1091_v7, %v1023_v48  ;;  %v605_v20 = vmul.f32 %v5980_v15, %v5122_v16  ;;  %v8891_v48 = vld [vmem:[#allocation70_spill] sm:$0xff] }
 0x140   : > { %v435_v10 = vadd.f32 %v403_v1, %v335_v2  ;;  %v1845_v8 = vadd.f32 %v1813_v34, %v1743_v14  ;;  %v2116_v28 = vmul.f32 %v8886_v38, %v8865_v29  ;;  %v2216_v37 = vmul.f32 %v8887_v59, %v5224_v18  ;;  %v8889_v2 = vld [vmem:[#allocation40_spill] sm:$0xff]  ;;  %v8890_v38 = vld [vmem:[#allocation23_spill] sm:$0xff] }
 0x141   : > { %v1394_v27 = vmul.f32 %v8888_v26, %v5187_v52  ;;  %v2534_v63 = vadd.f32 %v2502_v19, %v2434_v9  ;;  %v1226_v43 = vadd.f32 %v1194_v47, %v1123_v30  ;;  %v705_v5 = vmul.f32 %v6002_v50, %v5130_v21  ;;  %v8892_v9 = vld [vmem:[#allocation26_spill] sm:$0xff]  ;;  %v8893_v30 = vld [vmem:[#allocation73_spill] sm:$0xff] }
 0x142   : > { %v535_v60 = vadd.f32 %v503_v3, %v435_v10  ;;  %v1945_v58 = vadd.f32 %v1913_v32, %v1845_v8  ;;  %v2316_v34 = vmul.f32 %v8889_v2, %v5238_v33  ;;  %v2418_v7 = vmul.f32 %v8890_v38, %v5283_v45  ;;  %v8894_v8 = vld [vmem:[#allocation74_spill] sm:$0xff]  ;;  %v6147_v2 = vld [vmem:[%s5101_s30 + $0x1b0] sm:$0xff] }
 0x143   : > { %v1496_v1 = vmul.f32 %v8891_v48, %v5190_v53  ;;  %v2634_v26 = vadd.f32 %v2602_v22, %v2534_v63  ;;  %v1326_v19 = vadd.f32 %v1294_v51, %v1226_v43  ;;  %v805_v47 = vmul.f32 %v6020_v62, %v5138_v25  ;;  %v6153_v22 = vld [vmem:[%s5101_s30 + $0x2e1] sm:$0xff] }
 0x144   : > { %v637_v14 = vadd.f32 %v605_v20, %v535_v60  ;;  %v2045_v3 = vadd.f32 %v2013_v46, %v1945_v58  ;;  %v2518_v32 = vmul.f32 %v8892_v9, %v5286_v39  ;;  %v2618_v10 = vmul.f32 %v8893_v30, %v5292_v44  ;;  %v6150_v60 = vld [vmem:[%s5101_s30 + $0x2e0] sm:$0xff]  ;;  %8896 = vst [vmem:[#allocation53_spill] sm:$0xff] %v6153_v22 }
 0x145   : > { %v1596_v59 = vmul.f32 %v8894_v8, %v5195_v57  ;;  %v2736_v43 = vadd.f32 %v2704_v55, %v2634_v26  ;;  %8895 = vst [vmem:[#allocation24_spill] sm:$0xff] %v6150_v60  ;;  %v1426_v46 = vadd.f32 %v1394_v27, %v1326_v19  ;;  %v907_v20 = vmul.f32 %v6147_v2, %v5148_v31  ;;  %v6166_v26 = vld [vmem:[%s5101_s30 + $0x1b1] sm:$0xff] }
 0x146   : > { %v737_v51 = vadd.f32 %v705_v5, %v637_v14  ;;  %v2148_v63 = vadd.f32 %v2116_v28, %v2045_v3  ;;  %v2720_v58 = vmul.f32 %v6150_v60, %v5295_v49  ;;  %v6161_v30 = vmul.f32 %v6153_v22, %v5303_v17  ;;  %v6170_v5 = vld [vmem:[%s5101_s30 + $0x2e2] sm:$0xff]  ;;  %v6173_v28 = vld [vmem:[%s5101_s30 + $0x110] sm:$0xff] }
 0x147   : > { %v1696_v55 = vmul.f32 %v6033_v24, %v8724_v54  ;;  %v2836_v27 = vadd.f32 %v6079_v4, %v2736_v43  ;;  %8897 = vst [vmem:[#allocation50_spill] sm:$0xff] %v6170_v5  ;;  %v1528_v19 = vadd.f32 %v1496_v1, %v1426_v46  ;;  %8898 = vst [vmem:[#allocation60_spill] sm:$0xff] %v6173_v28  ;;  %v6176_v14 = vld [vmem:[%s5101_s30 + $0x111] sm:$0xff] }
 0x148   : > { %8899 = vst [vmem:[#allocation37_spill] sm:$0xff] %v6176_v14  ;;  %v837_v3 = vadd.f32 %v805_v47, %v737_v51  ;;  %v1007_v22 = vmul.f32 %v6166_v26, %v5156_v35  ;;  %v2248_v60 = vadd.f32 %v2216_v37, %v2148_v63  ;;  %v6182_v24 = vmul.f32 %v6170_v5, %v8766_v56  ;;  %v6189_v1 = vld [vmem:[%s5101_s30 + $0x1b2] sm:$0xff] }
 0x149   : > { %v1798_v8 = vmul.f32 %v6173_v28, %v8879_v61  ;;  %v1898_v4 = vmul.f32 %v6176_v14, %v8882_v41  ;;  %v2936_v43 = vadd.f32 %v6086_v42, %v2836_v27  ;;  %v1628_v46 = vadd.f32 %v1596_v59, %v1528_v19  ;;  %v6193_v47 = vld [vmem:[%s5101_s30 + $0x112] sm:$0xff]  ;;  %v8901_v28 = vld [vmem:[#allocation66_spill] sm:$0xff]  ;;  %v8902_v14 = vld [vmem:[#allocation57_spill] sm:$0xff] }
 0x14a   : > { %8900 = vst [vmem:[#allocation54_spill] sm:$0xff] %v6193_v47  ;;  %v939_v51 = vadd.f32 %v907_v20, %v837_v3  ;;  %v1107_v37 = vmul.f32 %v6189_v1, %v8839_v23  ;;  %v2348_v63 = vadd.f32 %v2316_v34, %v2248_v60  ;;  %v1998_v5 = vmul.f32 %v6193_v47, %v8838_v40  ;;  %v8903_v27 = vld [vmem:[#allocation43_spill] sm:$0xff]  ;;  %v8904_v19 = vld [vmem:[#allocation58_spill] sm:$0xff] }
 0x14b   : > { %v320_v9 = vmul.f32 %v8901_v28, %v8840_v6  ;;  %v388_v38 = vmul.f32 %v8902_v14, %v5112_v11  ;;  %4366 = vmatprep.mubr.msk.f32.mxu0 %vm2972_vm0, %v2936_v43  ;;  %v1728_v42 = vadd.f32 %v1696_v55, %v1628_v46  ;;  %v1210_v20 = vmul.f32 %v8903_v27, %v8820_v36  ;;  %v8905_v28 = vld [vmem:[#allocation59_spill] sm:$0xff]  ;;  %v8907_v43 = vld [vmem:[#allocation48_spill] sm:$0xff] }
 0x14c   : > { %v1039_v59 = vadd.f32 %v1007_v22, %v939_v51  ;;  %v488_v3 = vmul.f32 %v8904_v19, %v5115_v12  ;;  %v2450_v34 = vadd.f32 %v2418_v7, %v2348_v63  ;;  %v2101_v60 = vmul.f32 %v5808_v13, %v8865_v29  ;;  %v8906_v22 = vld [vmem:[#allocation27_spill] sm:$0xff]  ;;  %v8908_v27 = vld [vmem:[#allocation64_spill] sm:$0xff] }
 0x14d   : > { %v420_v47 = vadd.f32 %v388_v38, %v320_v9  ;;  %v590_v48 = vmul.f32 %v8905_v28, %v5122_v16  ;;  %v1830_v6 = vadd.f32 %v1798_v8, %v1728_v42  ;;  %v2201_v14 = vmul.f32 %v5829_v0, %v5224_v18  ;;  %v8909_v13 = vld [vmem:[#allocation72_spill] sm:$0xff]  ;;  %v8910_v0 = vld [vmem:[#allocation46_spill] sm:$0xff] }
 0x14e   : > { %v1139_v55 = vadd.f32 %v1107_v37, %v1039_v59  ;;  %v1310_v46 = vmul.f32 %v8907_v43, %v8906_v22  ;;  %v2550_v51 = vadd.f32 %v2518_v32, %v2450_v34  ;;  %v2301_v7 = vmul.f32 %v8908_v27, %v5238_v33  ;;  %v8911_v34 = vld [vmem:[#allocation52_spill] sm:$0xff]  ;;  %v6233_v43 = vld [vmem:[%s5101_s30 + $0x80] sm:$0xff] }
 0x14f   : > { %v520_v63 = vadd.f32 %v488_v3, %v420_v47  ;;  %v690_v38 = vmul.f32 %v8909_v13, %v5130_v21  ;;  %v1930_v9 = vadd.f32 %v1898_v4, %v1830_v6  ;;  %v2403_v8 = vmul.f32 %v5980_v15, %v5283_v45  ;;  %8913 = vst [vmem:[#allocation51_spill] sm:$0xff] %v6233_v43 }
 0x150   : > { %v1242_v42 = vadd.f32 %v1210_v20, %v1139_v55  ;;  %v1410_v37 = vmul.f32 %v8910_v0, %v5187_v52  ;;  %v2650_v59 = vadd.f32 %v2618_v10, %v2550_v51  ;;  %v2503_v32 = vmul.f32 %v6002_v50, %v5286_v39  ;;  %v8912_v20 = vld [vmem:[#allocation41_spill] sm:$0xff] }
 0x151   : > { %v622_v19 = vadd.f32 %v590_v48, %v520_v63  ;;  %v790_v47 = vmul.f32 %v8911_v34, %v5138_v25  ;;  %v2030_v3 = vadd.f32 %v1998_v5, %v1930_v9  ;;  %v2603_v6 = vmul.f32 %v6020_v62, %v5292_v44  ;;  %v8914_v9 = vld [vmem:[#allocation28_spill] sm:$0xff] }
 0x152   : > { %v1342_v4 = vadd.f32 %v1310_v46, %v1242_v42  ;;  %v1512_v55 = vmul.f32 %v8912_v20, %v5190_v53  ;;  %v2752_v10 = vadd.f32 %v2720_v58, %v2650_v59  ;;  %v2705_v51 = vmul.f32 %v6147_v2, %v5295_v49  ;;  %v6246_v58 = vld [vmem:[%s5101_s30 + $0x81] sm:$0xff]  ;;  %v6254_v59 = vld [vmem:[%s5101_s30 + $0x250] sm:$0xff] }
 0x153   : > { %v722_v27 = vadd.f32 %v690_v38, %v622_v19  ;;  %v892_v48 = vmul.f32 %v6233_v43, %v5148_v31  ;;  %v2133_v5 = vadd.f32 %v2101_v60, %v2030_v3  ;;  %v6241_v63 = vmul.f32 %v6166_v26, %v5303_v17  ;;  %8915 = vst [vmem:[#allocation65_spill] sm:$0xff] %v6246_v58  ;;  %v6263_v20 = vld [vmem:[%s5101_s30 + $0x251] sm:$0xff] }
 0x154   : > { %v1442_v46 = vadd.f32 %v1410_v37, %v1342_v4  ;;  %v1612_v42 = vmul.f32 %v8914_v9, %v5195_v57  ;;  %v2852_v0 = vadd.f32 %v6161_v30, %v2752_v10  ;;  %v6251_v38 = vmul.f32 %v6189_v1, %v8766_v56  ;;  %8916 = vst [vmem:[#allocation61_spill] sm:$0xff] %v6254_v59  ;;  %v8917_v4 = vld [vmem:[#allocation56_spill] sm:$0xff]  ;;  %v6266_v30 = vld [vmem:[%s5101_s30 + $0x82] sm:$0xff] }
 0x155   : > { %v822_v60 = vadd.f32 %v790_v47, %v722_v27  ;;  %v992_v19 = vmul.f32 %v6246_v58, %v5156_v35  ;;  %v2233_v3 = vadd.f32 %v2201_v14, %v2133_v5  ;;  %v1712_v43 = vmul.f32 %v8917_v4, %v8724_v54  ;;  %8918 = vst [vmem:[#allocation39_spill] sm:$0xff] %v6263_v20  ;;  %v6272_v27 = vld [vmem:[%s5101_s30 + $0x252] sm:$0xff] }
 0x156   : > { %v1544_v37 = vadd.f32 %v1512_v55, %v1442_v46  ;;  %v1814_v9 = vmul.f32 %v6254_v59, %v8879_v61  ;;  %8919 = vst [vmem:[#allocation49_spill] sm:$0xff] %v6266_v30  ;;  %v2952_v10 = vadd.f32 %v6182_v24, %v2852_v0  ;;  %v1914_v47 = vmul.f32 %v6263_v20, %v8882_v41  ;;  %v8921_v59 = vld [vmem:[#allocation19_spill] sm:$0xff]  ;;  %v8922_v0 = vld [vmem:[#allocation70_spill] sm:$0xff] }
 0x157   : > { %8920 = vst [vmem:[#allocation38_spill] sm:$0xff] %v6272_v27  ;;  %v924_v58 = vadd.f32 %v892_v48, %v822_v60  ;;  %v1092_v14 = vmul.f32 %v6266_v30, %v8839_v23  ;;  %v2333_v55 = vadd.f32 %v2301_v7, %v2233_v3  ;;  %v2014_v46 = vmul.f32 %v6272_v27, %v8838_v40  ;;  %v8923_v3 = vld [vmem:[#allocation23_spill] sm:$0xff]  ;;  %v8924_v27 = vld [vmem:[#allocation26_spill] sm:$0xff] }
 0x158   : > { %v1644_v5 = vadd.f32 %v1612_v42, %v1544_v37  ;;  %v336_v4 = vmul.f32 %v5980_v15, %v8921_v59  ;;  %4390 = vmatprep.mubr.msk.f32.mxu1 %vm2972_vm0, %v2952_v10  ;;  %v1195_v20 = vmul.f32 %v8922_v0, %v8820_v36  ;;  %v404_v48 = vmul.f32 %v6002_v50, %v5112_v11 }
 0x159   : > { %v1024_v24 = vadd.f32 %v992_v19, %v924_v58  ;;  %v504_v60 = vmul.f32 %v6020_v62, %v5115_v12  ;;  %v2435_v7 = vadd.f32 %v2403_v8, %v2333_v55  ;;  %v2117_v37 = vmul.f32 %v8923_v3, %v8865_v29  ;;  %v8925_v58 = vld [vmem:[#allocation74_spill] sm:$0xff]  ;;  %v8926_v8 = vld [vmem:[#allocation73_spill] sm:$0xff]  ;;  %v8927_v55 = vld [vmem:[#allocation24_spill] sm:$0xff] }
 0x15a   : > { %v1744_v42 = vadd.f32 %v1712_v43, %v1644_v5  ;;  %v2217_v30 = vmul.f32 %v8924_v27, %v5224_v18  ;;  %v1295_v19 = vmul.f32 %v8925_v58, %v8906_v22  ;;  %v436_v10 = vadd.f32 %v404_v48, %v336_v4  ;;  %v8928_v27 = vld [vmem:[#allocation36_spill] sm:$0xff] }
 0x15b   : > { %v1124_v34 = vadd.f32 %v1092_v14, %v1024_v24  ;;  %v606_v0 = vmul.f32 %v6147_v2, %v5122_v16  ;;  %v2535_v36 = vadd.f32 %v2503_v32, %v2435_v7  ;;  %v2317_v43 = vmul.f32 %v8926_v8, %v5238_v33  ;;  %v8929_v32 = vld [vmem:[#allocation53_spill] sm:$0xff]  ;;  %v8930_v7 = vld [vmem:[#allocation50_spill] sm:$0xff]  ;;  %v6310_v8 = vld [vmem:[%s5101_s30 + $0x2f0] sm:$0xff] }
 0x15c   : > { %v1846_v62 = vadd.f32 %v1814_v9, %v1744_v42  ;;  %v2419_v5 = vmul.f32 %v8927_v55, %v5283_v45  ;;  %v1395_v14 = vmul.f32 %v8928_v27, %v5187_v52  ;;  %v536_v24 = vadd.f32 %v504_v60, %v436_v10  ;;  %8931 = vst [vmem:[#allocation55_spill] sm:$0xff] %v6310_v8  ;;  %v8933_v60 = vld [vmem:[#allocation60_spill] sm:$0xff]  ;;  %v6345_v55 = vld [vmem:[%s5101_s30 + $0x120] sm:$0xff] }
 0x15d   : > { %v1227_v3 = vadd.f32 %v1195_v20, %v1124_v34  ;;  %v706_v4 = vmul.f32 %v6166_v26, %v5130_v21  ;;  %v2635_v48 = vadd.f32 %v2603_v6, %v2535_v36  ;;  %v2519_v9 = vmul.f32 %v8929_v32, %v5286_v39  ;;  %v6313_v34 = vld [vmem:[%s5101_s30 + $0x2f1] sm:$0xff]  ;;  %8938 = vst [vmem:[#allocation71_spill] sm:$0xff] %v6345_v55 }
 0x15e   : > { %v1946_v58 = vadd.f32 %v1914_v47, %v1846_v62  ;;  %v6307_v42 = vmul.f32 %v8930_v7, %v5292_v44  ;;  %8932 = vst [vmem:[#allocation67_spill] sm:$0xff] %v6313_v34  ;;  %v1497_v10 = vmul.f32 %v8933_v60, %v5190_v53  ;;  %v638_v27 = vadd.f32 %v606_v0, %v536_v24  ;;  %v6331_v0 = vld [vmem:[%s5101_s30 + $0x2f2] sm:$0xff]  ;;  %v8935_v24 = vld [vmem:[#allocation37_spill] sm:$0xff] }
 0x15f   : > { %v1327_v20 = vadd.f32 %v1295_v19, %v1227_v3  ;;  %v806_v36 = vmul.f32 %v6189_v1, %v5138_v25  ;;  %v2737_v62 = vadd.f32 %v2705_v51, %v2635_v48  ;;  %v6321_v47 = vmul.f32 %v6310_v8, %v5295_v49  ;;  %v6328_v19 = vld [vmem:[%s5101_s30 + $0x1c0] sm:$0xff]  ;;  %8934 = vst [vmem:[#allocation68_spill] sm:$0xff] %v6331_v0 }
 0x160   : > { %v2046_v6 = vadd.f32 %v2014_v46, %v1946_v58  ;;  %v6325_v7 = vmul.f32 %v6313_v34, %v5303_v17  ;;  %v1597_v60 = vmul.f32 %v8935_v24, %v5195_v57  ;;  %v738_v51 = vadd.f32 %v706_v4, %v638_v27  ;;  %v8937_v8 = vld [vmem:[#allocation54_spill] sm:$0xff] }
 0x161   : > { %v1427_v3 = vadd.f32 %v1395_v14, %v1327_v20  ;;  %v908_v46 = vmul.f32 %v6328_v19, %v5148_v31  ;;  %v2837_v48 = vadd.f32 %v6241_v63, %v2737_v62  ;;  %v6340_v34 = vmul.f32 %v6331_v0, %v8766_v56  ;;  %v6348_v14 = vld [vmem:[%s5101_s30 + $0x1c1] sm:$0xff] }
 0x162   : > { %v2149_v58 = vadd.f32 %v2117_v37, %v2046_v6  ;;  %v1697_v32 = vmul.f32 %v8937_v8, %v8724_v54  ;;  %v1799_v4 = vmul.f32 %v6345_v55, %v8879_v61  ;;  %v6353_v27 = vld [vmem:[%s5101_s30 + $0x121] sm:$0xff]  ;;  %v838_v37 = vadd.f32 %v806_v36, %v738_v51 }
 0x163   : > { %8936 = vst [vmem:[#allocation33_spill] sm:$0xff] %v6340_v34  ;;  %v1529_v20 = vadd.f32 %v1497_v10, %v1427_v3  ;;  %8939 = vst [vmem:[#allocation75_spill] sm:$0xff] %v6353_v27  ;;  %v6356_v63 = vld [vmem:[%s5101_s30 + $0x122] sm:$0xff]  ;;  %v1008_v62 = vmul.f32 %v6348_v14, %v5156_v35  ;;  %v2937_v6 = vadd.f32 %v6251_v38, %v2837_v48  ;;  %v8941_v48 = vld [vmem:[#allocation52_spill] sm:$0xff] }
 0x164   : > { %8940 = vst [vmem:[#allocation69_spill] sm:$0xff] %v6356_v63  ;;  %v2249_v0 = vadd.f32 %v2217_v30, %v2149_v58  ;;  %v1899_v8 = vmul.f32 %v6353_v27, %v8882_v41  ;;  %v1999_v10 = vmul.f32 %v6356_v63, %v8838_v40  ;;  %v6366_v3 = vld [vmem:[%s5101_s30 + $0x1c2] sm:$0xff]  ;;  %v940_v24 = vadd.f32 %v908_v46, %v838_v37  ;;  %v8942_v37 = vld [vmem:[#allocation25_spill] sm:$0xff] }
 0x165   : > { %v1629_v55 = vadd.f32 %v1597_v60, %v1529_v20  ;;  %v1108_v34 = vmul.f32 %v6366_v3, %v8839_v23  ;;  %v321_v36 = vmul.f32 %v8905_v28, %v8921_v59  ;;  %4367 = vmatmul.mubr.msk.f32.gmra.mrb[4].mxu0 %vm2972_vm0, %v2937_v6  ;;  %v2102_v30 = vmul.f32 %v5980_v15, %v8865_v29  ;;  %v8943_v63 = vld [vmem:[#allocation41_spill] sm:$0xff]  ;;  %v8945_v6 = vld [vmem:[#allocation51_spill] sm:$0xff] }
 0x166   : > { %v2349_v38 = vadd.f32 %v2317_v43, %v2249_v0  ;;  %v389_v51 = vmul.f32 %v8909_v13, %v5112_v11  ;;  %v489_v58 = vmul.f32 %v8941_v48, %v5115_v12  ;;  %v2202_v46 = vmul.f32 %v6002_v50, %v5224_v18  ;;  %v8944_v43 = vld [vmem:[#allocation47_spill] sm:$0xff]  ;;  %v8946_v50 = vld [vmem:[#allocation28_spill] sm:$0xff] }
 0x167   : > { %v1729_v60 = vadd.f32 %v1697_v32, %v1629_v55  ;;  %v1040_v20 = vadd.f32 %v1008_v62, %v940_v24  ;;  %v1211_v28 = vmul.f32 %v8943_v63, %v8942_v37  ;;  %v2302_v0 = vmul.f32 %v8944_v43, %v5238_v33  ;;  %v8949_v43 = vld [vmem:[#allocation49_spill] sm:$0xff] }
 0x168   : > { %v2451_v27 = vadd.f32 %v2419_v5, %v2349_v38  ;;  %v421_v15 = vadd.f32 %v389_v51, %v321_v36  ;;  %v591_v13 = vmul.f32 %v8945_v6, %v5122_v16  ;;  %v2404_v55 = vmul.f32 %v6147_v2, %v5283_v45  ;;  %v8947_v38 = vld [vmem:[#allocation65_spill] sm:$0xff] }
 0x169   : > { %v1831_v29 = vadd.f32 %v1799_v4, %v1729_v60  ;;  %v1140_v32 = vadd.f32 %v1108_v34, %v1040_v20  ;;  %v1311_v24 = vmul.f32 %v8946_v50, %v8906_v22  ;;  %v2504_v5 = vmul.f32 %v6166_v26, %v5286_v39  ;;  %v8948_v34 = vld [vmem:[#allocation56_spill] sm:$0xff]  ;;  %v8950_v6 = vld [vmem:[#allocation61_spill] sm:$0xff] }
 0x16a   : > { %v2551_v62 = vadd.f32 %v2519_v9, %v2451_v27  ;;  %v521_v63 = vadd.f32 %v489_v58, %v421_v15  ;;  %v691_v36 = vmul.f32 %v8947_v38, %v5130_v21  ;;  %v6397_v4 = vmul.f32 %v6189_v1, %v5292_v44  ;;  %v3609_v20 = vld [vmem:[%s5101_s30 + $0x90] sm:$0xff] }
 0x16b   : > { %v1931_v51 = vadd.f32 %v1899_v8, %v1831_v29  ;;  %v1243_v48 = vadd.f32 %v1211_v28, %v1140_v32  ;;  %v1411_v60 = vmul.f32 %v8948_v34, %v5187_v52  ;;  %v6405_v27 = vmul.f32 %v6328_v19, %v5295_v49  ;;  %v3641_v32 = vld [vmem:[%s5101_s30 + $0x91] sm:$0xff] }
 0x16c   : > { %v2651_v9 = vadd.f32 %v6307_v42, %v2551_v62  ;;  %v623_v58 = vadd.f32 %v591_v13, %v521_v63  ;;  %v791_v29 = vmul.f32 %v8949_v43, %v5138_v25  ;;  %v6411_v28 = vmul.f32 %v6348_v14, %v5303_v17  ;;  %v6427_v43 = vld [vmem:[%s5101_s30 + $0x260] sm:$0xff] }
 0x16d   : > { %v2031_v8 = vadd.f32 %v1999_v10, %v1931_v51  ;;  %v1343_v15 = vadd.f32 %v1311_v24, %v1243_v48  ;;  %v1513_v42 = vmul.f32 %v8950_v6, %v5190_v53  ;;  %v6419_v13 = vmul.f32 %v6366_v3, %v8766_v56  ;;  %v8952_v51 = vld [vmem:[#allocation39_spill] sm:$0xff]  ;;  %v8953_v24 = vld [vmem:[#allocation38_spill] sm:$0xff]  ;;  %8954 = vst [vmem:[#allocation63_spill] sm:$0xff] %v6427_v43  ;;  %v3673_v6 = vld [vmem:[%s5101_s30 + $0x92] sm:$0xff] }
 0x16e   : > { %v2753_v50 = vadd.f32 %v6321_v47, %v2651_v9  ;;  %v723_v62 = vadd.f32 %v691_v36, %v623_v58  ;;  %v893_v10 = vmul.f32 %v3609_v20, %v5148_v31  ;;  %v1613_v34 = vmul.f32 %v8952_v51, %v5195_v57  ;;  %v6437_v36 = vld [vmem:[%s5101_s30 + $0x262] sm:$0xff] }
 0x16f   : > { %8951 = vst [vmem:[#allocation62_spill] sm:$0xff] %v6419_v13  ;;  %v2134_v63 = vadd.f32 %v2102_v30, %v2031_v8  ;;  %v1443_v38 = vadd.f32 %v1411_v60, %v1343_v15  ;;  %v1713_v48 = vmul.f32 %v8953_v24, %v8724_v54  ;;  %v1815_v9 = vmul.f32 %v6427_v43, %v8879_v61  ;;  %v6434_v13 = vld [vmem:[%s5101_s30 + $0x261] sm:$0xff] }
 0x170   : > { %v2853_v47 = vadd.f32 %v6325_v7, %v2753_v50  ;;  %8955 = vst [vmem:[#allocation40_spill] sm:$0xff] %v6434_v13  ;;  %8956 = vst [vmem:[#allocation66_spill] sm:$0xff] %v6437_v36  ;;  %v823_v30 = vadd.f32 %v791_v29, %v723_v62  ;;  %v993_v60 = vmul.f32 %v3641_v32, %v5156_v35  ;;  %v8957_v24 = vld [vmem:[#allocation33_spill] sm:$0xff]  ;;  %v8958_v32 = vld [vmem:[#allocation35_spill] sm:$0xff] }
 0x171   : > { %v2234_v20 = vadd.f32 %v2202_v46, %v2134_v63  ;;  %v1545_v58 = vadd.f32 %v1513_v42, %v1443_v38  ;;  %v1915_v8 = vmul.f32 %v6434_v13, %v8882_v41  ;;  %v2015_v15 = vmul.f32 %v6437_v36, %v8838_v40  ;;  %v8959_v62 = vld [vmem:[#allocation24_spill] sm:$0xff] }
 0x172   : > { %v2953_v7 = vadd.f32 %v8957_v24, %v2853_v47  ;;  %v925_v50 = vadd.f32 %v893_v10, %v823_v30  ;;  %v1093_v43 = vmul.f32 %v3673_v6, %v8839_v23  ;;  %v337_v51 = vmul.f32 %v6147_v2, %v8921_v59  ;;  %v8960_v10 = vld [vmem:[#allocation53_spill] sm:$0xff]  ;;  %v8961_v24 = vld [vmem:[#allocation60_spill] sm:$0xff] }
 0x173   : > { %v2334_v61 = vadd.f32 %v2302_v0, %v2234_v20  ;;  %v1645_v29 = vadd.f32 %v1613_v34, %v1545_v58  ;;  %v405_v46 = vmul.f32 %v6166_v26, %v5112_v11  ;;  %v505_v42 = vmul.f32 %v6189_v1, %v5115_v12  ;;  %v8962_v58 = vld [vmem:[#allocation50_spill] sm:$0xff] }
 0x174   : > { %4391 = vmatmul.mubr.msk.f32.gmra.mrb[4].mxu1 %vm2972_vm0, %v2953_v7  ;;  %v2118_v63 = vmul.f32 %v8959_v62, %v8958_v32  ;;  %v2218_v38 = vmul.f32 %v8960_v10, %v5224_v18  ;;  %v1025_v6 = vadd.f32 %v993_v60, %v925_v50  ;;  %v1196_v47 = vmul.f32 %v8961_v24, %v8942_v37  ;;  %v8963_v62 = vld [vmem:[#allocation55_spill] sm:$0xff]  ;;  %v8964_v50 = vld [vmem:[#allocation37_spill] sm:$0xff]  ;;  %v8966_v24 = vld [vmem:[#allocation68_spill] sm:$0xff] }
 0x175   : > { %v2436_v0 = vadd.f32 %v2404_v55, %v2334_v61  ;;  %v1745_v34 = vadd.f32 %v1713_v48, %v1645_v29  ;;  %v437_v30 = vadd.f32 %v405_v46, %v337_v51  ;;  %v607_v20 = vmul.f32 %v6328_v19, %v5122_v16  ;;  %v8965_v29 = vld [vmem:[#allocation67_spill] sm:$0xff] }
 0x176   : > { %v2318_v7 = vmul.f32 %v8962_v58, %v5238_v33  ;;  %v6465_v36 = vmul.f32 %v8963_v62, %v5283_v45  ;;  %v1125_v60 = vadd.f32 %v1093_v43, %v1025_v6  ;;  %v1296_v10 = vmul.f32 %v8964_v50, %v8906_v22  ;;  %v8967_v6 = vld [vmem:[#allocation54_spill] sm:$0xff]  ;;  %v3967_v62 = vld [vmem:[%s5101_s30 + $0x132] sm:$0xff] }
 0x177   : > { %v2536_v61 = vadd.f32 %v2504_v5, %v2436_v0  ;;  %v1847_v55 = vadd.f32 %v1815_v9, %v1745_v34  ;;  %v537_v48 = vadd.f32 %v505_v42, %v437_v30  ;;  %v707_v51 = vmul.f32 %v6348_v14, %v5130_v21  ;;  %v6482_v5 = vld [vmem:[%s5101_s30 + $0x1d0] sm:$0xff]  ;;  %v6486_v0 = vld [vmem:[%s5101_s30 + $0x300] sm:$0xff] }
 0x178   : > { %v6473_v46 = vmul.f32 %v8965_v29, %v5286_v39  ;;  %v6477_v58 = vmul.f32 %v8966_v24, %v5292_v44  ;;  %v1228_v43 = vadd.f32 %v1196_v47, %v1125_v60  ;;  %v1396_v50 = vmul.f32 %v8967_v6, %v5187_v52  ;;  %8968 = vst [vmem:[#allocation57_spill] sm:$0xff] %v6486_v0  ;;  %v6489_v34 = vld [vmem:[%s5101_s30 + $0x301] sm:$0xff]  ;;  %v6505_v6 = vld [vmem:[%s5101_s30 + $0x1d1] sm:$0xff] }
 0x179   : > { %v2636_v9 = vadd.f32 %v6397_v4, %v2536_v61  ;;  %v1947_v42 = vadd.f32 %v1915_v8, %v1847_v55  ;;  %8969 = vst [vmem:[#allocation43_spill] sm:$0xff] %v6489_v34  ;;  %v639_v30 = vadd.f32 %v607_v20, %v537_v48  ;;  %v807_v24 = vmul.f32 %v6366_v3, %v5138_v25  ;;  %v8972_v8 = vld [vmem:[#allocation71_spill] sm:$0xff]  ;;  %v6509_v29 = vld [vmem:[%s5101_s30 + $0x302] sm:$0xff] }
 0x17a   : > { %v6495_v47 = vmul.f32 %v6486_v0, %v5295_v49  ;;  %v6499_v60 = vmul.f32 %v6489_v34, %v5303_v17  ;;  %v1328_v4 = vadd.f32 %v1296_v10, %v1228_v43  ;;  %v1498_v61 = vmul.f32 %v8972_v8, %v5190_v53  ;;  %v3903_v55 = vld [vmem:[%s5101_s30 + $0x130] sm:$0xff]  ;;  %8973 = vst [vmem:[#allocation27_spill] sm:$0xff] %v6509_v29  ;;  %v454_v53 = vld [vmem:[%s5101_s30 + $0xa2] sm:$0xff] }
 0x17b   : > { %v2738_v20 = vadd.f32 %v6405_v27, %v2636_v9  ;;  %v2047_v48 = vadd.f32 %v2015_v15, %v1947_v42  ;;  %v3935_v0 = vld [vmem:[%s5101_s30 + $0x131] sm:$0xff]  ;;  %v739_v34 = vadd.f32 %v707_v51, %v639_v30  ;;  %v909_v10 = vmul.f32 %v6482_v5, %v5148_v31  ;;  %v8976_v15 = vld [vmem:[#allocation69_spill] sm:$0xff] }
 0x17c   : > { %8970 = vst [vmem:[#allocation58_spill] sm:$0xff] %v6495_v47  ;;  %8971 = vst [vmem:[#allocation59_spill] sm:$0xff] %v6499_v60  ;;  %v6517_v43 = vmul.f32 %v6509_v29, %v8766_v56  ;;  %v1428_v8 = vadd.f32 %v1396_v50, %v1328_v4  ;;  %v8975_v60 = vld [vmem:[#allocation75_spill] sm:$0xff]  ;;  %v1698_v9 = vmul.f32 %v8976_v15, %v8724_v54  ;;  %v4261_v42 = vld [vmem:[%s5101_s30 + $0x1d2] sm:$0xff] }
 0x17d   : > { %v1598_v27 = vmul.f32 %v8975_v60, %v5195_v57  ;;  %v2838_v13 = vadd.f32 %v6411_v28, %v2738_v20  ;;  %v2150_v47 = vadd.f32 %v2118_v63, %v2047_v48  ;;  %v839_v17 = vadd.f32 %v807_v24, %v739_v34  ;;  %v286_v30 = vld [vmem:[%s5101_s30 + $0xa0] sm:$0xff] }
 0x17e   : > { %8974 = vst [vmem:[#allocation48_spill] sm:$0xff] %v6517_v43  ;;  %v1009_v51 = vmul.f32 %v6505_v6, %v5156_v35  ;;  %v354_v31 = vld [vmem:[%s5101_s30 + $0xa1] sm:$0xff]  ;;  %v1530_v29 = vadd.f32 %v1498_v61, %v1428_v8  ;;  %v8977_v43 = vld [vmem:[#allocation32_spill] sm:$0xff]  ;;  %v1900_v60 = vmul.f32 %v3935_v0, %v8882_v41  ;;  %v2000_v4 = vmul.f32 %v3967_v62, %v8838_v40 }
 0x17f   : > { %v1800_v50 = vmul.f32 %v3903_v55, %v8977_v43  ;;  %v8978_v15 = vld [vmem:[#allocation62_spill] sm:$0xff]  ;;  %v2250_v57 = vadd.f32 %v2218_v38, %v2150_v47  ;;  %v941_v28 = vadd.f32 %v909_v10, %v839_v17  ;;  %v1109_v63 = vmul.f32 %v4261_v42, %v8839_v23  ;;  %v6544_v38 = vld [vmem:[%s5101_s30 + $0xb0] sm:$0xff] }
 0x180   : > { %v2938_v54 = vadd.f32 %v8978_v15, %v2838_v13  ;;  %v1630_v24 = vadd.f32 %v1598_v27, %v1530_v29  ;;  %v322_v34 = vmul.f32 %v8921_v59, %v286_v30  ;;  %v390_v20 = vmul.f32 %v5112_v11, %v354_v31  ;;  %v8979_v13 = vld [vmem:[#allocation61_spill] sm:$0xff]  ;;  %v6556_v10 = vld [vmem:[%s5101_s30 + $0xb1] sm:$0xff]  ;;  %v8981_v30 = vld [vmem:[#allocation38_spill] sm:$0xff] }
 0x181   : > { %v490_v61 = vmul.f32 %v5115_v12, %v454_v53  ;;  %v2350_v55 = vadd.f32 %v2318_v7, %v2250_v57  ;;  %v2103_v62 = vmul.f32 %v6147_v2, %v8958_v32  ;;  %v1041_v0 = vadd.f32 %v1009_v51, %v941_v28  ;;  %v8980_v7 = vld [vmem:[#allocation39_spill] sm:$0xff]  ;;  %v6570_v15 = vld [vmem:[%s5101_s30 + $0xb2] sm:$0xff] }
 0x182   : > { %4369 = vmatprep.mubr.msk.f32.mxu0 %vm2972_vm0, %v2938_v54  ;;  %v1212_v17 = vmul.f32 %v8979_v13, %v8942_v37  ;;  %v1730_v29 = vadd.f32 %v1698_v9, %v1630_v24  ;;  %v2203_v47 = vmul.f32 %v6166_v26, %v5224_v18  ;;  %v422_v31 = vadd.f32 %v390_v20, %v322_v34  ;;  %v8983_v20 = vld [vmem:[#allocation29_spill] sm:$0xff] }
 0x183   : > { %v592_v53 = vmul.f32 %v6544_v38, %v5122_v16  ;;  %v2452_v57 = vadd.f32 %v6465_v36, %v2350_v55  ;;  %v2303_v54 = vmul.f32 %v6189_v1, %v5238_v33  ;;  %v1141_v2 = vadd.f32 %v1109_v63, %v1041_v0  ;;  %8982 = vst [vmem:[#allocation64_spill] sm:$0xff] %v6570_v15  ;;  %v6586_v55 = vld [vmem:[%s5101_s30 + $0xc0] sm:$0xff]  ;;  %v8986_v0 = vld [vmem:[#allocation44_spill] sm:$0xff] }
 0x184   : > { %v1312_v48 = vmul.f32 %v8980_v7, %v8906_v22  ;;  %v1832_v8 = vadd.f32 %v1800_v50, %v1730_v29  ;;  %v2405_v26 = vmul.f32 %v6328_v19, %v5283_v45  ;;  %v522_v27 = vadd.f32 %v490_v61, %v422_v31  ;;  %v8984_v61 = vld [vmem:[#allocation63_spill] sm:$0xff]  ;;  %8985 = vst [vmem:[#allocation72_spill] sm:$0xff] %v6586_v55  ;;  %v8987_v31 = vld [vmem:[#allocation21_spill] sm:$0xff]  ;;  %v8989_v7 = vld [vmem:[#allocation30_spill] sm:$0xff] }
 0x185   : > { %v692_v9 = vmul.f32 %v6556_v10, %v5130_v21  ;;  %v2552_v36 = vadd.f32 %v6473_v46, %v2452_v57  ;;  %v6565_v1 = vmul.f32 %v6348_v14, %v5286_v39  ;;  %v1244_v51 = vadd.f32 %v1212_v17, %v1141_v2  ;;  %v3919_v17 = vld [vmem:[%s5101_s30 + $0x270] sm:$0xff] }
 0x186   : > { %v1412_v50 = vmul.f32 %v8981_v30, %v5187_v52  ;;  %v1932_v19 = vadd.f32 %v1900_v60, %v1832_v8  ;;  %v6574_v28 = vmul.f32 %v6366_v3, %v5292_v44  ;;  %v624_v63 = vadd.f32 %v592_v53, %v522_v27  ;;  %v8988_v53 = vld [vmem:[#allocation58_spill] sm:$0xff]  ;;  %v3983_v8 = vld [vmem:[%s5101_s30 + $0x272] sm:$0xff] }
 0x187   : > { %v792_v46 = vmul.f32 %v6570_v15, %v5138_v25  ;;  %v2652_v14 = vadd.f32 %v6477_v58, %v2552_v36  ;;  %v6581_v24 = vmul.f32 %v6482_v5, %v5295_v49  ;;  %v1344_v34 = vadd.f32 %v1312_v48, %v1244_v51  ;;  %v3951_v58 = vld [vmem:[%s5101_s30 + $0x271] sm:$0xff]  ;;  %v6604_v27 = vld [vmem:[%s5101_s30 + $0xc1] sm:$0xff] }
 0x188   : > { %v1514_v60 = vmul.f32 %v8984_v61, %v8983_v20  ;;  %v2032_v3 = vadd.f32 %v2000_v4, %v1932_v19  ;;  %v6590_v13 = vmul.f32 %v6505_v6, %v8986_v0  ;;  %v724_v29 = vadd.f32 %v692_v9, %v624_v63  ;;  %v8990_v48 = vld [vmem:[#allocation40_spill] sm:$0xff]  ;;  %8991 = vst [vmem:[#allocation46_spill] sm:$0xff] %v6604_v27  ;;  %v8992_v9 = vld [vmem:[#allocation31_spill] sm:$0xff]  ;;  %v8993_v51 = vld [vmem:[#allocation66_spill] sm:$0xff] }
 0x189   : > { %v894_v5 = vmul.f32 %v6586_v55, %v8987_v31  ;;  %v2754_v57 = vadd.f32 %v8988_v53, %v2652_v14  ;;  %v6598_v2 = vmul.f32 %v4261_v42, %v8766_v56  ;;  %v1444_v4 = vadd.f32 %v1412_v50, %v1344_v34  ;;  %v6611_v42 = vld [vmem:[%s5101_s30 + $0x1e0] sm:$0xff]  ;;  %v8994_v50 = vld [vmem:[#allocation59_spill] sm:$0xff] }
 0x18a   : > { %v1614_v6 = vmul.f32 %v8990_v48, %v8989_v7  ;;  %v2135_v36 = vadd.f32 %v2103_v62, %v2032_v3  ;;  %v1714_v30 = vmul.f32 %v8993_v51, %v8992_v9  ;;  %v824_v19 = vadd.f32 %v792_v46, %v724_v29  ;;  %v6614_v14 = vld [vmem:[%s5101_s30 + $0x1e1] sm:$0xff] }
 0x18b   : > { %v994_v63 = vmul.f32 %v6604_v27, %v5156_v35  ;;  %v2854_v34 = vadd.f32 %v8994_v50, %v2754_v57  ;;  %v1546_v61 = vadd.f32 %v1514_v60, %v1444_v4  ;;  %v1816_v53 = vmul.f32 %v3919_v17, %v8977_v43  ;;  %v6620_v62 = vld [vmem:[%s5101_s30 + $0xc2] sm:$0xff]  ;;  %v8996_v57 = vld [vmem:[#allocation48_spill] sm:$0xff] }
 0x18c   : > { %v1916_v48 = vmul.f32 %v3951_v58, %v8882_v41  ;;  %8995 = vst [vmem:[#allocation70_spill] sm:$0xff] %v6620_v62  ;;  %v3708_v3 = vld [vmem:[%s5101_s30 + $0x140] sm:$0xff]  ;;  %v2235_v29 = vadd.f32 %v2203_v47, %v2135_v36  ;;  %v2016_v51 = vmul.f32 %v3983_v8, %v8838_v40  ;;  %v926_v27 = vadd.f32 %v894_v5, %v824_v19  ;;  %v6637_v36 = vld [vmem:[%s5101_s30 + $0x1f0] sm:$0xff] }
 0x18d   : > { %v6624_v46 = vld [vmem:[%s5101_s30 + $0x1e2] sm:$0xff]  ;;  %v1094_v55 = vmul.f32 %v6620_v62, %v8839_v23  ;;  %v2954_v60 = vadd.f32 %v8996_v57, %v2854_v34  ;;  %v1646_v4 = vadd.f32 %v1614_v6, %v1546_v61  ;;  %v338_v58 = vmul.f32 %v6611_v42, %v8921_v59  ;;  %8997 = vst [vmem:[#allocation23_spill] sm:$0xff] %v6637_v36  ;;  %v8998_v19 = vld [vmem:[#allocation55_spill] sm:$0xff] }
 0x18e   : > { %v3740_v17 = vld [vmem:[%s5101_s30 + $0x141] sm:$0xff]  ;;  %v406_v50 = vmul.f32 %v6614_v14, %v5112_v11  ;;  %v2335_v15 = vadd.f32 %v2303_v54, %v2235_v29  ;;  %v1026_v47 = vadd.f32 %v994_v63, %v926_v27  ;;  %v1197_v8 = vmul.f32 %v3708_v3, %v8942_v37  ;;  %v8999_v63 = vld [vmem:[#allocation67_spill] sm:$0xff] }
 0x18f   : > { %v506_v5 = vmul.f32 %v6624_v46, %v5115_v12  ;;  %4393 = vmatprep.mubr.msk.f32.mxu1 %vm2972_vm0, %v2954_v60  ;;  %v1746_v6 = vadd.f32 %v1714_v30, %v1646_v4  ;;  %v2119_v34 = vmul.f32 %v8998_v19, %v8958_v32  ;;  %v3772_v61 = vld [vmem:[%s5101_s30 + $0x142] sm:$0xff]  ;;  %v608_v54 = vmul.f32 %v6637_v36, %v5122_v16  ;;  %v6651_v30 = vld [vmem:[%s5101_s30 + $0x1f1] sm:$0xff] }
 0x190   : > { %v438_v57 = vadd.f32 %v406_v50, %v338_v58  ;;  %v2437_v27 = vadd.f32 %v2405_v26, %v2335_v15  ;;  %v2219_v3 = vmul.f32 %v8999_v63, %v5224_v18  ;;  %v1126_v29 = vadd.f32 %v1094_v55, %v1026_v47  ;;  %9000 = vst [vmem:[#allocation26_spill] sm:$0xff] %v6651_v30  ;;  %v9001_v19 = vld [vmem:[#allocation68_spill] sm:$0xff]  ;;  %v9002_v15 = vld [vmem:[#allocation57_spill] sm:$0xff] }
 0x191   : > { %v1297_v60 = vmul.f32 %v3740_v17, %v8906_v22  ;;  %v1848_v4 = vadd.f32 %v1816_v53, %v1746_v6  ;;  %v2319_v62 = vmul.f32 %v9001_v19, %v5238_v33  ;;  %v708_v50 = vmul.f32 %v6651_v30, %v5130_v21  ;;  %v4213_v55 = vld [vmem:[%s5101_s30 + $0x310] sm:$0xff] }
 0x192   : > { %v538_v58 = vadd.f32 %v506_v5, %v438_v57  ;;  %v2537_v26 = vadd.f32 %v6565_v1, %v2437_v27  ;;  %v2421_v63 = vmul.f32 %v9002_v15, %v5283_v45  ;;  %v1229_v47 = vadd.f32 %v1197_v8, %v1126_v29  ;;  %v6663_v53 = vld [vmem:[%s5101_s30 + $0x1f2] sm:$0xff]  ;;  %v9004_v5 = vld [vmem:[#allocation43_spill] sm:$0xff]  ;;  %v6682_v15 = vld [vmem:[%s5101_s30 + $0x200] sm:$0xff] }
 0x193   : > { %v1397_v17 = vmul.f32 %v3772_v61, %v5187_v52  ;;  %9003 = vst [vmem:[#allocation74_spill] sm:$0xff] %v6663_v53  ;;  %v1948_v6 = vadd.f32 %v1916_v48, %v1848_v4  ;;  %v2521_v57 = vmul.f32 %v9004_v5, %v5286_v39  ;;  %v4245_v19 = vld [vmem:[%s5101_s30 + $0x311] sm:$0xff]  ;;  %v808_v1 = vmul.f32 %v6663_v53, %v5138_v25 }
 0x194   : > { %v6669_v36 = vld [vmem:[%s5101_s30 + $0x150] sm:$0xff]  ;;  %v640_v30 = vadd.f32 %v608_v54, %v538_v58  ;;  %v2637_v27 = vadd.f32 %v6574_v28, %v2537_v26  ;;  %v1329_v48 = vadd.f32 %v1297_v60, %v1229_v47  ;;  %9007 = vst [vmem:[#allocation36_spill] sm:$0xff] %v6682_v15  ;;  %v6685_v58 = vmul.f32 %v4213_v55, %v5295_v49 }
 0x195   : > { %9005 = vst [vmem:[#allocation73_spill] sm:$0xff] %v6669_v36  ;;  %v9006_v8 = vld [vmem:[#allocation27_spill] sm:$0xff]  ;;  %v4277_v29 = vld [vmem:[%s5101_s30 + $0x312] sm:$0xff]  ;;  %v1499_v4 = vmul.f32 %v6669_v36, %v8983_v20  ;;  %v2048_v54 = vadd.f32 %v2016_v51, %v1948_v6  ;;  %v910_v26 = vmul.f32 %v6682_v15, %v8987_v31  ;;  %v6694_v60 = vmul.f32 %v4245_v19, %v8986_v0  ;;  %v6699_v6 = vld [vmem:[%s5101_s30 + $0x201] sm:$0xff] }
 0x196   : > { %v6676_v61 = vmul.f32 %v9006_v8, %v5292_v44  ;;  %v6688_v5 = vld [vmem:[%s5101_s30 + $0x151] sm:$0xff]  ;;  %v740_v28 = vadd.f32 %v708_v50, %v640_v30  ;;  %v2739_v8 = vadd.f32 %v6581_v24, %v2637_v27  ;;  %v1429_v47 = vadd.f32 %v1397_v17, %v1329_v48  ;;  %9009 = vst [vmem:[#allocation41_spill] sm:$0xff] %v6699_v6  ;;  %v6708_v50 = vld [vmem:[%s5101_s30 + $0x160] sm:$0xff] }
 0x197   : > { %9008 = vst [vmem:[#allocation52_spill] sm:$0xff] %v6688_v5  ;;  %v1599_v51 = vmul.f32 %v6688_v5, %v8989_v7  ;;  %v2151_v55 = vadd.f32 %v2119_v34, %v2048_v54  ;;  %v6702_v36 = vmul.f32 %v4277_v29, %v8766_v56  ;;  %v6705_v30 = vld [vmem:[%s5101_s30 + $0x152] sm:$0xff]  ;;  %9012 = vst [vmem:[#allocation28_spill] sm:$0xff] %v6708_v50  ;;  %v3724_v27 = vld [vmem:[%s5101_s30 + $0x280] sm:$0xff] }
 0x198   : > { %9011 = vst [vmem:[#allocation51_spill] sm:$0xff] %v6705_v30  ;;  %v840_v24 = vadd.f32 %v808_v1, %v740_v28  ;;  %v1010_v19 = vmul.f32 %v6699_v6, %v5156_v35  ;;  %v2839_v17 = vadd.f32 %v6590_v13, %v2739_v8  ;;  %v1531_v48 = vadd.f32 %v1499_v4, %v1429_v47  ;;  %v6719_v54 = vld [vmem:[%s5101_s30 + $0x161] sm:$0xff] }
 0x199   : > { %9010 = vst [vmem:[#allocation47_spill] sm:$0xff] %v6702_v36  ;;  %v1699_v34 = vmul.f32 %v6705_v30, %v8992_v9  ;;  %v1801_v29 = vmul.f32 %v6708_v50, %v8977_v43  ;;  %9013 = vst [vmem:[#allocation65_spill] sm:$0xff] %v6719_v54  ;;  %v6722_v5 = vld [vmem:[%s5101_s30 + $0x202] sm:$0xff]  ;;  %v2251_v1 = vadd.f32 %v2219_v3, %v2151_v55 }
 0x19a   : > { %v1901_v28 = vmul.f32 %v6719_v54, %v8882_v41  ;;  %v942_v36 = vadd.f32 %v910_v26, %v840_v24  ;;  %v1110_v13 = vmul.f32 %v6722_v5, %v8839_v23  ;;  %v3756_v4 = vld [vmem:[%s5101_s30 + $0x281] sm:$0xff]  ;;  %v2939_v8 = vadd.f32 %v6598_v2, %v2839_v17  ;;  %v9015_v24 = vld [vmem:[#allocation64_spill] sm:$0xff] }
 0x19b   : > { %v1631_v47 = vadd.f32 %v1599_v51, %v1531_v48  ;;  %v1213_v30 = vmul.f32 %v3724_v27, %v8942_v37  ;;  %v323_v50 = vmul.f32 %v6544_v38, %v8921_v59  ;;  %v2351_v43 = vadd.f32 %v2319_v62, %v2251_v1  ;;  %v6734_v35 = vld [vmem:[%s5101_s30 + $0x162] sm:$0xff] }
 0x19c   : > { %9014 = vst [vmem:[#allocation56_spill] sm:$0xff] %v6734_v35  ;;  %v1042_v3 = vadd.f32 %v1010_v19, %v942_v36  ;;  %v3788_v55 = vld [vmem:[%s5101_s30 + $0x282] sm:$0xff]  ;;  %v391_v26 = vmul.f32 %v6556_v10, %v5112_v11  ;;  %v491_v54 = vmul.f32 %v9015_v24, %v5115_v12  ;;  %4370 = vmatmul.mubr.msk.f32.gmra.mrb[6].mxu0 %vm2972_vm0, %v2939_v8  ;;  %v9016_v10 = vld [vmem:[#allocation72_spill] sm:$0xff] }
 0x19d   : > { %v1731_v2 = vadd.f32 %v1699_v34, %v1631_v47  ;;  %v2001_v51 = vmul.f32 %v6734_v35, %v8838_v40  ;;  %v2104_v38 = vmul.f32 %v6611_v42, %v8958_v32  ;;  %v1313_v62 = vmul.f32 %v3756_v4, %v8906_v22  ;;  %v6755_v24 = vld [vmem:[%s5101_s30 + $0x290] sm:$0xff] }
 0x19e   : > { %v2453_v36 = vadd.f32 %v2421_v63, %v2351_v43  ;;  %v1142_v19 = vadd.f32 %v1110_v13, %v1042_v3  ;;  %v423_v27 = vadd.f32 %v391_v26, %v323_v50  ;;  %v593_v17 = vmul.f32 %v9016_v10, %v5122_v16  ;;  %9017 = vst [vmem:[#allocation49_spill] sm:$0xff] %v6755_v24  ;;  %v9018_v63 = vld [vmem:[#allocation46_spill] sm:$0xff] }
 0x19f   : > { %v1833_v48 = vadd.f32 %v1801_v29, %v1731_v2  ;;  %v2204_v1 = vmul.f32 %v6614_v14, %v5224_v18  ;;  %v2304_v34 = vmul.f32 %v6624_v46, %v5238_v33  ;;  %v1413_v8 = vmul.f32 %v3788_v55, %v5187_v52  ;;  %v9019_v29 = vld [vmem:[#allocation23_spill] sm:$0xff]  ;;  %v9020_v14 = vld [vmem:[#allocation26_spill] sm:$0xff] }
 0x1a0   : > { %v2553_v47 = vadd.f32 %v2521_v57, %v2453_v36  ;;  %v1245_v42 = vadd.f32 %v1213_v30, %v1142_v19  ;;  %v523_v43 = vadd.f32 %v491_v54, %v423_v27  ;;  %v693_v50 = vmul.f32 %v9018_v63, %v5130_v21  ;;  %v6767_v55 = vld [vmem:[%s5101_s30 + $0x291] sm:$0xff]  ;;  %v9022_v26 = vld [vmem:[#allocation70_spill] sm:$0xff] }
 0x1a1   : > { %v1933_v13 = vadd.f32 %v1901_v28, %v1833_v48  ;;  %v2406_v4 = vmul.f32 %v9019_v29, %v5283_v45  ;;  %v2506_v3 = vmul.f32 %v9020_v14, %v5286_v39  ;;  %v1515_v46 = vmul.f32 %v6755_v24, %v8983_v20  ;;  %9021 = vst [vmem:[#allocation33_spill] sm:$0xff] %v6767_v55  ;;  %v6784_v48 = vld [vmem:[%s5101_s30 + $0x292] sm:$0xff] }
 0x1a2   : > { %v2653_v57 = vadd.f32 %v6676_v61, %v2553_v47  ;;  %v1345_v30 = vadd.f32 %v1313_v62, %v1245_v42  ;;  %v625_v54 = vadd.f32 %v593_v17, %v523_v43  ;;  %v793_v28 = vmul.f32 %v9022_v26, %v5138_v25  ;;  %v6780_v62 = vld [vmem:[%s5101_s30 + $0xd0] sm:$0xff]  ;;  %9024 = vst [vmem:[#allocation53_spill] sm:$0xff] %v6784_v48 }
 0x1a3   : > { %v2033_v2 = vadd.f32 %v2001_v51, %v1933_v13  ;;  %v2606_v36 = vmul.f32 %v6663_v53, %v5292_v44  ;;  %v6775_v19 = vmul.f32 %v6682_v15, %v5295_v49  ;;  %v1615_v61 = vmul.f32 %v6767_v55, %v8989_v7  ;;  %9023 = vst [vmem:[#allocation24_spill] sm:$0xff] %v6780_v62  ;;  %v9030_v55 = vld [vmem:[#allocation22_spill] sm:$0xff]  ;;  %v9031_v24 = vld [vmem:[#allocation32_spill] sm:$0xff] }
 0x1a4   : > { %v2755_v27 = vadd.f32 %v6685_v58, %v2653_v57  ;;  %v1445_v17 = vadd.f32 %v1413_v8, %v1345_v30  ;;  %v725_v51 = vadd.f32 %v693_v50, %v625_v54  ;;  %v895_v47 = vmul.f32 %v6780_v62, %v8987_v31  ;;  %v6799_v8 = vld [vmem:[%s5101_s30 + $0xd1] sm:$0xff]  ;;  %v6806_v30 = vld [vmem:[%s5101_s30 + $0x2a1] sm:$0xff] }
 0x1a5   : > { %v2136_v42 = vadd.f32 %v2104_v38, %v2033_v2  ;;  %v6790_v43 = vmul.f32 %v6699_v6, %v8986_v0  ;;  %v6794_v13 = vmul.f32 %v6722_v5, %v8766_v56  ;;  %v1715_v58 = vmul.f32 %v6784_v48, %v8992_v9  ;;  %9026 = vst [vmem:[#allocation50_spill] sm:$0xff] %v6799_v8  ;;  %v6803_v38 = vld [vmem:[%s5101_s30 + $0x2a0] sm:$0xff] }
 0x1a6   : > { %v2855_v50 = vadd.f32 %v6694_v60, %v2755_v27  ;;  %v1547_v57 = vadd.f32 %v1515_v46, %v1445_v17  ;;  %9027 = vst [vmem:[#allocation37_spill] sm:$0xff] %v6803_v38  ;;  %9028 = vst [vmem:[#allocation54_spill] sm:$0xff] %v6806_v30  ;;  %v6809_v54 = vld [vmem:[%s5101_s30 + $0x2a2] sm:$0xff]  ;;  %v825_v2 = vadd.f32 %v793_v28, %v725_v51  ;;  %v6821_v27 = vld [vmem:[%s5101_s30 + $0xd2] sm:$0xff] }
 0x1a7   : > { %9025 = vst [vmem:[#allocation60_spill] sm:$0xff] %v6794_v13  ;;  %9029 = vst [vmem:[#allocation71_spill] sm:$0xff] %v6809_v54  ;;  %v995_v62 = vmul.f32 %v6799_v8, %v9030_v55  ;;  %v2236_v26 = vadd.f32 %v2204_v1, %v2136_v42  ;;  %v1817_v48 = vmul.f32 %v6803_v38, %v9031_v24  ;;  %v4018_v46 = vld [vmem:[%s5101_s30 + $0x320] sm:$0xff]  ;;  %v9033_v17 = vld [vmem:[#allocation47_spill] sm:$0xff] }
 0x1a8   : > { %v1917_v63 = vmul.f32 %v6806_v30, %v8882_v41  ;;  %v2017_v60 = vmul.f32 %v6809_v54, %v8838_v40  ;;  %9032 = vst [vmem:[#allocation75_spill] sm:$0xff] %v6821_v27  ;;  %v2955_v10 = vadd.f32 %v9033_v17, %v2855_v50  ;;  %v1647_v13 = vadd.f32 %v1615_v61, %v1547_v57  ;;  %v4050_v28 = vld [vmem:[%s5101_s30 + $0x321] sm:$0xff] }
 0x1a9   : > { %v927_v51 = vadd.f32 %v895_v47, %v825_v2  ;;  %v1095_v1 = vmul.f32 %v6821_v27, %v8839_v23  ;;  %v2336_v42 = vadd.f32 %v2304_v34, %v2236_v26  ;;  %v4082_v38 = vld [vmem:[%s5101_s30 + $0x322] sm:$0xff]  ;;  %v339_v30 = vmul.f32 %v9019_v29, %v8921_v59  ;;  %v9034_v34 = vld [vmem:[#allocation73_spill] sm:$0xff] }
 0x1aa   : > { %v407_v54 = vmul.f32 %v9020_v14, %v5112_v11  ;;  %v507_v8 = vmul.f32 %v6663_v53, %v5115_v12  ;;  %4394 = vmatmul.mubr.msk.f32.gmra.mrb[6].mxu1 %vm2972_vm0, %v2955_v10  ;;  %v1747_v61 = vadd.f32 %v1715_v58, %v1647_v13  ;;  %v2120_v47 = vmul.f32 %v4018_v46, %v8958_v32  ;;  %v6843_v10 = vld [vmem:[%s5101_s30 + $0x330] sm:$0xff] }
 0x1ab   : > { %v1027_v50 = vadd.f32 %v995_v62, %v927_v51  ;;  %v1198_v26 = vmul.f32 %v9034_v34, %v8942_v37  ;;  %v2438_v57 = vadd.f32 %v2406_v4, %v2336_v42  ;;  %v2220_v2 = vmul.f32 %v4050_v28, %v5224_v18  ;;  %9035 = vst [vmem:[#allocation69_spill] sm:$0xff] %v6843_v10  ;;  %v9036_v62 = vld [vmem:[#allocation52_spill] sm:$0xff] }
 0x1ac   : > { %v439_v17 = vadd.f32 %v407_v54, %v339_v30  ;;  %v609_v27 = vmul.f32 %v6682_v15, %v5122_v16  ;;  %v1849_v14 = vadd.f32 %v1817_v48, %v1747_v61  ;;  %v2320_v53 = vmul.f32 %v4082_v38, %v5238_v33  ;;  %v6850_v28 = vld [vmem:[%s5101_s30 + $0x331] sm:$0xff] }
 0x1ad   : > { %v1127_v13 = vadd.f32 %v1095_v1, %v1027_v50  ;;  %v1298_v58 = vmul.f32 %v9036_v62, %v8906_v22  ;;  %v2538_v46 = vadd.f32 %v2506_v3, %v2438_v57  ;;  %v2422_v4 = vmul.f32 %v6843_v10, %v5283_v45  ;;  %9037 = vst [vmem:[#allocation62_spill] sm:$0xff] %v6850_v28  ;;  %v6857_v51 = vld [vmem:[%s5101_s30 + $0x332] sm:$0xff]  ;;  %v9039_v3 = vld [vmem:[#allocation51_spill] sm:$0xff] }
 0x1ae   : > { %v539_v30 = vadd.f32 %v507_v8, %v439_v17  ;;  %v709_v48 = vmul.f32 %v6699_v6, %v5130_v21  ;;  %v1949_v38 = vadd.f32 %v1917_v63, %v1849_v14  ;;  %v2522_v54 = vmul.f32 %v6850_v28, %v5286_v39  ;;  %9038 = vst [vmem:[#allocation61_spill] sm:$0xff] %v6857_v51  ;;  %v6864_v8 = vld [vmem:[%s5101_s30 + $0x340] sm:$0xff]  ;;  %v6878_v62 = vld [vmem:[%s5101_s30 + $0x210] sm:$0xff] }
 0x1af   : > { %v1230_v1 = vadd.f32 %v1198_v26, %v1127_v13  ;;  %v1398_v42 = vmul.f32 %v9039_v3, %v5187_v52  ;;  %v2638_v61 = vadd.f32 %v2606_v36, %v2538_v46  ;;  %v2622_v50 = vmul.f32 %v6857_v51, %v5292_v44  ;;  %9040 = vst [vmem:[#allocation39_spill] sm:$0xff] %v6864_v8  ;;  %v6873_v26 = vld [vmem:[%s5101_s30 + $0x341] sm:$0xff]  ;;  %v9042_v36 = vld [vmem:[#allocation28_spill] sm:$0xff] }
 0x1b0   : > { %v641_v34 = vadd.f32 %v609_v27, %v539_v30  ;;  %v809_v63 = vmul.f32 %v6722_v5, %v5138_v25  ;;  %v2049_v14 = vadd.f32 %v2017_v60, %v1949_v38  ;;  %v6870_v57 = vmul.f32 %v6864_v8, %v5295_v49  ;;  %9041 = vst [vmem:[#allocation38_spill] sm:$0xff] %v6873_v26  ;;  %v6886_v60 = vld [vmem:[%s5101_s30 + $0x342] sm:$0xff]  ;;  %v6897_v8 = vld [vmem:[%s5101_s30 + $0x211] sm:$0xff] }
 0x1b1   : > { %v1330_v17 = vadd.f32 %v1298_v58, %v1230_v1  ;;  %v1500_v13 = vmul.f32 %v9042_v36, %v8983_v20  ;;  %v2740_v27 = vadd.f32 %v6775_v19, %v2638_v61  ;;  %v6883_v46 = vmul.f32 %v6873_v26, %v8986_v0  ;;  %9043 = vst [vmem:[#allocation29_spill] sm:$0xff] %v6886_v60  ;;  %v9044_v19 = vld [vmem:[#allocation65_spill] sm:$0xff]  ;;  %v6906_v51 = vld [vmem:[%s5101_s30 + $0x171] sm:$0xff] }
 0x1b2   : > { %v741_v30 = vadd.f32 %v709_v48, %v641_v34  ;;  %v911_v38 = vmul.f32 %v6878_v62, %v8987_v31  ;;  %v2152_v58 = vadd.f32 %v2120_v47, %v2049_v14  ;;  %v6892_v1 = vmul.f32 %v6886_v60, %v8766_v56  ;;  %9045 = vst [vmem:[#allocation63_spill] sm:$0xff] %v6897_v8  ;;  %v6903_v34 = vld [vmem:[%s5101_s30 + $0x170] sm:$0xff] }
 0x1b3   : > { %v1430_v3 = vadd.f32 %v1398_v42, %v1330_v17  ;;  %v1600_v61 = vmul.f32 %v9044_v19, %v8989_v7  ;;  %v2840_v26 = vadd.f32 %v6790_v43, %v2740_v27  ;;  %v1700_v48 = vmul.f32 %v6734_v35, %v8992_v9  ;;  %9046 = vst [vmem:[#allocation21_spill] sm:$0xff] %v6903_v34  ;;  %v6915_v43 = vld [vmem:[%s5101_s30 + $0x172] sm:$0xff] }
 0x1b4   : > { %9047 = vst [vmem:[#allocation58_spill] sm:$0xff] %v6906_v51  ;;  %v841_v47 = vadd.f32 %v809_v63, %v741_v30  ;;  %v1011_v14 = vmul.f32 %v6897_v8, %v9030_v55  ;;  %v2252_v60 = vadd.f32 %v2220_v2, %v2152_v58  ;;  %v1802_v17 = vmul.f32 %v6903_v34, %v9031_v24  ;;  %v6918_v27 = vld [vmem:[%s5101_s30 + $0x212] sm:$0xff] }
 0x1b5   : > { %v1532_v42 = vadd.f32 %v1500_v13, %v1430_v3  ;;  %v1902_v19 = vmul.f32 %v6906_v51, %v8882_v41  ;;  %9048 = vst [vmem:[#allocation30_spill] sm:$0xff] %v6915_v43  ;;  %9049 = vst [vmem:[#allocation40_spill] sm:$0xff] %v6918_v27  ;;  %v9050_v35 = vld [vmem:[#allocation60_spill] sm:$0xff]  ;;  %v2002_v63 = vmul.f32 %v6915_v43, %v8838_v40  ;;  %v9052_v51 = vld [vmem:[#allocation46_spill] sm:$0xff] }
 0x1b6   : > { %v2940_v28 = vadd.f32 %v9050_v35, %v2840_v26  ;;  %v943_v30 = vadd.f32 %v911_v38, %v841_v47  ;;  %v1111_v2 = vmul.f32 %v6918_v27, %v8839_v23  ;;  %v2352_v13 = vadd.f32 %v2320_v53, %v2252_v60  ;;  %v9051_v3 = vld [vmem:[#allocation72_spill] sm:$0xff]  ;;  %v9053_v43 = vld [vmem:[#allocation49_spill] sm:$0xff]  ;;  %v9054_v47 = vld [vmem:[#allocation70_spill] sm:$0xff] }
 0x1b7   : > { %v1632_v58 = vadd.f32 %v1600_v61, %v1532_v42  ;;  %v324_v34 = vmul.f32 %v9051_v3, %v8921_v59  ;;  %v392_v10 = vmul.f32 %v9052_v51, %v5112_v11  ;;  %v2105_v35 = vmul.f32 %v9019_v29, %v8958_v32  ;;  %v9055_v42 = vld [vmem:[#allocation24_spill] sm:$0xff]  ;;  %v9056_v51 = vld [vmem:[#allocation26_spill] sm:$0xff] }
 0x1b8   : > { %4372 = vmatprep.mubr.msk.f32.mxu0 %vm2972_vm0, %v2940_v28  ;;  %v1043_v26 = vadd.f32 %v1011_v14, %v943_v30  ;;  %v1214_v38 = vmul.f32 %v9053_v43, %v8942_v37  ;;  %v492_v36 = vmul.f32 %v9054_v47, %v5115_v12  ;;  %v2454_v53 = vadd.f32 %v2422_v4, %v2352_v13  ;;  %v9057_v28 = vld [vmem:[#allocation74_spill] sm:$0xff]  ;;  %v9058_v14 = vld [vmem:[#allocation33_spill] sm:$0xff] }
 0x1b9   : > { %v1732_v60 = vadd.f32 %v1700_v48, %v1632_v58  ;;  %v424_v61 = vadd.f32 %v392_v10, %v324_v34  ;;  %v594_v3 = vmul.f32 %v9055_v42, %v5122_v16  ;;  %v2205_v11 = vmul.f32 %v9056_v51, %v5224_v18  ;;  %v9059_v4 = vld [vmem:[#allocation50_spill] sm:$0xff]  ;;  %v9060_v58 = vld [vmem:[#allocation53_spill] sm:$0xff] }
 0x1ba   : > { %v2305_v59 = vmul.f32 %v9057_v28, %v5238_v33  ;;  %v1143_v29 = vadd.f32 %v1111_v2, %v1043_v26  ;;  %v1314_v30 = vmul.f32 %v9058_v14, %v8906_v22  ;;  %v2554_v43 = vadd.f32 %v2522_v54, %v2454_v53 }
 0x1bb   : > { %v1834_v32 = vadd.f32 %v1802_v17, %v1732_v60  ;;  %v524_v47 = vadd.f32 %v492_v36, %v424_v61  ;;  %v694_v10 = vmul.f32 %v9059_v4, %v5130_v21  ;;  %v2407_v48 = vmul.f32 %v6682_v15, %v5283_v45  ;;  %v9061_v17 = vld [vmem:[#allocation75_spill] sm:$0xff]  ;;  %v9062_v61 = vld [vmem:[#allocation37_spill] sm:$0xff] }
 0x1bc   : > { %v2507_v34 = vmul.f32 %v6699_v6, %v5286_v39  ;;  %v1246_v13 = vadd.f32 %v1214_v38, %v1143_v29  ;;  %v1414_v2 = vmul.f32 %v9060_v58, %v5187_v52  ;;  %v2654_v26 = vadd.f32 %v2622_v50, %v2554_v43  ;;  %v6963_v50 = vld [vmem:[%s5101_s30 + $0xe0] sm:$0xff]  ;;  %v6983_v58 = vld [vmem:[%s5101_s30 + $0x2b0] sm:$0xff] }
 0x1bd   : > { %v1934_v51 = vadd.f32 %v1902_v19, %v1834_v32  ;;  %v626_v54 = vadd.f32 %v594_v3, %v524_v47  ;;  %v794_v36 = vmul.f32 %v9061_v17, %v5138_v25  ;;  %v2607_v53 = vmul.f32 %v6722_v5, %v5292_v44  ;;  %9063 = vst [vmem:[#allocation31_spill] sm:$0xff] %v6963_v50  ;;  %v9064_v47 = vld [vmem:[#allocation54_spill] sm:$0xff] }
 0x1be   : > { %v6958_v60 = vmul.f32 %v6878_v62, %v5295_v49  ;;  %v1346_v38 = vadd.f32 %v1314_v30, %v1246_v13  ;;  %v1516_v28 = vmul.f32 %v9062_v61, %v8983_v20  ;;  %v2756_v32 = vadd.f32 %v6870_v57, %v2654_v26  ;;  %v6979_v57 = vld [vmem:[%s5101_s30 + $0xe1] sm:$0xff]  ;;  %9066 = vst [vmem:[#allocation59_spill] sm:$0xff] %v6983_v58  ;;  %v6986_v26 = vld [vmem:[%s5101_s30 + $0x2b1] sm:$0xff] }
 0x1bf   : > { %v2034_v19 = vadd.f32 %v2002_v63, %v1934_v51  ;;  %v726_v3 = vadd.f32 %v694_v10, %v626_v54  ;;  %v896_v29 = vmul.f32 %v6963_v50, %v8987_v31  ;;  %v6970_v14 = vmul.f32 %v6897_v8, %v8986_v0  ;;  %9065 = vst [vmem:[#allocation66_spill] sm:$0xff] %v6979_v57 }
 0x1c0   : > { %v6974_v30 = vmul.f32 %v6918_v27, %v8766_v56  ;;  %v1446_v43 = vadd.f32 %v1414_v2, %v1346_v38  ;;  %v1616_v13 = vmul.f32 %v9064_v47, %v8989_v7  ;;  %v2856_v63 = vadd.f32 %v6883_v46, %v2756_v32  ;;  %9067 = vst [vmem:[#allocation48_spill] sm:$0xff] %v6986_v26  ;;  %v9068_v2 = vld [vmem:[#allocation71_spill] sm:$0xff]  ;;  %v6997_v46 = vld [vmem:[%s5101_s30 + $0xe2] sm:$0xff] }
 0x1c1   : > { %v2137_v10 = vadd.f32 %v2105_v35, %v2034_v19  ;;  %v826_v51 = vadd.f32 %v794_v36, %v726_v3  ;;  %v996_v54 = vmul.f32 %v6979_v57, %v9030_v55  ;;  %v1716_v38 = vmul.f32 %v9068_v2, %v8992_v9  ;;  %9069 = vst [vmem:[#allocation55_spill] sm:$0xff] %v6997_v46  ;;  %v7001_v19 = vld [vmem:[%s5101_s30 + $0x2b2] sm:$0xff]  ;;  %v9071_v57 = vld [vmem:[#allocation19_spill] sm:$0xff] }
 0x1c2   : > { %v1548_v50 = vadd.f32 %v1516_v28, %v1446_v43  ;;  %v1818_v47 = vmul.f32 %v6983_v58, %v9031_v24  ;;  %v1918_v17 = vmul.f32 %v6986_v26, %v8882_v41  ;;  %v2956_v35 = vadd.f32 %v6892_v1, %v2856_v63  ;;  %9070 = vst [vmem:[#allocation67_spill] sm:$0xff] %v7001_v19  ;;  %v9072_v2 = vld [vmem:[#allocation20_spill] sm:$0xff] }
 0x1c3   : > { %v2237_v32 = vadd.f32 %v2205_v11, %v2137_v10  ;;  %v928_v36 = vadd.f32 %v896_v29, %v826_v51  ;;  %v1096_v28 = vmul.f32 %v6997_v46, %v8839_v23  ;;  %v2018_v43 = vmul.f32 %v7001_v19, %v8838_v40  ;;  %v9073_v63 = vld [vmem:[#allocation28_spill] sm:$0xff]  ;;  %v9075_v51 = vld [vmem:[#allocation69_spill] sm:$0xff] }
 0x1c4   : > { %v1648_v3 = vadd.f32 %v1616_v13, %v1548_v50  ;;  %v340_v58 = vmul.f32 %v6682_v15, %v9071_v57  ;;  %v408_v26 = vmul.f32 %v6699_v6, %v9072_v2  ;;  %4396 = vmatprep.mubr.msk.f32.mxu1 %vm2972_vm0, %v2956_v35  ;;  %v1199_v29 = vmul.f32 %v9073_v63, %v8942_v37  ;;  %v9074_v13 = vld [vmem:[#allocation35_spill] sm:$0xff]  ;;  %v9076_v6 = vld [vmem:[#allocation62_spill] sm:$0xff]  ;;  %v9078_v63 = vld [vmem:[#allocation61_spill] sm:$0xff] }
 0x1c5   : > { %v2337_v1 = vadd.f32 %v2305_v59, %v2237_v32  ;;  %v1028_v11 = vadd.f32 %v996_v54, %v928_v36  ;;  %v508_v10 = vmul.f32 %v6722_v5, %v5115_v12  ;;  %v2121_v19 = vmul.f32 %v9075_v51, %v9074_v13  ;;  %v9077_v54 = vld [vmem:[#allocation65_spill] sm:$0xff] }
 0x1c6   : > { %v1748_v50 = vadd.f32 %v1716_v38, %v1648_v3  ;;  %v440_v46 = vadd.f32 %v408_v26, %v340_v58  ;;  %v610_v15 = vmul.f32 %v6878_v62, %v5122_v16  ;;  %v2221_v35 = vmul.f32 %v9076_v6, %v5224_v18 }
 0x1c7   : > { %v2439_v40 = vadd.f32 %v2407_v48, %v2337_v1  ;;  %v1128_v59 = vadd.f32 %v1096_v28, %v1028_v11  ;;  %v1299_v32 = vmul.f32 %v9077_v54, %v8906_v22  ;;  %v2321_v38 = vmul.f32 %v9078_v63, %v5238_v33  ;;  %v9079_v48 = vld [vmem:[#allocation39_spill] sm:$0xff]  ;;  %v9080_v28 = vld [vmem:[#allocation56_spill] sm:$0xff] }
 0x1c8   : > { %v1850_v36 = vadd.f32 %v1818_v47, %v1748_v50  ;;  %v540_v3 = vadd.f32 %v508_v10, %v440_v46  ;;  %v710_v58 = vmul.f32 %v6897_v8, %v5130_v21  ;;  %v2423_v1 = vmul.f32 %v9079_v48, %v5283_v45  ;;  %v9081_v47 = vld [vmem:[#allocation38_spill] sm:$0xff]  ;;  %v7039_v63 = vld [vmem:[%s5101_s30 + $0x350] sm:$0xff] }
 0x1c9   : > { %v2539_v26 = vadd.f32 %v2507_v34, %v2439_v40  ;;  %v1231_v6 = vadd.f32 %v1199_v29, %v1128_v59  ;;  %v1399_v11 = vmul.f32 %v9080_v28, %v5187_v52  ;;  %v2523_v50 = vmul.f32 %v9081_v47, %v5286_v39  ;;  %v9082_v40 = vld [vmem:[#allocation29_spill] sm:$0xff]  ;;  %9083 = vst [vmem:[#allocation68_spill] sm:$0xff] %v7039_v63 }
 0x1ca   : > { %v1950_v51 = vadd.f32 %v1918_v17, %v1850_v36  ;;  %v642_v54 = vadd.f32 %v610_v15, %v540_v3  ;;  %v810_v46 = vmul.f32 %v6918_v27, %v5138_v25  ;;  %v2623_v34 = vmul.f32 %v9082_v40, %v5292_v44  ;;  %v9084_v59 = vld [vmem:[#allocation21_spill] sm:$0xff]  ;;  %v7051_v3 = vld [vmem:[%s5101_s30 + $0x351] sm:$0xff] }
 0x1cb   : > { %v2639_v10 = vadd.f32 %v2607_v53, %v2539_v26  ;;  %v1331_v29 = vadd.f32 %v1299_v32, %v1231_v6  ;;  %v1501_v17 = vmul.f32 %v9084_v59, %v8983_v20  ;;  %v7044_v36 = vld [vmem:[%s5101_s30 + $0x220] sm:$0xff]  ;;  %v7048_v15 = vmul.f32 %v7039_v63, %v5295_v49  ;;  %9086 = vst [vmem:[#allocation43_spill] sm:$0xff] %v7051_v3  ;;  %v7061_v40 = vld [vmem:[%s5101_s30 + $0x352] sm:$0xff] }
 0x1cc   : > { %9085 = vst [vmem:[#allocation57_spill] sm:$0xff] %v7044_v36  ;;  %v2050_v28 = vadd.f32 %v2018_v43, %v1950_v51  ;;  %v742_v53 = vadd.f32 %v710_v58, %v642_v54  ;;  %v912_v26 = vmul.f32 %v7044_v36, %v8987_v31  ;;  %v7058_v6 = vmul.f32 %v7051_v3, %v8986_v0  ;;  %v9088_v51 = vld [vmem:[#allocation58_spill] sm:$0xff] }
 0x1cd   : > { %v2741_v32 = vadd.f32 %v6958_v60, %v2639_v10  ;;  %9087 = vst [vmem:[#allocation27_spill] sm:$0xff] %v7061_v40  ;;  %v1431_v43 = vadd.f32 %v1399_v11, %v1331_v29  ;;  %v1601_v63 = vmul.f32 %v9088_v51, %v8989_v7  ;;  %v7066_v47 = vld [vmem:[%s5101_s30 + $0x221] sm:$0xff]  ;;  %v7070_v54 = vmul.f32 %v7061_v40, %v8766_v56 }
 0x1ce   : > { %9089 = vst [vmem:[#allocation64_spill] sm:$0xff] %v7066_v47  ;;  %v2153_v58 = vadd.f32 %v2121_v19, %v2050_v28  ;;  %v7073_v59 = vld [vmem:[%s5101_s30 + $0x180] sm:$0xff]  ;;  %v842_v60 = vadd.f32 %v810_v46, %v742_v53  ;;  %v1012_v10 = vmul.f32 %v7066_v47, %v9030_v55 }
 0x1cf   : > { %9090 = vst [vmem:[#allocation23_spill] sm:$0xff] %v7070_v54  ;;  %9091 = vst [vmem:[#allocation22_spill] sm:$0xff] %v7073_v59  ;;  %v2841_v3 = vadd.f32 %v6970_v14, %v2741_v32  ;;  %v1533_v11 = vadd.f32 %v1501_v17, %v1431_v43  ;;  %v9092_v29 = vld [vmem:[#allocation30_spill] sm:$0xff]  ;;  %v1803_v19 = vmul.f32 %v7073_v59, %v9031_v24 }
 0x1d0   : > { %v1701_v51 = vmul.f32 %v9092_v29, %v8992_v9  ;;  %v7083_v28 = vld [vmem:[%s5101_s30 + $0x181] sm:$0xff]  ;;  %v2253_v48 = vadd.f32 %v2221_v35, %v2153_v58  ;;  %v944_v53 = vadd.f32 %v912_v26, %v842_v60  ;;  %v1215_v32 = vmul.f32 %v9062_v61, %v8942_v37  ;;  %v9095_v26 = vld [vmem:[#allocation75_spill] sm:$0xff]  ;;  %v9097_v61 = vld [vmem:[#allocation36_spill] sm:$0xff] }
 0x1d1   : > { %9093 = vst [vmem:[#allocation32_spill] sm:$0xff] %v7083_v28  ;;  %v7086_v40 = vld [vmem:[%s5101_s30 + $0x222] sm:$0xff]  ;;  %v1903_v46 = vmul.f32 %v7083_v28, %v8882_v41  ;;  %v2941_v14 = vadd.f32 %v6974_v30, %v2841_v3  ;;  %v1633_v17 = vadd.f32 %v1601_v63, %v1533_v11  ;;  %v325_v43 = vmul.f32 %v9055_v42, %v9071_v57 }
 0x1d2   : > { %v1112_v54 = vmul.f32 %v7086_v40, %v8839_v23  ;;  %v2353_v59 = vadd.f32 %v2321_v38, %v2253_v48  ;;  %v7098_v29 = vld [vmem:[%s5101_s30 + $0x182] sm:$0xff]  ;;  %v1044_v35 = vadd.f32 %v1012_v10, %v944_v53  ;;  %v393_v58 = vmul.f32 %v9059_v4, %v9072_v2  ;;  %v9099_v4 = vld [vmem:[#allocation31_spill] sm:$0xff] }
 0x1d3   : > { %9094 = vst [vmem:[#allocation47_spill] sm:$0xff] %v7098_v29  ;;  %v493_v60 = vmul.f32 %v9095_v26, %v5115_v12  ;;  %4373 = vmatmul.mubr.msk.f32.gmra.mrb[8].mxu0 %vm2972_vm0, %v2941_v14  ;;  %v1733_v30 = vadd.f32 %v1701_v51, %v1633_v17  ;;  %v9096_v63 = vld [vmem:[#allocation34_spill] sm:$0xff]  ;;  %v2106_v11 = vmul.f32 %v9097_v61, %v9074_v13  ;;  %v9100_v26 = vld [vmem:[#allocation41_spill] sm:$0xff]  ;;  %v9101_v17 = vld [vmem:[#allocation71_spill] sm:$0xff] }
 0x1d4   : > { %v2003_v3 = vmul.f32 %v7098_v29, %v9096_v63  ;;  %v9098_v42 = vld [vmem:[#allocation54_spill] sm:$0xff]  ;;  %v2455_v48 = vadd.f32 %v2423_v1, %v2353_v59  ;;  %v1144_v10 = vadd.f32 %v1112_v54, %v1044_v35  ;;  %v425_v53 = vadd.f32 %v393_v58, %v325_v43  ;;  %v9103_v35 = vld [vmem:[#allocation59_spill] sm:$0xff] }
 0x1d5   : > { %v1315_v38 = vmul.f32 %v9098_v42, %v8906_v22  ;;  %v595_v28 = vmul.f32 %v9099_v4, %v5122_v16  ;;  %v1835_v37 = vadd.f32 %v1803_v19, %v1733_v30  ;;  %v2206_v14 = vmul.f32 %v9100_v26, %v5224_v18  ;;  %v9102_v1 = vld [vmem:[#allocation66_spill] sm:$0xff] }
 0x1d6   : > { %v2306_v51 = vmul.f32 %v6722_v5, %v5238_v33  ;;  %v1415_v29 = vmul.f32 %v9101_v17, %v5187_v52  ;;  %v2555_v61 = vadd.f32 %v2523_v50, %v2455_v48  ;;  %v1247_v13 = vadd.f32 %v1215_v32, %v1144_v10  ;;  %v9104_v32 = vld [vmem:[#allocation55_spill] sm:$0xff]  ;;  %v9105_v10 = vld [vmem:[#allocation48_spill] sm:$0xff] }
 0x1d7   : > { %v525_v42 = vadd.f32 %v493_v60, %v425_v53  ;;  %v695_v59 = vmul.f32 %v9102_v1, %v5130_v21  ;;  %v1935_v54 = vadd.f32 %v1903_v46, %v1835_v37  ;;  %v2408_v19 = vmul.f32 %v6878_v62, %v5283_v45 }
 0x1d8   : > { %v2508_v43 = vmul.f32 %v6897_v8, %v5286_v39  ;;  %v1517_v5 = vmul.f32 %v9103_v35, %v8983_v20  ;;  %v2655_v58 = vadd.f32 %v2623_v34, %v2555_v61  ;;  %v1347_v30 = vadd.f32 %v1315_v38, %v1247_v13  ;;  %v7138_v13 = vld [vmem:[%s5101_s30 + $0xf0] sm:$0xff] }
 0x1d9   : > { %v627_v50 = vadd.f32 %v595_v28, %v525_v42  ;;  %v795_v60 = vmul.f32 %v9104_v32, %v5138_v25  ;;  %v2035_v48 = vadd.f32 %v2003_v3, %v1935_v54  ;;  %v2608_v37 = vmul.f32 %v6918_v27, %v5292_v44  ;;  %9106 = vst [vmem:[#allocation73_spill] sm:$0xff] %v7138_v13  ;;  %v9107_v42 = vld [vmem:[#allocation67_spill] sm:$0xff] }
 0x1da   : > { %v7133_v46 = vmul.f32 %v7044_v36, %v5295_v49  ;;  %v1617_v34 = vmul.f32 %v9105_v10, %v8989_v7  ;;  %v2757_v28 = vadd.f32 %v7048_v15, %v2655_v58  ;;  %v1447_v38 = vadd.f32 %v1415_v29, %v1347_v30  ;;  %v7154_v10 = vld [vmem:[%s5101_s30 + $0xf1] sm:$0xff]  ;;  %v7164_v58 = vld [vmem:[%s5101_s30 + $0x2c2] sm:$0xff] }
 0x1db   : > { %v727_v53 = vadd.f32 %v695_v59, %v627_v50  ;;  %v897_v3 = vmul.f32 %v7138_v13, %v8987_v31  ;;  %v2138_v26 = vadd.f32 %v2106_v11, %v2035_v48  ;;  %v7145_v17 = vmul.f32 %v7066_v47, %v8986_v0  ;;  %9108 = vst [vmem:[#allocation52_spill] sm:$0xff] %v7154_v10  ;;  %v7158_v59 = vld [vmem:[%s5101_s30 + $0x2c0] sm:$0xff] }
 0x1dc   : > { %v7149_v61 = vmul.f32 %v7086_v40, %v8766_v56  ;;  %v1717_v54 = vmul.f32 %v9107_v42, %v8992_v9  ;;  %v2857_v15 = vadd.f32 %v7058_v6, %v2757_v28  ;;  %v1549_v29 = vadd.f32 %v1517_v5, %v1447_v38  ;;  %9109 = vst [vmem:[#allocation51_spill] sm:$0xff] %v7158_v59  ;;  %v7161_v11 = vld [vmem:[%s5101_s30 + $0x2c1] sm:$0xff]  ;;  %v7175_v5 = vld [vmem:[%s5101_s30 + $0xf2] sm:$0xff]  ;;  %v9113_v28 = vld [vmem:[#allocation23_spill] sm:$0xff] }
 0x1dd   : > { %9110 = vst [vmem:[#allocation60_spill] sm:$0xff] %v7161_v11  ;;  %9111 = vst [vmem:[#allocation72_spill] sm:$0xff] %v7164_v58  ;;  %v827_v30 = vadd.f32 %v795_v60, %v727_v53  ;;  %v997_v50 = vmul.f32 %v7154_v10, %v9030_v55  ;;  %v2238_v48 = vadd.f32 %v2206_v14, %v2138_v26 }
 0x1de   : > { %v1819_v13 = vmul.f32 %v7158_v59, %v9031_v24  ;;  %v1919_v42 = vmul.f32 %v7161_v11, %v8882_v41  ;;  %v2019_v6 = vmul.f32 %v7164_v58, %v9096_v63  ;;  %9112 = vst [vmem:[#allocation46_spill] sm:$0xff] %v7175_v5  ;;  %v2957_v38 = vadd.f32 %v9113_v28, %v2857_v15  ;;  %v9114_v59 = vld [vmem:[#allocation35_spill] sm:$0xff] }
 0x1df   : > { %v1649_v32 = vadd.f32 %v1617_v34, %v1549_v29  ;;  %v929_v35 = vadd.f32 %v897_v3, %v827_v30  ;;  %v1097_v60 = vmul.f32 %v7175_v5, %v8839_v23  ;;  %v2338_v53 = vadd.f32 %v2306_v51, %v2238_v48  ;;  %v9115_v15 = vld [vmem:[#allocation39_spill] sm:$0xff]  ;;  %v9116_v29 = vld [vmem:[#allocation25_spill] sm:$0xff]  ;;  %v9118_v48 = vld [vmem:[#allocation38_spill] sm:$0xff] }
 0x1e0   : > { %v341_v14 = vmul.f32 %v6878_v62, %v9071_v57  ;;  %v409_v26 = vmul.f32 %v6897_v8, %v9072_v2  ;;  %v509_v11 = vmul.f32 %v6918_v27, %v5115_v12  ;;  %4397 = vmatmul.mubr.msk.f32.gmra.mrb[8].mxu1 %vm2972_vm0, %v2957_v38  ;;  %v2122_v34 = vmul.f32 %v9115_v15, %v9114_v59  ;;  %v9117_v30 = vld [vmem:[#allocation21_spill] sm:$0xff]  ;;  %v9120_v15 = vld [vmem:[#allocation58_spill] sm:$0xff] }
 0x1e1   : > { %v1749_v58 = vadd.f32 %v1717_v54, %v1649_v32  ;;  %v1029_v3 = vadd.f32 %v997_v50, %v929_v35  ;;  %v1200_v28 = vmul.f32 %v9117_v30, %v9116_v29  ;;  %v2440_v51 = vadd.f32 %v2408_v19, %v2338_v53  ;;  %v9119_v38 = vld [vmem:[#allocation29_spill] sm:$0xff]  ;;  %v9121_v19 = vld [vmem:[#allocation68_spill] sm:$0xff] }
 0x1e2   : > { %v2222_v5 = vmul.f32 %v9118_v48, %v5224_v18  ;;  %v441_v10 = vadd.f32 %v409_v26, %v341_v14  ;;  %v611_v8 = vmul.f32 %v7044_v36, %v5122_v16  ;;  %v2322_v32 = vmul.f32 %v9119_v38, %v5238_v33 }
 0x1e3   : > { %v1851_v27 = vadd.f32 %v1819_v13, %v1749_v58  ;;  %v1129_v54 = vadd.f32 %v1097_v60, %v1029_v3  ;;  %v1300_v35 = vmul.f32 %v9120_v15, %v8906_v22  ;;  %v2540_v50 = vadd.f32 %v2508_v43, %v2440_v51  ;;  %v9122_v13 = vld [vmem:[#allocation43_spill] sm:$0xff]  ;;  %v9123_v60 = vld [vmem:[#allocation30_spill] sm:$0xff] }
 0x1e4   : > { %v2424_v53 = vmul.f32 %v9121_v19, %v5283_v45  ;;  %v541_v30 = vadd.f32 %v509_v11, %v441_v10  ;;  %v711_v14 = vmul.f32 %v7066_v47, %v5130_v21  ;;  %v2524_v58 = vmul.f32 %v9122_v13, %v5286_v39  ;;  %v9124_v43 = vld [vmem:[#allocation27_spill] sm:$0xff]  ;;  %v7210_v15 = vld [vmem:[%s5101_s30 + $0x360] sm:$0xff] }
 0x1e5   : > { %v1951_v26 = vadd.f32 %v1919_v42, %v1851_v27  ;;  %v1232_v48 = vadd.f32 %v1200_v28, %v1129_v54  ;;  %v1400_v3 = vmul.f32 %v9123_v60, %v5187_v52  ;;  %v2640_v38 = vadd.f32 %v2608_v37, %v2540_v50  ;;  %9125 = vst [vmem:[#allocation49_spill] sm:$0xff] %v7210_v15  ;;  %v7219_v28 = vld [vmem:[%s5101_s30 + $0x361] sm:$0xff]  ;;  %v7224_v60 = vld [vmem:[%s5101_s30 + $0x230] sm:$0xff] }
 0x1e6   : > { %v2624_v51 = vmul.f32 %v9124_v43, %v5292_v44  ;;  %v643_v10 = vadd.f32 %v611_v8, %v541_v30  ;;  %v811_v11 = vmul.f32 %v7086_v40, %v5138_v25  ;;  %v7216_v42 = vmul.f32 %v7210_v15, %v5295_v49  ;;  %9126 = vst [vmem:[#allocation70_spill] sm:$0xff] %v7219_v28  ;;  %v9127_v37 = vld [vmem:[#allocation22_spill] sm:$0xff]  ;;  %v7243_v13 = vld [vmem:[%s5101_s30 + $0x231] sm:$0xff] }
 0x1e7   : > { %v2051_v27 = vadd.f32 %v2019_v6, %v1951_v26  ;;  %v1332_v54 = vadd.f32 %v1300_v35, %v1232_v48  ;;  %v1502_v50 = vmul.f32 %v9127_v37, %v8983_v20  ;;  %v2742_v8 = vadd.f32 %v7133_v46, %v2640_v38  ;;  %v7232_v6 = vld [vmem:[%s5101_s30 + $0x362] sm:$0xff]  ;;  %v9129_v46 = vld [vmem:[#allocation32_spill] sm:$0xff]  ;;  %9130 = vst [vmem:[#allocation26_spill] sm:$0xff] %v7243_v13 }
 0x1e8   : > { %v7229_v30 = vmul.f32 %v7219_v28, %v8986_v0  ;;  %9128 = vst [vmem:[#allocation24_spill] sm:$0xff] %v7232_v6  ;;  %v743_v26 = vadd.f32 %v711_v14, %v643_v10  ;;  %v913_v15 = vmul.f32 %v7224_v60, %v8987_v31  ;;  %v7238_v48 = vmul.f32 %v7232_v6, %v8766_v56  ;;  %v9131_v14 = vld [vmem:[#allocation47_spill] sm:$0xff] }
 0x1e9   : > { %v2154_v35 = vadd.f32 %v2122_v34, %v2051_v27  ;;  %v1432_v43 = vadd.f32 %v1400_v3, %v1332_v54  ;;  %v1602_v38 = vmul.f32 %v9129_v46, %v8989_v7  ;;  %v2842_v28 = vadd.f32 %v7145_v17, %v2742_v8  ;;  %v7249_v19 = vld [vmem:[%s5101_s30 + $0x190] sm:$0xff] }
 0x1ea   : > { %v1702_v10 = vmul.f32 %v9131_v14, %v8992_v9  ;;  %9132 = vst [vmem:[#allocation74_spill] sm:$0xff] %v7249_v19  ;;  %v7252_v37 = vld [vmem:[%s5101_s30 + $0x191] sm:$0xff]  ;;  %v843_v34 = vadd.f32 %v811_v11, %v743_v26  ;;  %v1013_v27 = vmul.f32 %v7243_v13, %v9030_v55  ;;  %v1804_v54 = vmul.f32 %v7249_v19, %v9031_v24 }
 0x1eb   : > { %9133 = vst [vmem:[#allocation33_spill] sm:$0xff] %v7252_v37  ;;  %v2254_v6 = vadd.f32 %v2222_v5, %v2154_v35  ;;  %v1534_v3 = vadd.f32 %v1502_v50, %v1432_v43  ;;  %v1904_v46 = vmul.f32 %v7252_v37, %v8882_v41  ;;  %v7261_v17 = vld [vmem:[%s5101_s30 + $0x192] sm:$0xff]  ;;  %v2942_v14 = vadd.f32 %v7149_v61, %v2842_v28 }
 0x1ec   : > { %9134 = vst [vmem:[#allocation50_spill] sm:$0xff] %v7261_v17  ;;  %v7264_v8 = vld [vmem:[%s5101_s30 + $0x232] sm:$0xff]  ;;  %v2004_v11 = vmul.f32 %v7261_v17, %v9096_v63  ;;  %v945_v26 = vadd.f32 %v913_v15, %v843_v34  ;;  %v326_v35 = vmul.f32 %v9099_v4, %v9071_v57  ;;  %v394_v37 = vmul.f32 %v9102_v1, %v9072_v2  ;;  %v9135_v17 = vld [vmem:[#allocation59_spill] sm:$0xff]  ;;  %v9137_v4 = vld [vmem:[#allocation73_spill] sm:$0xff] }
 0x1ed   : > { %v1113_v5 = vmul.f32 %v7264_v8, %v8839_v23  ;;  %v2354_v43 = vadd.f32 %v2322_v32, %v2254_v6  ;;  %v1634_v50 = vadd.f32 %v1602_v38, %v1534_v3  ;;  %4375 = vmatprep.mubr.msk.f32.mxu0 %vm2972_vm0, %v2942_v14  ;;  %v2107_v61 = vmul.f32 %v6878_v62, %v9114_v59  ;;  %v9136_v34 = vld [vmem:[#allocation55_spill] sm:$0xff]  ;;  %v9139_v14 = vld [vmem:[#allocation40_spill] sm:$0xff] }
 0x1ee   : > { %v1045_v28 = vadd.f32 %v1013_v27, %v945_v26  ;;  %v1216_v15 = vmul.f32 %v9135_v17, %v9116_v29  ;;  %v494_v19 = vmul.f32 %v9136_v34, %v5115_v12  ;;  %v426_v38 = vadd.f32 %v394_v37, %v326_v35  ;;  %v9138_v1 = vld [vmem:[#allocation63_spill] sm:$0xff]  ;;  %v9140_v27 = vld [vmem:[#allocation48_spill] sm:$0xff] }
 0x1ef   : > { %v2456_v32 = vadd.f32 %v2424_v53, %v2354_v43  ;;  %v1734_v6 = vadd.f32 %v1702_v10, %v1634_v50  ;;  %v596_v3 = vmul.f32 %v9137_v4, %v5122_v16  ;;  %v2207_v2 = vmul.f32 %v9138_v1, %v5224_v18  ;;  %v9141_v53 = vld [vmem:[#allocation52_spill] sm:$0xff]  ;;  %v9142_v35 = vld [vmem:[#allocation67_spill] sm:$0xff] }
 0x1f0   : > { %v2307_v57 = vmul.f32 %v9139_v14, %v5238_v33  ;;  %v1145_v62 = vadd.f32 %v1113_v5, %v1045_v28  ;;  %v1316_v26 = vmul.f32 %v9140_v27, %v8906_v22  ;;  %v526_v34 = vadd.f32 %v494_v19, %v426_v38  ;;  %v9144_v38 = vld [vmem:[#allocation51_spill] sm:$0xff] }
 0x1f1   : > { %v2556_v17 = vadd.f32 %v2524_v58, %v2456_v32  ;;  %v1836_v59 = vadd.f32 %v1804_v54, %v1734_v6  ;;  %v696_v37 = vmul.f32 %v9141_v53, %v5130_v21  ;;  %v2409_v10 = vmul.f32 %v7044_v36, %v5283_v45  ;;  %v9143_v54 = vld [vmem:[#allocation46_spill] sm:$0xff] }
 0x1f2   : > { %v2509_v43 = vmul.f32 %v7066_v47, %v5286_v39  ;;  %v1248_v50 = vadd.f32 %v1216_v15, %v1145_v62  ;;  %v1416_v5 = vmul.f32 %v9142_v35, %v5187_v52  ;;  %v628_v58 = vadd.f32 %v596_v3, %v526_v34  ;;  %v9146_v34 = vld [vmem:[#allocation60_spill] sm:$0xff] }
 0x1f3   : > { %v2656_v28 = vadd.f32 %v2624_v51, %v2556_v17  ;;  %v1936_v1 = vadd.f32 %v1904_v46, %v1836_v59  ;;  %v796_v19 = vmul.f32 %v9143_v54, %v5138_v25  ;;  %v2609_v32 = vmul.f32 %v7086_v40, %v5292_v44  ;;  %v7309_v51 = vld [vmem:[%s5101_s30 + $0x100] sm:$0xff]  ;;  %v7329_v35 = vld [vmem:[%s5101_s30 + $0x2d0] sm:$0xff] }
 0x1f4   : > { %v7304_v6 = vmul.f32 %v7224_v60, %v5295_v49  ;;  %v1348_v15 = vadd.f32 %v1316_v26, %v1248_v50  ;;  %v1518_v14 = vmul.f32 %v9144_v38, %v8983_v20  ;;  %9145 = vst [vmem:[#allocation53_spill] sm:$0xff] %v7309_v51  ;;  %v728_v3 = vadd.f32 %v696_v37, %v628_v58 }
 0x1f5   : > { %v2758_v59 = vadd.f32 %v7216_v42, %v2656_v28  ;;  %v2036_v46 = vadd.f32 %v2004_v11, %v1936_v1  ;;  %v898_v62 = vmul.f32 %v7309_v51, %v8987_v31  ;;  %v7316_v27 = vmul.f32 %v7243_v13, %v8986_v0  ;;  %v7325_v42 = vld [vmem:[%s5101_s30 + $0x101] sm:$0xff]  ;;  %9148 = vst [vmem:[#allocation28_spill] sm:$0xff] %v7329_v35  ;;  %v7332_v28 = vld [vmem:[%s5101_s30 + $0x2d1] sm:$0xff] }
 0x1f6   : > { %v7320_v26 = vmul.f32 %v7264_v8, %v8766_v56  ;;  %v1448_v17 = vadd.f32 %v1416_v5, %v1348_v15  ;;  %v1618_v50 = vmul.f32 %v9146_v34, %v8989_v7  ;;  %9147 = vst [vmem:[#allocation37_spill] sm:$0xff] %v7325_v42  ;;  %9149 = vst [vmem:[#allocation69_spill] sm:$0xff] %v7332_v28  ;;  %v9150_v5 = vld [vmem:[#allocation72_spill] sm:$0xff] }
 0x1f7   : > { %v2858_v11 = vadd.f32 %v7229_v30, %v2758_v59  ;;  %v2139_v37 = vadd.f32 %v2107_v61, %v2036_v46  ;;  %v828_v1 = vadd.f32 %v796_v19, %v728_v3  ;;  %v998_v58 = vmul.f32 %v7325_v42, %v9030_v55  ;;  %v7343_v30 = vld [vmem:[%s5101_s30 + $0x102] sm:$0xff]  ;;  %v7347_v46 = vld [vmem:[%s5101_s30 + $0x2d2] sm:$0xff]  ;;  %v9153_v42 = vld [vmem:[#allocation19_spill] sm:$0xff] }
 0x1f8   : > { %v1550_v51 = vadd.f32 %v1518_v14, %v1448_v17  ;;  %v1718_v15 = vmul.f32 %v9150_v5, %v8992_v9  ;;  %v1820_v34 = vmul.f32 %v7329_v35, %v9031_v24  ;;  %v1920_v54 = vmul.f32 %v7332_v28, %v8882_v41  ;;  %9151 = vst [vmem:[#allocation62_spill] sm:$0xff] %v7343_v30  ;;  %v9154_v5 = vld [vmem:[#allocation20_spill] sm:$0xff] }
 0x1f9   : > { %v2958_v61 = vadd.f32 %v7238_v48, %v2858_v11  ;;  %v2239_v59 = vadd.f32 %v2207_v2, %v2139_v37  ;;  %9152 = vst [vmem:[#allocation65_spill] sm:$0xff] %v7347_v46  ;;  %v930_v19 = vadd.f32 %v898_v62, %v828_v1  ;;  %v1098_v14 = vmul.f32 %v7343_v30, %v8839_v23  ;;  %v9155_v11 = vld [vmem:[#allocation22_spill] sm:$0xff]  ;;  %v9157_v1 = vld [vmem:[#allocation68_spill] sm:$0xff] }
 0x1fa   : > { %v1650_v3 = vadd.f32 %v1618_v50, %v1550_v51  ;;  %v2020_v17 = vmul.f32 %v7347_v46, %v9096_v63  ;;  %v342_v35 = vmul.f32 %v7044_v36, %v9153_v42  ;;  %v410_v28 = vmul.f32 %v7066_v47, %v9154_v5  ;;  %v9156_v50 = vld [vmem:[#allocation35_spill] sm:$0xff] }
 0x1fb   : > { %4399 = vmatprep.mubr.msk.f32.mxu1 %vm2972_vm0, %v2958_v61  ;;  %v2339_v48 = vadd.f32 %v2307_v57, %v2239_v59  ;;  %v1030_v2 = vadd.f32 %v998_v58, %v930_v19  ;;  %v1201_v62 = vmul.f32 %v9155_v11, %v9116_v29  ;;  %v510_v37 = vmul.f32 %v7086_v40, %v5115_v12  ;;  %v9158_v47 = vld [vmem:[#allocation43_spill] sm:$0xff]  ;;  %v9159_v58 = vld [vmem:[#allocation32_spill] sm:$0xff] }
 0x1fc   : > { %v1750_v51 = vadd.f32 %v1718_v15, %v1650_v3  ;;  %v2123_v46 = vmul.f32 %v9157_v1, %v9156_v50  ;;  %v442_v30 = vadd.f32 %v410_v28, %v342_v35  ;;  %v612_v36 = vmul.f32 %v7224_v60, %v5122_v16  ;;  %v9160_v11 = vld [vmem:[#allocation27_spill] sm:$0xff] }
 0x1fd   : > { %v2441_v63 = vadd.f32 %v2409_v10, %v2339_v48  ;;  %v2223_v61 = vmul.f32 %v9158_v47, %v5224_v18  ;;  %v1130_v57 = vadd.f32 %v1098_v14, %v1030_v2  ;;  %v1301_v59 = vmul.f32 %v9159_v58, %v8906_v22  ;;  %v9161_v10 = vld [vmem:[#allocation49_spill] sm:$0xff]  ;;  %v9162_v47 = vld [vmem:[#allocation47_spill] sm:$0xff] }
 0x1fe   : > { %v1852_v19 = vadd.f32 %v1820_v34, %v1750_v51  ;;  %v2323_v15 = vmul.f32 %v9160_v11, %v5238_v33  ;;  %v542_v3 = vadd.f32 %v510_v37, %v442_v30  ;;  %v712_v35 = vmul.f32 %v7243_v13, %v5130_v21  ;;  %v9163_v34 = vld [vmem:[#allocation70_spill] sm:$0xff]  ;;  %v7384_v37 = vpop.f32.mrb[0].mxu0 }
 0x1ff   : > { %v2541_v28 = vadd.f32 %v2509_v43, %v2441_v63  ;;  %v2425_v48 = vmul.f32 %v9161_v10, %v5283_v45  ;;  %v1233_v1 = vadd.f32 %v1201_v62, %v1130_v57  ;;  %v1401_v14 = vmul.f32 %v9162_v47, %v5187_v52  ;;  %9164 = vst [vmem:[#allocation61_spill] sm:$0xff] %v7384_v37  ;;  %v7386_v63 = vpop.f32.mrb[0].mxu1  ;;  %v9166_v62 = vld [vmem:[#allocation24_spill] sm:$0xff]  ;;  %v9168_v11 = vld [vmem:[#allocation74_spill] sm:$0xff]  ;;  %v7400_v47 = vpop.f32.mrb[1].mxu0 }
 0x200   : > { %v1952_v2 = vadd.f32 %v1920_v54, %v1852_v19  ;;  %v7380_v51 = vmul.f32 %v9163_v34, %v5286_v39  ;;  %v644_v58 = vadd.f32 %v612_v36, %v542_v3  ;;  %v812_v30 = vmul.f32 %v7264_v8, %v5138_v25  ;;  %9165 = vst [vmem:[#allocation56_spill] sm:$0xff] %v7386_v63  ;;  %v7393_v54 = vld [vmem:[%s5101_s30 + $0x370] sm:$0xff]  ;;  %v7398_v3 = vld [vmem:[%s5101_s30 + $0x240] sm:$0xff]  ;;  %v7402_v37 = vpop.f32.mrb[1].mxu1 }
 0x201   : > { %v2641_v43 = vadd.f32 %v2609_v32, %v2541_v28  ;;  %v7390_v57 = vmul.f32 %v9166_v62, %v5292_v44  ;;  %9167 = vst [vmem:[#allocation75_spill] sm:$0xff] %v7393_v54  ;;  %v1333_v19 = vadd.f32 %v1301_v59, %v1233_v1  ;;  %v1503_v36 = vmul.f32 %v9168_v11, %v8983_v20  ;;  %v7409_v28 = vld [vmem:[%s5101_s30 + $0x371] sm:$0xff]  ;;  %v7424_v34 = vld [vmem:[%s5101_s30 + $0x241] sm:$0xff] }
 0x202   : > { %9169 = vst [vmem:[#allocation36_spill] sm:$0xff] %v7398_v3  ;;  %9170 = vst [vmem:[#allocation54_spill] sm:$0xff] %v7400_v47  ;;  %v2052_v63 = vadd.f32 %v2020_v17, %v1952_v2  ;;  %v7406_v32 = vmul.f32 %v7393_v54, %v5295_v49  ;;  %v744_v62 = vadd.f32 %v712_v35, %v644_v58  ;;  %v9174_v2 = vld [vmem:[#allocation33_spill] sm:$0xff] }
 0x203   : > { %9171 = vst [vmem:[#allocation31_spill] sm:$0xff] %v7402_v37  ;;  %9172 = vst [vmem:[#allocation41_spill] sm:$0xff] %v7409_v28  ;;  %v914_v59 = vmul.f32 %v7398_v3, %v8987_v31  ;;  %v2743_v1 = vadd.f32 %v7304_v6, %v2641_v43  ;;  %v7416_v47 = vmul.f32 %v7409_v28, %v8986_v0  ;;  %v7419_v37 = vld [vmem:[%s5101_s30 + $0x372] sm:$0xff]  ;;  %v7431_v11 = vld [vmem:[%s5101_s30 + $0x1a0] sm:$0xff] }
 0x204   : > { %9173 = vst [vmem:[#allocation71_spill] sm:$0xff] %v7419_v37  ;;  %v1433_v17 = vadd.f32 %v1401_v14, %v1333_v19  ;;  %v1603_v54 = vmul.f32 %v9174_v2, %v8989_v7  ;;  %9175 = vst [vmem:[#allocation66_spill] sm:$0xff] %v7424_v34  ;;  %v2155_v35 = vadd.f32 %v2123_v46, %v2052_v63  ;;  %v9178_v19 = vld [vmem:[#allocation50_spill] sm:$0xff] }
 0x205   : > { %v7428_v58 = vmul.f32 %v7419_v37, %v8766_v56  ;;  %9177 = vst [vmem:[#allocation39_spill] sm:$0xff] %v7431_v11  ;;  %v844_v6 = vadd.f32 %v812_v30, %v744_v62  ;;  %v1014_v43 = vmul.f32 %v7424_v34, %v9030_v55  ;;  %v2843_v28 = vadd.f32 %v7316_v27, %v2743_v1  ;;  %v7441_v63 = vld [vmem:[%s5101_s30 + $0x1a1] sm:$0xff] }
 0x206   : > { %v1535_v14 = vadd.f32 %v1503_v36, %v1433_v17  ;;  %v1703_v2 = vmul.f32 %v9178_v19, %v8992_v9  ;;  %v1805_v46 = vmul.f32 %v7431_v11, %v9031_v24  ;;  %9179 = vst [vmem:[#allocation21_spill] sm:$0xff] %v7441_v63  ;;  %v7444_v37 = vld [vmem:[%s5101_s30 + $0x242] sm:$0xff]  ;;  %v2255_v10 = vadd.f32 %v2223_v61, %v2155_v35 }
 0x207   : > { %9176 = vst [vmem:[#allocation23_spill] sm:$0xff] %v7428_v58  ;;  %v1905_v30 = vmul.f32 %v7441_v63, %v8882_v41  ;;  %v946_v62 = vadd.f32 %v914_v59, %v844_v6  ;;  %v1114_v58 = vmul.f32 %v7444_v37, %v8839_v23  ;;  %v2943_v27 = vadd.f32 %v7320_v26, %v2843_v28  ;;  %v7456_v19 = vld [vmem:[%s5101_s30 + $0x1a2] sm:$0xff]  ;;  %v9186_v63 = vld [vmem:[#allocation53_spill] sm:$0xff] }
 0x208   : > { %v1635_v36 = vadd.f32 %v1603_v54, %v1535_v14  ;;  %v1217_v1 = vmul.f32 %v9144_v38, %v9116_v29  ;;  %v327_v17 = vmul.f32 %v9137_v4, %v9153_v42  ;;  %v2355_v11 = vadd.f32 %v2323_v15, %v2255_v10  ;;  %9180 = vst [vmem:[#allocation38_spill] sm:$0xff] %v7456_v19  ;;  %v9181_v59 = vld [vmem:[#allocation46_spill] sm:$0xff]  ;;  %v9183_v38 = vld [vmem:[#allocation57_spill] sm:$0xff]  ;;  %v9184_v4 = vld [vmem:[#allocation60_spill] sm:$0xff]  ;;  %v7469_v10 = vpop.f32.mrb[2].mxu0 }
 0x209   : > { %v1046_v61 = vadd.f32 %v1014_v43, %v946_v62  ;;  %v395_v35 = vmul.f32 %v9141_v53, %v9154_v5  ;;  %v495_v6 = vmul.f32 %v9181_v59, %v5115_v12  ;;  %4376 = vmatmul.mubr.msk.f32.gmra.mrb[10].mxu0 %vm2972_vm0, %v2943_v27  ;;  %v9182_v54 = vld [vmem:[#allocation34_spill] sm:$0xff]  ;;  %v2108_v14 = vmul.f32 %v9183_v38, %v9156_v50  ;;  %v7473_v29 = vpop.f32.mrb[3].mxu0  ;;  %v9188_v27 = vld [vmem:[#allocation64_spill] sm:$0xff] }
 0x20a   : > { %v1735_v26 = vadd.f32 %v1703_v2, %v1635_v36  ;;  %v2005_v28 = vmul.f32 %v7456_v19, %v9182_v54  ;;  %v1317_v15 = vmul.f32 %v9184_v4, %v8906_v22  ;;  %9185 = vst [vmem:[#allocation29_spill] sm:$0xff] %v7469_v10  ;;  %v2457_v43 = vadd.f32 %v2425_v48, %v2355_v11  ;;  %v9189_v19 = vld [vmem:[#allocation72_spill] sm:$0xff] }
 0x20b   : > { %v1146_v62 = vadd.f32 %v1114_v58, %v1046_v61  ;;  %v427_v53 = vadd.f32 %v395_v35, %v327_v17  ;;  %v597_v59 = vmul.f32 %v9186_v63, %v5122_v16  ;;  %9187 = vst [vmem:[#allocation58_spill] sm:$0xff] %v7473_v29  ;;  %v2208_v36 = vmul.f32 %v9188_v27, %v5224_v18  ;;  %v9190_v58 = vld [vmem:[#allocation37_spill] sm:$0xff] }
 0x20c   : > { %v1837_v2 = vadd.f32 %v1805_v46, %v1735_v26  ;;  %v2308_v38 = vmul.f32 %v7086_v40, %v5238_v33  ;;  %v1417_v4 = vmul.f32 %v9189_v19, %v5187_v52  ;;  %v2557_v10 = vadd.f32 %v7380_v51, %v2457_v43  ;;  %v9191_v40 = vld [vmem:[#allocation28_spill] sm:$0xff]  ;;  %v9195_v29 = vld [vmem:[#allocation65_spill] sm:$0xff] }
 0x20d   : > { %v1249_v48 = vadd.f32 %v1217_v1, %v1146_v62  ;;  %v527_v11 = vadd.f32 %v495_v6, %v427_v53  ;;  %v697_v17 = vmul.f32 %v9190_v58, %v5130_v21  ;;  %v2410_v46 = vmul.f32 %v7224_v60, %v5283_v45  ;;  %v9192_v1 = vld [vmem:[#allocation62_spill] sm:$0xff]  ;;  %v9193_v53 = vld [vmem:[#allocation69_spill] sm:$0xff] }
 0x20e   : > { %v1937_v61 = vadd.f32 %v1905_v30, %v1837_v2  ;;  %v2510_v35 = vmul.f32 %v7243_v13, %v5286_v39  ;;  %v1519_v26 = vmul.f32 %v9191_v40, %v8983_v20  ;;  %v2657_v19 = vadd.f32 %v7390_v57, %v2557_v10 }
 0x20f   : > { %v1349_v27 = vadd.f32 %v1317_v15, %v1249_v48  ;;  %v629_v51 = vadd.f32 %v597_v59, %v527_v11  ;;  %v797_v6 = vmul.f32 %v9192_v1, %v5138_v25  ;;  %v2610_v30 = vmul.f32 %v7264_v8, %v5292_v44  ;;  %v7502_v15 = vld [vmem:[%s5101_s30 + $0x110] sm:$0xff] }
 0x210   : > { %v2037_v43 = vadd.f32 %v2005_v28, %v1937_v61  ;;  %v7497_v62 = vmul.f32 %v7398_v3, %v5295_v49  ;;  %v1619_v57 = vmul.f32 %v9193_v53, %v8989_v7  ;;  %9194 = vst [vmem:[#allocation30_spill] sm:$0xff] %v7502_v15  ;;  %v2759_v10 = vadd.f32 %v7406_v32, %v2657_v19  ;;  %v7518_v1 = vld [vmem:[%s5101_s30 + $0x111] sm:$0xff]  ;;  %v7528_v19 = vld [vmem:[%s5101_s30 + $0x2e2] sm:$0xff] }
 0x211   : > { %v1449_v59 = vadd.f32 %v1417_v4, %v1349_v27  ;;  %v729_v2 = vadd.f32 %v697_v17, %v629_v51  ;;  %v899_v28 = vmul.f32 %v7502_v15, %v8987_v31  ;;  %v7509_v11 = vmul.f32 %v7424_v34, %v8986_v0  ;;  %9196 = vst [vmem:[#allocation59_spill] sm:$0xff] %v7518_v1  ;;  %v7522_v17 = vld [vmem:[%s5101_s30 + $0x2e0] sm:$0xff] }
 0x212   : > { %v2140_v48 = vadd.f32 %v2108_v14, %v2037_v43  ;;  %v7513_v61 = vmul.f32 %v7444_v37, %v8766_v56  ;;  %v1719_v53 = vmul.f32 %v9195_v29, %v8992_v9  ;;  %v2859_v32 = vadd.f32 %v7416_v47, %v2759_v10  ;;  %9197 = vst [vmem:[#allocation55_spill] sm:$0xff] %v7522_v17  ;;  %v7525_v14 = vld [vmem:[%s5101_s30 + $0x2e1] sm:$0xff]  ;;  %v9201_v10 = vld [vmem:[#allocation23_spill] sm:$0xff] }
 0x213   : > { %v1551_v4 = vadd.f32 %v1519_v26, %v1449_v59  ;;  %9198 = vst [vmem:[#allocation73_spill] sm:$0xff] %v7525_v14  ;;  %9199 = vst [vmem:[#allocation63_spill] sm:$0xff] %v7528_v19  ;;  %v829_v27 = vadd.f32 %v797_v6, %v729_v2  ;;  %v999_v51 = vmul.f32 %v7518_v1, %v9030_v55  ;;  %v7539_v26 = vld [vmem:[%s5101_s30 + $0x112] sm:$0xff] }
 0x214   : > { %v2240_v43 = vadd.f32 %v2208_v36, %v2140_v48  ;;  %v1821_v15 = vmul.f32 %v7522_v17, %v9031_v24  ;;  %v1921_v29 = vmul.f32 %v7525_v14, %v8882_v41  ;;  %v2021_v47 = vmul.f32 %v7528_v19, %v9182_v54  ;;  %9200 = vst [vmem:[#allocation40_spill] sm:$0xff] %v7539_v26  ;;  %v7550_v19 = vpop.f32.mrb[2].mxu1 }
 0x215   : > { %v2959_v59 = vadd.f32 %v9201_v10, %v2859_v32  ;;  %v1651_v40 = vadd.f32 %v1619_v57, %v1551_v4  ;;  %v931_v58 = vadd.f32 %v899_v28, %v829_v27  ;;  %v1099_v6 = vmul.f32 %v7539_v26, %v8839_v23  ;;  %9202 = vst [vmem:[#allocation48_spill] sm:$0xff] %v7550_v19  ;;  %v9203_v57 = vld [vmem:[#allocation49_spill] sm:$0xff]  ;;  %v7557_v10 = vpop.f32.mrb[3].mxu1  ;;  %v9207_v26 = vld [vmem:[#allocation70_spill] sm:$0xff] }
 0x216   : > { %v2340_v2 = vadd.f32 %v2308_v38, %v2240_v43  ;;  %v343_v36 = vmul.f32 %v7224_v60, %v9153_v42  ;;  %v411_v48 = vmul.f32 %v7243_v13, %v9154_v5  ;;  %v511_v14 = vmul.f32 %v7264_v8, %v5115_v12  ;;  %v9204_v27 = vld [vmem:[#allocation25_spill] sm:$0xff]  ;;  %v9205_v38 = vld [vmem:[#allocation74_spill] sm:$0xff]  ;;  %9206 = vst [vmem:[#allocation52_spill] sm:$0xff] %v7557_v10 }
 0x217   : > { %4400 = vmatmul.mubr.msk.f32.gmra.mrb[10].mxu1 %vm2972_vm0, %v2959_v59  ;;  %v1751_v32 = vadd.f32 %v1719_v53, %v1651_v40  ;;  %v2124_v28 = vmul.f32 %v9203_v57, %v9156_v50  ;;  %v1031_v4 = vadd.f32 %v999_v51, %v931_v58  ;;  %v1202_v43 = vmul.f32 %v9205_v38, %v9204_v27  ;;  %v9208_v40 = vld [vmem:[#allocation24_spill] sm:$0xff]  ;;  %v9209_v58 = vld [vmem:[#allocation33_spill] sm:$0xff] }
 0x218   : > { %v2442_v17 = vadd.f32 %v2410_v46, %v2340_v2  ;;  %v2224_v1 = vmul.f32 %v9207_v26, %v5224_v18  ;;  %v443_v13 = vadd.f32 %v411_v48, %v343_v36  ;;  %v613_v19 = vmul.f32 %v7398_v3, %v5122_v16  ;;  %v9210_v46 = vld [vmem:[#allocation75_spill] sm:$0xff] }
 0x219   : > { %v1853_v59 = vadd.f32 %v1821_v15, %v1751_v32  ;;  %v2324_v53 = vmul.f32 %v9208_v40, %v5238_v33  ;;  %v1131_v57 = vadd.f32 %v1099_v6, %v1031_v4  ;;  %v1302_v51 = vmul.f32 %v9209_v58, %v8906_v22  ;;  %v9211_v15 = vld [vmem:[#allocation41_spill] sm:$0xff]  ;;  %v9212_v6 = vld [vmem:[#allocation50_spill] sm:$0xff] }
 0x21a   : > { %v2542_v38 = vadd.f32 %v2510_v35, %v2442_v17  ;;  %v2426_v2 = vmul.f32 %v9210_v46, %v5283_v45  ;;  %v543_v10 = vadd.f32 %v511_v14, %v443_v13  ;;  %v713_v26 = vmul.f32 %v7424_v34, %v5130_v21  ;;  %v9213_v35 = vld [vmem:[#allocation71_spill] sm:$0xff]  ;;  %v7578_v58 = vld [vmem:[%s5101_s30 + $0x380] sm:$0xff] }
 0x21b   : > { %v1953_v36 = vadd.f32 %v1921_v29, %v1853_v59  ;;  %v2526_v48 = vmul.f32 %v9211_v15, %v5286_v39  ;;  %v1234_v32 = vadd.f32 %v1202_v43, %v1131_v57  ;;  %v1402_v4 = vmul.f32 %v9212_v6, %v5187_v52  ;;  %9214 = vst [vmem:[#allocation67_spill] sm:$0xff] %v7578_v58  ;;  %v7587_v43 = vld [vmem:[%s5101_s30 + $0x381] sm:$0xff]  ;;  %v7592_v6 = vld [vmem:[%s5101_s30 + $0x250] sm:$0xff] }
 0x21c   : > { %v2642_v40 = vadd.f32 %v2610_v30, %v2542_v38  ;;  %v2626_v17 = vmul.f32 %v9213_v35, %v5292_v44  ;;  %v645_v13 = vadd.f32 %v613_v19, %v543_v10  ;;  %v813_v14 = vmul.f32 %v7444_v37, %v5138_v25  ;;  %9215 = vst [vmem:[#allocation51_spill] sm:$0xff] %v7587_v43  ;;  %v9216_v30 = vld [vmem:[#allocation39_spill] sm:$0xff] }
 0x21d   : > { %v2053_v29 = vadd.f32 %v2021_v47, %v1953_v36  ;;  %v7584_v59 = vmul.f32 %v7578_v58, %v5295_v49  ;;  %v1334_v57 = vadd.f32 %v1302_v51, %v1234_v32  ;;  %v1504_v38 = vmul.f32 %v9216_v30, %v8983_v20  ;;  %v7600_v47 = vld [vmem:[%s5101_s30 + $0x382] sm:$0xff]  ;;  %v7611_v15 = vld [vmem:[%s5101_s30 + $0x251] sm:$0xff] }
 0x21e   : > { %v2744_v19 = vadd.f32 %v7497_v62, %v2642_v40  ;;  %v7597_v10 = vmul.f32 %v7587_v43, %v8986_v0  ;;  %9217 = vst [vmem:[#allocation19_spill] sm:$0xff] %v7600_v47  ;;  %v745_v36 = vadd.f32 %v713_v26, %v645_v13  ;;  %v915_v58 = vmul.f32 %v7592_v6, %v8987_v31  ;;  %v9218_v62 = vld [vmem:[#allocation21_spill] sm:$0xff]  ;;  %v9219_v26 = vld [vmem:[#allocation38_spill] sm:$0xff]  ;;  %v7617_v46 = vld [vmem:[%s5101_s30 + $0x1b0] sm:$0xff] }
 0x21f   : > { %v2156_v51 = vadd.f32 %v2124_v28, %v2053_v29  ;;  %v7606_v32 = vmul.f32 %v7600_v47, %v8766_v56  ;;  %v1434_v35 = vadd.f32 %v1402_v4, %v1334_v57  ;;  %v1604_v40 = vmul.f32 %v9218_v62, %v8989_v7  ;;  %9220 = vst [vmem:[#allocation22_spill] sm:$0xff] %v7617_v46  ;;  %v7620_v30 = vld [vmem:[%s5101_s30 + $0x1b1] sm:$0xff] }
 0x220   : > { %v2844_v43 = vadd.f32 %v7509_v11, %v2744_v19  ;;  %v1704_v13 = vmul.f32 %v9219_v26, %v8992_v9  ;;  %9221 = vst [vmem:[#allocation68_spill] sm:$0xff] %v7620_v30  ;;  %v845_v28 = vadd.f32 %v813_v14, %v745_v36  ;;  %v1015_v29 = vmul.f32 %v7611_v15, %v9030_v55  ;;  %v7629_v11 = vld [vmem:[%s5101_s30 + $0x1b2] sm:$0xff] }
 0x221   : > { %v2256_v47 = vadd.f32 %v2224_v1, %v2156_v51  ;;  %v1536_v4 = vadd.f32 %v1504_v38, %v1434_v35  ;;  %v1806_v57 = vmul.f32 %v7617_v46, %v9031_v24  ;;  %v1906_v62 = vmul.f32 %v7620_v30, %v8882_v41  ;;  %9222 = vst [vmem:[#allocation43_spill] sm:$0xff] %v7629_v11  ;;  %v7632_v19 = vld [vmem:[%s5101_s30 + $0x252] sm:$0xff]  ;;  %v9223_v30 = vld [vmem:[#allocation37_spill] sm:$0xff] }
 0x222   : > { %v2944_v26 = vadd.f32 %v7513_v61, %v2844_v43  ;;  %v2006_v14 = vmul.f32 %v7629_v11, %v9182_v54  ;;  %v947_v36 = vadd.f32 %v915_v58, %v845_v28  ;;  %v1115_v1 = vmul.f32 %v7632_v19, %v8839_v23  ;;  %v9224_v11 = vld [vmem:[#allocation28_spill] sm:$0xff]  ;;  %v9225_v28 = vld [vmem:[#allocation62_spill] sm:$0xff] }
 0x223   : > { %v2356_v35 = vadd.f32 %v2324_v53, %v2256_v47  ;;  %v1636_v38 = vadd.f32 %v1604_v40, %v1536_v4  ;;  %v328_v51 = vmul.f32 %v9186_v63, %v9153_v42  ;;  %v396_v46 = vmul.f32 %v9223_v30, %v9154_v5  ;;  %v9226_v63 = vld [vmem:[#allocation30_spill] sm:$0xff] }
 0x224   : > { %4378 = vmatprep.mubr.msk.f32.mxu0 %vm2972_vm0, %v2944_v26  ;;  %v2109_v61 = vmul.f32 %v7224_v60, %v9156_v50  ;;  %v1047_v43 = vadd.f32 %v1015_v29, %v947_v36  ;;  %v1218_v58 = vmul.f32 %v9224_v11, %v9204_v27  ;;  %v496_v54 = vmul.f32 %v9225_v28, %v5115_v12  ;;  %v9227_v30 = vld [vmem:[#allocation26_spill] sm:$0xff]  ;;  %v9228_v29 = vld [vmem:[#allocation69_spill] sm:$0xff] }
 0x225   : > { %v2458_v53 = vadd.f32 %v2426_v2, %v2356_v35  ;;  %v1736_v47 = vadd.f32 %v1704_v13, %v1636_v38  ;;  %v428_v40 = vadd.f32 %v396_v46, %v328_v51  ;;  %v598_v4 = vmul.f32 %v9226_v63, %v5122_v16  ;;  %v9229_v2 = vld [vmem:[#allocation59_spill] sm:$0xff] }
 0x226   : > { %v2209_v5 = vmul.f32 %v9227_v30, %v5224_v18  ;;  %v2309_v26 = vmul.f32 %v7264_v8, %v5238_v33  ;;  %v1147_v60 = vadd.f32 %v1115_v1, %v1047_v43  ;;  %v1318_v36 = vmul.f32 %v9228_v29, %v8906_v22  ;;  %v9230_v8 = vld [vmem:[#allocation65_spill] sm:$0xff] }
 0x227   : > { %v2558_v11 = vadd.f32 %v2526_v48, %v2458_v53  ;;  %v1838_v50 = vadd.f32 %v1806_v57, %v1736_v47  ;;  %v528_v28 = vadd.f32 %v496_v54, %v428_v40  ;;  %v698_v46 = vmul.f32 %v9229_v2, %v5130_v21  ;;  %v9231_v57 = vld [vmem:[#allocation40_spill] sm:$0xff]  ;;  %v9232_v40 = vld [vmem:[#allocation55_spill] sm:$0xff] }
 0x228   : > { %v2411_v13 = vmul.f32 %v7398_v3, %v5283_v45  ;;  %v2511_v35 = vmul.f32 %v7424_v34, %v5286_v39  ;;  %v1250_v38 = vadd.f32 %v1218_v58, %v1147_v60  ;;  %v1418_v1 = vmul.f32 %v9230_v8, %v5187_v52  ;;  %v7697_v8 = vld [vmem:[%s5101_s30 + $0x2f0] sm:$0xff] }
 0x229   : > { %v2658_v51 = vadd.f32 %v2626_v17, %v2558_v11  ;;  %v1938_v43 = vadd.f32 %v1906_v62, %v1838_v50  ;;  %v630_v48 = vadd.f32 %v598_v4, %v528_v28  ;;  %v798_v54 = vmul.f32 %v9231_v57, %v5138_v25  ;;  %v7677_v17 = vld [vmem:[%s5101_s30 + $0x120] sm:$0xff]  ;;  %9236 = vst [vmem:[#allocation47_spill] sm:$0xff] %v7697_v8 }
 0x22a   : > { %v2611_v53 = vmul.f32 %v7444_v37, %v5292_v44  ;;  %v7672_v47 = vmul.f32 %v7592_v6, %v5295_v49  ;;  %v1350_v58 = vadd.f32 %v1318_v36, %v1250_v38  ;;  %v1520_v30 = vmul.f32 %v9232_v40, %v8983_v20  ;;  %9233 = vst [vmem:[#allocation32_spill] sm:$0xff] %v7677_v17  ;;  %v9234_v28 = vld [vmem:[#allocation73_spill] sm:$0xff] }
 0x22b   : > { %v2760_v50 = vadd.f32 %v7584_v59, %v2658_v51  ;;  %v2038_v62 = vadd.f32 %v2006_v14, %v1938_v43  ;;  %v730_v4 = vadd.f32 %v698_v46, %v630_v48  ;;  %v900_v60 = vmul.f32 %v7677_v17, %v8987_v31  ;;  %v7693_v59 = vld [vmem:[%s5101_s30 + $0x121] sm:$0xff]  ;;  %v7700_v51 = vld [vmem:[%s5101_s30 + $0x2f1] sm:$0xff] }
 0x22c   : > { %v7684_v29 = vmul.f32 %v7611_v15, %v8986_v0  ;;  %v7688_v36 = vmul.f32 %v7632_v19, %v8766_v56  ;;  %v1450_v11 = vadd.f32 %v1418_v1, %v1350_v58  ;;  %v1620_v38 = vmul.f32 %v9234_v28, %v8989_v7  ;;  %9235 = vst [vmem:[#allocation27_spill] sm:$0xff] %v7693_v59  ;;  %v9238_v1 = vld [vmem:[#allocation63_spill] sm:$0xff] }
 0x22d   : > { %v2860_v14 = vadd.f32 %v7597_v10, %v2760_v50  ;;  %v2141_v46 = vadd.f32 %v2109_v61, %v2038_v62  ;;  %9237 = vst [vmem:[#allocation46_spill] sm:$0xff] %v7700_v51  ;;  %v830_v43 = vadd.f32 %v798_v54, %v730_v4  ;;  %v1000_v48 = vmul.f32 %v7693_v59, %v9030_v55  ;;  %v7711_v10 = vld [vmem:[%s5101_s30 + $0x122] sm:$0xff]  ;;  %v7715_v62 = vld [vmem:[%s5101_s30 + $0x2f2] sm:$0xff] }
 0x22e   : > { %v1552_v17 = vadd.f32 %v1520_v30, %v1450_v11  ;;  %v1720_v58 = vmul.f32 %v9238_v1, %v8992_v9  ;;  %v1822_v28 = vmul.f32 %v7697_v8, %v9031_v24  ;;  %v1922_v57 = vmul.f32 %v7700_v51, %v8882_v41  ;;  %9239 = vst [vmem:[#allocation57_spill] sm:$0xff] %v7711_v10  ;;  %v9241_v11 = vld [vmem:[#allocation34_spill] sm:$0xff]  ;;  %v9242_v1 = vld [vmem:[#allocation20_spill] sm:$0xff] }
 0x22f   : > { %v2960_v61 = vadd.f32 %v7606_v32, %v2860_v14  ;;  %v2241_v50 = vadd.f32 %v2209_v5, %v2141_v46  ;;  %9240 = vst [vmem:[#allocation60_spill] sm:$0xff] %v7715_v62  ;;  %v932_v54 = vadd.f32 %v900_v60, %v830_v43  ;;  %v1100_v30 = vmul.f32 %v7711_v10, %v8839_v23  ;;  %v9243_v14 = vld [vmem:[#allocation39_spill] sm:$0xff] }
 0x230   : > { %v1652_v4 = vadd.f32 %v1620_v38, %v1552_v17  ;;  %v2022_v59 = vmul.f32 %v7715_v62, %v9241_v11  ;;  %v344_v8 = vmul.f32 %v7398_v3, %v9153_v42  ;;  %v412_v51 = vmul.f32 %v7424_v34, %v9242_v1  ;;  %v9244_v38 = vld [vmem:[#allocation35_spill] sm:$0xff]  ;;  %v9246_v34 = vld [vmem:[#allocation41_spill] sm:$0xff] }
 0x231   : > { %4402 = vmatprep.mubr.msk.f32.mxu1 %vm2972_vm0, %v2960_v61  ;;  %v2341_v32 = vadd.f32 %v2309_v26, %v2241_v50  ;;  %v1032_v5 = vadd.f32 %v1000_v48, %v932_v54  ;;  %v1203_v60 = vmul.f32 %v9243_v14, %v9204_v27  ;;  %v512_v46 = vmul.f32 %v7444_v37, %v5115_v12  ;;  %v9245_v43 = vld [vmem:[#allocation75_spill] sm:$0xff]  ;;  %v9247_v48 = vld [vmem:[#allocation21_spill] sm:$0xff] }
 0x232   : > { %v1752_v17 = vadd.f32 %v1720_v58, %v1652_v4  ;;  %v2125_v62 = vmul.f32 %v9245_v43, %v9244_v38  ;;  %v444_v10 = vadd.f32 %v412_v51, %v344_v8  ;;  %v614_v3 = vmul.f32 %v7592_v6, %v5122_v16  ;;  %v9248_v14 = vld [vmem:[#allocation71_spill] sm:$0xff] }
 0x233   : > { %v2443_v11 = vadd.f32 %v2411_v13, %v2341_v32  ;;  %v2225_v61 = vmul.f32 %v9246_v34, %v5224_v18  ;;  %v1132_v26 = vadd.f32 %v1100_v30, %v1032_v5  ;;  %v1303_v50 = vmul.f32 %v9247_v48, %v8906_v22  ;;  %v9249_v13 = vld [vmem:[#allocation67_spill] sm:$0xff]  ;;  %v9250_v30 = vld [vmem:[#allocation38_spill] sm:$0xff] }
 0x234   : > { %v1854_v54 = vadd.f32 %v1822_v28, %v1752_v17  ;;  %v2325_v58 = vmul.f32 %v9248_v14, %v5238_v33  ;;  %v544_v4 = vadd.f32 %v512_v46, %v444_v10  ;;  %v714_v8 = vmul.f32 %v7611_v15, %v5130_v21  ;;  %v9251_v28 = vld [vmem:[#allocation51_spill] sm:$0xff] }
 0x235   : > { %v2543_v51 = vadd.f32 %v2511_v35, %v2443_v11  ;;  %v2427_v32 = vmul.f32 %v9249_v13, %v5283_v45  ;;  %v1235_v34 = vadd.f32 %v1203_v60, %v1132_v26  ;;  %v1403_v5 = vmul.f32 %v9250_v30, %v5187_v52  ;;  %v9252_v35 = vld [vmem:[#allocation19_spill] sm:$0xff]  ;;  %v9254_v26 = vld [vmem:[#allocation22_spill] sm:$0xff] }
 0x236   : > { %v1954_v43 = vadd.f32 %v1922_v57, %v1854_v54  ;;  %v2527_v17 = vmul.f32 %v9251_v28, %v5286_v39  ;;  %v646_v48 = vadd.f32 %v614_v3, %v544_v4  ;;  %v814_v10 = vmul.f32 %v7632_v19, %v5138_v25  ;;  %v7755_v14 = vld [vmem:[%s5101_s30 + $0x390] sm:$0xff]  ;;  %v7760_v54 = vld [vmem:[%s5101_s30 + $0x260] sm:$0xff] }
 0x237   : > { %v2643_v46 = vadd.f32 %v2611_v53, %v2543_v51  ;;  %v7752_v11 = vmul.f32 %v9252_v35, %v5292_v44  ;;  %9253 = vst [vmem:[#allocation53_spill] sm:$0xff] %v7755_v14  ;;  %v1335_v60 = vadd.f32 %v1303_v50, %v1235_v34  ;;  %v1505_v57 = vmul.f32 %v9254_v26, %v8983_v20  ;;  %v7767_v53 = vld [vmem:[%s5101_s30 + $0x391] sm:$0xff]  ;;  %v7782_v28 = vld [vmem:[%s5101_s30 + $0x261] sm:$0xff] }
 0x238   : > { %v2054_v30 = vadd.f32 %v2022_v59, %v1954_v43  ;;  %v7764_v3 = vmul.f32 %v7755_v14, %v5295_v49  ;;  %9255 = vst [vmem:[#allocation64_spill] sm:$0xff] %v7767_v53  ;;  %v746_v4 = vadd.f32 %v714_v8, %v646_v48  ;;  %v916_v51 = vmul.f32 %v7760_v54, %v8987_v31  ;;  %v7777_v35 = vld [vmem:[%s5101_s30 + $0x392] sm:$0xff]  ;;  %v7789_v26 = vld [vmem:[%s5101_s30 + $0x1c0] sm:$0xff] }
 0x239   : > { %v2745_v50 = vadd.f32 %v7672_v47, %v2643_v46  ;;  %v7774_v34 = vmul.f32 %v7767_v53, %v8986_v0  ;;  %9256 = vst [vmem:[#allocation72_spill] sm:$0xff] %v7777_v35  ;;  %v1435_v59 = vadd.f32 %v1403_v5, %v1335_v60  ;;  %v9257_v43 = vld [vmem:[#allocation68_spill] sm:$0xff]  ;;  %v7786_v48 = vmul.f32 %v7777_v35, %v8766_v56  ;;  %v9260_v60 = vld [vmem:[#allocation43_spill] sm:$0xff]  ;;  %v7802_v35 = vld [vmem:[%s5101_s30 + $0x262] sm:$0xff] }
 0x23a   : > { %v1605_v14 = vmul.f32 %v9257_v43, %v8989_v7  ;;  %v2157_v8 = vadd.f32 %v2125_v62, %v2054_v30  ;;  %9259 = vst [vmem:[#allocation49_spill] sm:$0xff] %v7789_v26  ;;  %v846_v47 = vadd.f32 %v814_v10, %v746_v4  ;;  %v1016_v46 = vmul.f32 %v7782_v28, %v9030_v55  ;;  %v7799_v30 = vld [vmem:[%s5101_s30 + $0x1c1] sm:$0xff] }
 0x23b   : > { %9258 = vst [vmem:[#allocation23_spill] sm:$0xff] %v7786_v48  ;;  %v2845_v53 = vadd.f32 %v7684_v29, %v2745_v50  ;;  %v1537_v5 = vadd.f32 %v1505_v57, %v1435_v59  ;;  %v1705_v43 = vmul.f32 %v9260_v60, %v8992_v9  ;;  %v1807_v62 = vmul.f32 %v7789_v26, %v9031_v24  ;;  %v7813_v60 = vpop.f32.mrb[4].mxu0 }
 0x23c   : > { %9261 = vst [vmem:[#allocation74_spill] sm:$0xff] %v7799_v30  ;;  %v2257_v13 = vadd.f32 %v2225_v61, %v2157_v8  ;;  %v1907_v10 = vmul.f32 %v7799_v30, %v8882_v41  ;;  %v948_v4 = vadd.f32 %v916_v51, %v846_v47  ;;  %v1116_v29 = vmul.f32 %v7802_v35, %v8839_v23  ;;  %v7816_v61 = vld [vmem:[%s5101_s30 + $0x1c2] sm:$0xff]  ;;  %v9264_v47 = vld [vmem:[#allocation40_spill] sm:$0xff] }
 0x23d   : > { %v2945_v57 = vadd.f32 %v7688_v36, %v2845_v53  ;;  %v1637_v50 = vadd.f32 %v1605_v14, %v1537_v5  ;;  %v1219_v59 = vmul.f32 %v9232_v40, %v9204_v27  ;;  %v329_v26 = vmul.f32 %v9226_v63, %v9153_v42  ;;  %9262 = vst [vmem:[#allocation70_spill] sm:$0xff] %v7813_v60  ;;  %v7822_v36 = vpop.f32.mrb[5].mxu0  ;;  %v9266_v14 = vld [vmem:[#allocation34_spill] sm:$0xff]  ;;  %v9267_v53 = vld [vmem:[#allocation36_spill] sm:$0xff] }
 0x23e   : > { %v2357_v48 = vadd.f32 %v2325_v58, %v2257_v13  ;;  %9263 = vst [vmem:[#allocation24_spill] sm:$0xff] %v7816_v61  ;;  %v1048_v8 = vadd.f32 %v1016_v46, %v948_v4  ;;  %v397_v51 = vmul.f32 %v9229_v2, %v9242_v1  ;;  %v497_v30 = vmul.f32 %v9264_v47, %v5115_v12  ;;  %v9268_v13 = vld [vmem:[#allocation73_spill] sm:$0xff]  ;;  %v9269_v47 = vld [vmem:[#allocation32_spill] sm:$0xff] }
 0x23f   : > { %9265 = vst [vmem:[#allocation33_spill] sm:$0xff] %v7822_v36  ;;  %4379 = vmatmul.mubr.msk.f32.gmra.mrb[12].mxu0 %vm2972_vm0, %v2945_v57  ;;  %v1737_v40 = vadd.f32 %v1705_v43, %v1637_v50  ;;  %v2007_v63 = vmul.f32 %v7816_v61, %v9266_v14  ;;  %v2110_v58 = vmul.f32 %v9267_v53, %v9244_v38  ;;  %v9270_v57 = vld [vmem:[#allocation66_spill] sm:$0xff]  ;;  %v9271_v61 = vld [vmem:[#allocation63_spill] sm:$0xff] }
 0x240   : > { %v1319_v46 = vmul.f32 %v9268_v13, %v8906_v22  ;;  %v2459_v5 = vadd.f32 %v2427_v32, %v2357_v48  ;;  %v1148_v2 = vadd.f32 %v1116_v29, %v1048_v8  ;;  %v429_v4 = vadd.f32 %v397_v51, %v329_v26  ;;  %v9272_v48 = vld [vmem:[#allocation27_spill] sm:$0xff] }
 0x241   : > { %v599_v60 = vmul.f32 %v9269_v47, %v5122_v16  ;;  %v1839_v36 = vadd.f32 %v1807_v62, %v1737_v40  ;;  %v2210_v43 = vmul.f32 %v9270_v57, %v5224_v18  ;;  %v2310_v50 = vmul.f32 %v7444_v37, %v5238_v33  ;;  %v9273_v51 = vld [vmem:[#allocation47_spill] sm:$0xff] }
 0x242   : > { %v1419_v53 = vmul.f32 %v9271_v61, %v5187_v52  ;;  %v2559_v27 = vadd.f32 %v2527_v17, %v2459_v5  ;;  %v1251_v38 = vadd.f32 %v1219_v59, %v1148_v2  ;;  %v529_v32 = vadd.f32 %v497_v30, %v429_v4  ;;  %v3617_v40 = vld [vmem:[%s5101_s30 + $0x130] sm:$0xff]  ;;  %v9274_v30 = vld [vmem:[#allocation57_spill] sm:$0xff]  ;;  %v9275_v2 = vld [vmem:[#allocation46_spill] sm:$0xff] }
 0x243   : > { %v699_v26 = vmul.f32 %v9272_v48, %v5130_v21  ;;  %v1939_v29 = vadd.f32 %v1907_v10, %v1839_v36  ;;  %v2412_v62 = vmul.f32 %v7592_v6, %v5283_v45  ;;  %v2512_v8 = vmul.f32 %v7611_v15, %v5286_v39 }
 0x244   : > { %v1521_v37 = vmul.f32 %v9273_v51, %v8983_v20  ;;  %v2659_v61 = vadd.f32 %v7752_v11, %v2559_v27  ;;  %v1351_v17 = vadd.f32 %v1319_v46, %v1251_v38  ;;  %v631_v59 = vadd.f32 %v599_v60, %v529_v32  ;;  %v3649_v38 = vld [vmem:[%s5101_s30 + $0x131] sm:$0xff] }
 0x245   : > { %v799_v13 = vmul.f32 %v9274_v30, %v5138_v25  ;;  %v2039_v5 = vadd.f32 %v2007_v63, %v1939_v29  ;;  %v2612_v10 = vmul.f32 %v7632_v19, %v5292_v44  ;;  %v7855_v36 = vmul.f32 %v7760_v54, %v5295_v49  ;;  %v9276_v32 = vld [vmem:[#allocation60_spill] sm:$0xff] }
 0x246   : > { %v1621_v27 = vmul.f32 %v9275_v2, %v8989_v7  ;;  %v2761_v11 = vadd.f32 %v7764_v3, %v2659_v61  ;;  %v1451_v60 = vadd.f32 %v1419_v53, %v1351_v17  ;;  %v731_v46 = vadd.f32 %v699_v26, %v631_v59  ;;  %v3681_v29 = vld [vmem:[%s5101_s30 + $0x132] sm:$0xff]  ;;  %v7875_v53 = vld [vmem:[%s5101_s30 + $0x300] sm:$0xff] }
 0x247   : > { %v901_v63 = vmul.f32 %v3617_v40, %v8987_v31  ;;  %v2142_v4 = vadd.f32 %v2110_v58, %v2039_v5  ;;  %v7864_v47 = vmul.f32 %v7782_v28, %v8986_v0  ;;  %v7868_v57 = vmul.f32 %v7802_v35, %v8766_v56  ;;  %v7878_v26 = vld [vmem:[%s5101_s30 + $0x301] sm:$0xff] }
 0x248   : > { %v1721_v48 = vmul.f32 %v9276_v32, %v8992_v9  ;;  %v2861_v30 = vadd.f32 %v7774_v34, %v2761_v11  ;;  %v1553_v3 = vadd.f32 %v1521_v37, %v1451_v60  ;;  %v7881_v58 = vld [vmem:[%s5101_s30 + $0x302] sm:$0xff]  ;;  %v831_v40 = vadd.f32 %v799_v13, %v731_v46  ;;  %v9278_v37 = vld [vmem:[#allocation23_spill] sm:$0xff]  ;;  %v7898_v46 = vpop.f32.mrb[4].mxu1 }
 0x249   : > { %9277 = vst [vmem:[#allocation50_spill] sm:$0xff] %v7881_v58  ;;  %v1001_v61 = vmul.f32 %v3649_v38, %v9030_v55  ;;  %v2242_v17 = vadd.f32 %v2210_v43, %v2142_v4  ;;  %v1823_v59 = vmul.f32 %v7875_v53, %v9031_v24  ;;  %v1923_v5 = vmul.f32 %v7878_v26, %v8882_v41 }
 0x24a   : > { %v2023_v34 = vmul.f32 %v7881_v58, %v9266_v14  ;;  %v2961_v11 = vadd.f32 %v9278_v37, %v2861_v30  ;;  %v1653_v60 = vadd.f32 %v1621_v27, %v1553_v3  ;;  %v933_v56 = vadd.f32 %v901_v63, %v831_v40  ;;  %v9279_v30 = vld [vmem:[#allocation35_spill] sm:$0xff] }
 0x24b   : > { %v1101_v0 = vmul.f32 %v3681_v29, %v8839_v23  ;;  %v2342_v32 = vadd.f32 %v2310_v50, %v2242_v17  ;;  %v345_v13 = vmul.f32 %v7592_v6, %v9153_v42  ;;  %v413_v43 = vmul.f32 %v7611_v15, %v9242_v1  ;;  %v9280_v27 = vld [vmem:[#allocation67_spill] sm:$0xff]  ;;  %v9281_v29 = vld [vmem:[#allocation25_spill] sm:$0xff]  ;;  %v9282_v50 = vld [vmem:[#allocation22_spill] sm:$0xff]  ;;  %v7905_v17 = vpop.f32.mrb[5].mxu1 }
 0x24c   : > { %v513_v38 = vmul.f32 %v7632_v19, %v5115_v12  ;;  %4403 = vmatmul.mubr.msk.f32.gmra.mrb[12].mxu1 %vm2972_vm0, %v2961_v11  ;;  %v1753_v4 = vadd.f32 %v1721_v48, %v1653_v60  ;;  %v2126_v63 = vmul.f32 %v9280_v27, %v9279_v30  ;;  %v1033_v3 = vadd.f32 %v1001_v61, %v933_v56  ;;  %v9283_v1 = vld [vmem:[#allocation51_spill] sm:$0xff]  ;;  %v9285_v60 = vld [vmem:[#allocation68_spill] sm:$0xff] }
 0x24d   : > { %v1204_v40 = vmul.f32 %v9282_v50, %v9281_v29  ;;  %v2444_v42 = vadd.f32 %v2412_v62, %v2342_v32  ;;  %v2226_v37 = vmul.f32 %v9283_v1, %v5224_v18  ;;  %v445_v12 = vadd.f32 %v413_v43, %v345_v13  ;;  %v9284_v11 = vld [vmem:[#allocation19_spill] sm:$0xff]  ;;  %v9286_v32 = vld [vmem:[#allocation53_spill] sm:$0xff] }
 0x24e   : > { %v615_v58 = vmul.f32 %v7760_v54, %v5122_v16  ;;  %v1855_v48 = vadd.f32 %v1823_v59, %v1753_v4  ;;  %v2326_v56 = vmul.f32 %v9284_v11, %v5238_v33  ;;  %v1133_v61 = vadd.f32 %v1101_v0, %v1033_v3  ;;  %v9287_v59 = vld [vmem:[#allocation64_spill] sm:$0xff]  ;;  %v9288_v4 = vld [vmem:[#allocation43_spill] sm:$0xff] }
 0x24f   : > { %v1304_v27 = vmul.f32 %v9285_v60, %v8906_v22  ;;  %v2544_v62 = vadd.f32 %v2512_v8, %v2444_v42  ;;  %v2428_v50 = vmul.f32 %v9286_v32, %v5283_v45  ;;  %v545_v1 = vadd.f32 %v513_v38, %v445_v12  ;;  %v7926_v11 = vld [vmem:[%s5101_s30 + $0x270] sm:$0xff]  ;;  %v9291_v60 = vld [vmem:[#allocation49_spill] sm:$0xff] }
 0x250   : > { %v715_v13 = vmul.f32 %v7782_v28, %v5130_v21  ;;  %v1955_v16 = vadd.f32 %v1923_v5, %v1855_v48  ;;  %v7921_v43 = vmul.f32 %v9287_v59, %v5286_v39  ;;  %v1236_v0 = vadd.f32 %v1204_v40, %v1133_v61  ;;  %v9289_v38 = vld [vmem:[#allocation72_spill] sm:$0xff]  ;;  %v7933_v21 = vld [vmem:[%s5101_s30 + $0x3a0] sm:$0xff] }
 0x251   : > { %v1404_v3 = vmul.f32 %v9288_v4, %v5187_v52  ;;  %v2644_v8 = vadd.f32 %v2612_v10, %v2544_v62  ;;  %v7930_v42 = vmul.f32 %v9289_v38, %v5292_v44  ;;  %9290 = vst [vmem:[#allocation37_spill] sm:$0xff] %v7933_v21  ;;  %v3911_v5 = vld [vmem:[%s5101_s30 + $0x1d0] sm:$0xff]  ;;  %v647_v12 = vadd.f32 %v615_v58, %v545_v1  ;;  %v9292_v58 = vld [vmem:[#allocation74_spill] sm:$0xff] }
 0x252   : > { %v815_v48 = vmul.f32 %v7802_v35, %v5138_v25  ;;  %v2055_v40 = vadd.f32 %v2023_v34, %v1955_v16  ;;  %v7941_v61 = vmul.f32 %v7933_v21, %v5295_v49  ;;  %v1336_v10 = vadd.f32 %v1304_v27, %v1236_v0  ;;  %v3943_v4 = vld [vmem:[%s5101_s30 + $0x1d1] sm:$0xff] }
 0x253   : > { %v1506_v62 = vmul.f32 %v9291_v60, %v8983_v20  ;;  %v7947_v38 = vld [vmem:[%s5101_s30 + $0x271] sm:$0xff]  ;;  %v2746_v59 = vadd.f32 %v7855_v36, %v2644_v8  ;;  %v1606_v1 = vmul.f32 %v9292_v58, %v8989_v7  ;;  %v747_v34 = vadd.f32 %v715_v13, %v647_v12  ;;  %v7967_v12 = vld [vmem:[#allocation8] ss:$0 sm:$0xff] }
 0x254   : > { %v3975_v25 = vld [vmem:[%s5101_s30 + $0x1d2] sm:$0xff]  ;;  %v917_v16 = vmul.f32 %v7926_v11, %v8987_v31  ;;  %v2158_v21 = vadd.f32 %v2126_v63, %v2055_v40  ;;  %v1436_v27 = vadd.f32 %v1404_v3, %v1336_v10  ;;  %v1808_v49 = vmul.f32 %v3911_v5, %v9031_v24 }
 0x255   : > { %v7954_v32 = vld [vmem:[%s5101_s30 + $0x272] sm:$0xff]  ;;  %v2846_v36 = vadd.f32 %v7864_v47, %v2746_v59  ;;  %v1908_v8 = vmul.f32 %v3943_v4, %v8882_v41  ;;  %v847_v58 = vadd.f32 %v815_v48, %v747_v34  ;;  %v1017_v13 = vmul.f32 %v7947_v38, %v9030_v55  ;;  %v9294_v4 = vld [vmem:[#allocation61_spill] sm:$0xff]  ;;  %v9297_v34 = vld [vmem:[#allocation31_spill] sm:$0xff] }
 0x256   : > { %v9293_v0 = vld [vmem:[#allocation24_spill] sm:$0xff]  ;;  %v2258_v31 = vadd.f32 %v2226_v37, %v2158_v21  ;;  %v1538_v63 = vadd.f32 %v1506_v62, %v1436_v27  ;;  %v2008_v3 = vmul.f32 %v3975_v25, %v9266_v14  ;;  %v1117_v40 = vmul.f32 %v7954_v32, %v8839_v23 }
 0x257   : > { %v1706_v60 = vmul.f32 %v9293_v0, %v8992_v9  ;;  %v2946_v5 = vadd.f32 %v7868_v57, %v2846_v36  ;;  %v949_v10 = vadd.f32 %v917_v16, %v847_v58  ;;  %v1220_v47 = vmul.f32 %v9273_v51, %v9281_v29  ;;  %v9295_v23 = vld [vmem:[#allocation56_spill] sm:$0xff]  ;;  %v9296_v57 = vld [vmem:[#allocation54_spill] sm:$0xff] }
 0x258   : > { %v1320_v59 = vmul.f32 %v9275_v2, %v8906_v22  ;;  %v2358_v48 = vadd.f32 %v2326_v56, %v2258_v31  ;;  %v1638_v55 = vadd.f32 %v1606_v1, %v1538_v63  ;;  %v3141_v37 = vadd.f32 %v9294_v4, %v7967_v12  ;;  %v9298_v2 = vld [vmem:[#allocation29_spill] sm:$0xff]  ;;  %v9299_v1 = vld [vmem:[#allocation48_spill] sm:$0xff]  ;;  %v9302_v58 = vld [vmem:[#allocation70_spill] sm:$0xff] }
 0x259   : > { %4381 = vmatprep.mubr.msk.f32.mxu0 %vm2972_vm0, %v2946_v5  ;;  %v1049_v21 = vadd.f32 %v1017_v13, %v949_v10  ;;  %v3221_v62 = vadd.f32 %v9295_v23, %v7967_v12  ;;  %v3136_v25 = vadd.f32 %v7967_v12, %v9296_v57  ;;  %v3216_v51 = vadd.f32 %v7967_v12, %v9297_v34  ;;  %v9303_v5 = vld [vmem:[#allocation33_spill] sm:$0xff]  ;;  %v9304_v4 = vld [vmem:[#allocation60_spill] sm:$0xff] }
 0x25a   : > { %v2460_v29 = vadd.f32 %v2428_v50, %v2358_v48  ;;  %v1738_v22 = vadd.f32 %v1706_v60, %v1638_v55  ;;  %3296 = vst.msk [vmem:[%s7986_s26 + $0x8] sm:$0xff] %vm3294_vm1, %v3141_v37  ;;  %v3151_v56 = vadd.f32 %v9298_v2, %v7967_v12  ;;  %v3231_v16 = vadd.f32 %v9299_v1, %v7967_v12  ;;  %v9300_v50 = vld [vmem:[#allocation58_spill] sm:$0xff]  ;;  %v9301_v60 = vld [vmem:[#allocation52_spill] sm:$0xff] }
 0x25b   : > { %v1149_v27 = vadd.f32 %v1117_v40, %v1049_v21  ;;  %3312 = vst.msk [vmem:[%s7986_s26 + $0x88] sm:$0xff] %vm3294_vm1, %v3221_v62  ;;  %3295 = vst.msk [vmem:[%s7986_s26] sm:$0xff] %vm3294_vm1, %v3136_v25  ;;  %v3146_v0 = vadd.f32 %v7967_v12, %v9300_v50  ;;  %v3226_v36 = vadd.f32 %v7967_v12, %v9301_v60  ;;  %v4252_v48 = vld [vmem:[%s5101_s30 + $0x3a1] sm:$0xff]  ;;  %v9305_v37 = vld [vmem:[#allocation44_spill] sm:$0xff] }
 0x25c   : > { %3311 = vst.msk [vmem:[%s7986_s26 + $0x80] sm:$0xff] %vm3294_vm1, %v3216_v51  ;;  %v3161_v13 = vadd.f32 %v9302_v58, %v7967_v12  ;;  %v2560_v31 = vadd.f32 %v7921_v43, %v2460_v29  ;;  %v1840_v63 = vadd.f32 %v1808_v49, %v1738_v22  ;;  %3298 = vst.msk [vmem:[%s7986_s26 + $0x18] sm:$0xff] %vm3294_vm1, %v3151_v56  ;;  %v3959_v1 = vld [vmem:[%s5101_s30 + $0x311] sm:$0xff] }
 0x25d   : > { %3314 = vst.msk [vmem:[%s7986_s26 + $0x98] sm:$0xff] %vm3294_vm1, %v3231_v16  ;;  %v3241_v40 = vadd.f32 %v7898_v46, %v7967_v12  ;;  %v3156_v10 = vadd.f32 %v7967_v12, %v9303_v5  ;;  %v1252_v55 = vadd.f32 %v1220_v47, %v1149_v27  ;;  %v1420_v43 = vmul.f32 %v9304_v4, %v5187_v52  ;;  %v4284_v52 = vld [vmem:[%s5101_s30 + $0x3a2] sm:$0xff]  ;;  %v3991_v27 = vld [vmem:[%s5101_s30 + $0x312] sm:$0xff] }
 0x25e   : > { %3297 = vst.msk [vmem:[%s7986_s26 + $0x10] sm:$0xff] %vm3294_vm1, %v3146_v0  ;;  %3313 = vst.msk [vmem:[%s7986_s26 + $0x90] sm:$0xff] %vm3294_vm1, %v3226_v36  ;;  %v3236_v49 = vadd.f32 %v7967_v12, %v7905_v17  ;;  %v2660_v46 = vadd.f32 %v7930_v42, %v2560_v31  ;;  %v2830_v21 = vmul.f32 %v4252_v48, %v9305_v37  ;;  %v9306_v42 = vld [vmem:[#allocation45_spill] sm:$0xff] }
 0x25f   : > { %3300 = vst.msk [vmem:[%s7986_s26 + $0x28] sm:$0xff] %vm3294_vm1, %v3161_v13  ;;  %v1940_v23 = vadd.f32 %v1908_v8, %v1840_v63  ;;  %v2111_v47 = vmul.f32 %v7592_v6, %v9279_v30  ;;  %3316 = vst.msk [vmem:[%s7986_s26 + $0xa8] sm:$0xff] %vm3294_vm1, %v3241_v40  ;;  %v1352_v62 = vadd.f32 %v1320_v59, %v1252_v55  ;;  %v9308_v13 = vld [vmem:[#allocation42_spill] sm:$0xff]  ;;  %v9309_v63 = vld [vmem:[#allocation53_spill] sm:$0xff] }
 0x260   : > { %3299 = vst.msk [vmem:[%s7986_s26 + $0x20] sm:$0xff] %vm3294_vm1, %v3156_v10  ;;  %v1522_v57 = vmul.f32 %v7875_v53, %v8983_v20  ;;  %3315 = vst.msk [vmem:[%s7986_s26 + $0xa0] sm:$0xff] %vm3294_vm1, %v3236_v49  ;;  %v2762_v17 = vadd.f32 %v7941_v61, %v2660_v46  ;;  %v2930_v8 = vmul.f32 %v4284_v52, %v9306_v42  ;;  %v3927_v53 = vld [vmem:[%s5101_s30 + $0x310] sm:$0xff]  ;;  %v9307_v61 = vld [vmem:[#allocation50_spill] sm:$0xff] }
 0x261   : > { %v2040_v25 = vadd.f32 %v2008_v3, %v1940_v23  ;;  %v2211_v6 = vmul.f32 %v7611_v15, %v5224_v18  ;;  %v1452_v34 = vadd.f32 %v1420_v43, %v1352_v62  ;;  %v1622_v51 = vmul.f32 %v7878_v26, %v8989_v7  ;;  %v9310_v10 = vld [vmem:[#allocation64_spill] sm:$0xff]  ;;  %v9312_v46 = vld [vmem:[#allocation37_spill] sm:$0xff] }
 0x262   : > { %v2862_v59 = vadd.f32 %v2830_v21, %v2762_v17  ;;  %v2311_v20 = vmul.f32 %v7632_v19, %v5238_v33  ;;  %v1722_v2 = vmul.f32 %v9307_v61, %v8992_v9  ;;  %v2413_v15 = vmul.f32 %v7760_v54, %v5283_v45 }
 0x263   : > { %v2143_v29 = vadd.f32 %v2111_v47, %v2040_v25  ;;  %v1554_v22 = vadd.f32 %v1522_v57, %v1452_v34  ;;  %v1824_v7 = vmul.f32 %v3927_v53, %v9031_v24  ;;  %v2513_v19 = vmul.f32 %v7782_v28, %v5286_v39  ;;  %v4253_v25 = vld [vmem:[%s5101_s30 + $0x3b1] sm:$0xff] }
 0x264   : > { %v2962_v56 = vadd.f32 %v2930_v8, %v2862_v59  ;;  %v1924_v0 = vmul.f32 %v3959_v1, %v8882_v41  ;;  %v2613_v60 = vmul.f32 %v7802_v35, %v5292_v44  ;;  %v2024_v54 = vmul.f32 %v3991_v27, %v9266_v14 }
 0x265   : > { %v2243_v3 = vadd.f32 %v2211_v6, %v2143_v29  ;;  %v1654_v16 = vadd.f32 %v1622_v51, %v1554_v22  ;;  %v2715_v24 = vmul.f32 %v7926_v11, %v9308_v13  ;;  %v2127_v40 = vmul.f32 %v9309_v63, %v9279_v30  ;;  %v9311_v11 = vld [vmem:[#allocation72_spill] sm:$0xff] }
 0x266   : > { %4405 = vmatprep.mubr.msk.f32.mxu1 %vm2972_vm0, %v2962_v56  ;;  %v2815_v41 = vmul.f32 %v7947_v38, %v9305_v37  ;;  %v2227_v35 = vmul.f32 %v9310_v10, %v5224_v18  ;;  %v2915_v14 = vmul.f32 %v7954_v32, %v9306_v42  ;;  %v2327_v43 = vmul.f32 %v9311_v11, %v5238_v33  ;;  %v4221_v32 = vld [vmem:[%s5101_s30 + $0x3b0] sm:$0xff] }
 0x267   : > { %v2343_v26 = vadd.f32 %v2311_v20, %v2243_v3  ;;  %v1754_v50 = vadd.f32 %v1722_v2, %v1654_v16  ;;  %v2429_v21 = vmul.f32 %v9312_v46, %v5283_v45  ;;  %v2529_v18 = vmul.f32 %v4252_v48, %v5286_v39  ;;  %v4285_v48 = vld [vmem:[%s5101_s30 + $0x3b2] sm:$0xff]  ;;  %s4668_s30 = sshll.u32 %s4802_s2, 4  ;;  %s4669_s30 = int_to_ptr.vmem [resolvable:$false] %s4668_s30 }
 0x268   : > { %v2629_v17 = vmul.f32 %v4284_v52, %v5292_v44  ;;  %v2731_v39 = vmul.f32 %v4221_v32, %v9308_v13  ;;  %v2831_v34 = vmul.f32 %v4253_v25, %v9305_v37  ;;  %v2931_v44 = vmul.f32 %v4285_v48, %v9306_v42  ;;  %s4670_s7 = scalar_lea.vmem %s4669_s30, 8192  ;;  %p4671_p13 = scmp.lt.s32.totalorder %s8149_s18, %s4669_s30 }
 0x269   : > { %v2445_v9 = vadd.f32 %v2413_v15, %v2343_v26  ;;  %v1856_v36 = vadd.f32 %v1824_v7, %v1754_v50  ;;  %p4672_p6 = scmp.lt.s32.totalorder %s4670_s7, %s4664_s13 }
 0x26b   : > { %v2545_v58 = vadd.f32 %v2513_v19, %v2445_v9  ;;  %v1956_v31 = vadd.f32 %v1924_v0, %v1856_v36  ;;  %p4673_p8 = por %p4672_p6, %p4671_p13 }
 0x26d   : > { %v2645_v28 = vadd.f32 %v2613_v60, %v2545_v58  ;;  %v2056_v5 = vadd.f32 %v2024_v54, %v1956_v31  ;;  %p4674_p12 = pnand %p4673_p8, %p4667_p5 }
 0x26f   : > { %v2747_v55 = vadd.f32 %v2715_v24, %v2645_v28  ;;  %v2159_v4 = vadd.f32 %v2127_v40, %v2056_v5  ;;  %v4371_v47 = vpop.f32.mrb[6].mxu0 }
 0x270   : > { %v3171_v62 = vadd.f32 %v4371_v47, %v7967_v12  ;;  %v3165_v57 = vpop.f32.mrb[7].mxu0 }
 0x271   : > { %v2847_v30 = vadd.f32 %v2815_v41, %v2747_v55  ;;  %v2259_v49 = vadd.f32 %v2227_v35, %v2159_v4  ;;  %v3166_v8 = vadd.f32 %v7967_v12, %v3165_v57 }
 0x272   : > { %3302 = vst.msk [vmem:[%s7986_s26 + $0x38] sm:$0xff] %vm3294_vm1, %v3171_v62 }
 0x273   : > { %v2947_v38 = vadd.f32 %v2915_v14, %v2847_v30  ;;  %v2359_v23 = vadd.f32 %v2327_v43, %v2259_v49  ;;  %3301 = vst.msk [vmem:[%s7986_s26 + $0x30] sm:$0xff] %vm3294_vm1, %v3166_v8 }
 0x275   : > { %4382 = vmatmul.mubr.msk.f32.gmra.mrb[14].mxu0 %vm2972_vm0, %v2947_v38  ;;  %v2461_v33 = vadd.f32 %v2429_v21, %v2359_v23 }
 0x277   : > { %v2561_v45 = vadd.f32 %v2529_v18, %v2461_v33 }
 0x279   : > { %v2661_v6 = vadd.f32 %v2629_v17, %v2561_v45 }
 0x27b   : > { %v2763_v51 = vadd.f32 %v2731_v39, %v2661_v6 }
 0x27d   : > { %v2863_v52 = vadd.f32 %v2831_v34, %v2763_v51  ;;  %v4395_v29 = vpop.f32.mrb[6].mxu1 }
 0x27e   : > { %v3251_v20 = vadd.f32 %v4395_v29, %v7967_v12  ;;  %v3245_v53 = vpop.f32.mrb[7].mxu1 }
 0x27f   : > { %v2963_v59 = vadd.f32 %v2931_v44, %v2863_v52  ;;  %v3246_v22 = vadd.f32 %v7967_v12, %v3245_v53 }
 0x280   : > { %3318 = vst.msk [vmem:[%s7986_s26 + $0xb8] sm:$0xff] %vm3294_vm1, %v3251_v20 }
 0x281   : > { %4406 = vmatmul.mubr.msk.f32.gmra.mrb[14].mxu1 %vm2972_vm0, %v2963_v59  ;;  %3317 = vst.msk [vmem:[%s7986_s26 + $0xb0] sm:$0xff] %vm3294_vm1, %v3246_v22 }
 0x2a6   : > { %v4374_v37 = vpop.f32.mrb[8].mxu0 }
 0x2a7   : > { %v3181_v42 = vadd.f32 %v4374_v37, %v7967_v12  ;;  %v3175_v61 = vpop.f32.mrb[9].mxu0 }
 0x2a8   : > { %v3176_v2 = vadd.f32 %v7967_v12, %v3175_v61 }
 0x2a9   : > { %3304 = vst.msk [vmem:[%s7986_s26 + $0x48] sm:$0xff] %vm3294_vm1, %v3181_v42 }
 0x2aa   : > { %3303 = vst.msk [vmem:[%s7986_s26 + $0x40] sm:$0xff] %vm3294_vm1, %v3176_v2 }
 0x2b3   : > { %v4398_v56 = vpop.f32.mrb[8].mxu1 }
 0x2b4   : > { %v3261_v3 = vadd.f32 %v4398_v56, %v7967_v12  ;;  %v3255_v15 = vpop.f32.mrb[9].mxu1 }
 0x2b5   : > { %v3256_v1 = vadd.f32 %v7967_v12, %v3255_v15 }
 0x2b6   : > { %3320 = vst.msk [vmem:[%s7986_s26 + $0xc8] sm:$0xff] %vm3294_vm1, %v3261_v3 }
 0x2b7   : > { %3319 = vst.msk [vmem:[%s7986_s26 + $0xc0] sm:$0xff] %vm3294_vm1, %v3256_v1 }
 0x2dc   : > { %v4377_v16 = vpop.f32.mrb[10].mxu0 }
 0x2dd   : > { %v3191_v7 = vadd.f32 %v4377_v16, %v7967_v12  ;;  %v3185_v26 = vpop.f32.mrb[11].mxu0 }
 0x2de   : > { %v3186_v19 = vadd.f32 %v7967_v12, %v3185_v26 }
 0x2df   : > { %3306 = vst.msk [vmem:[%s7986_s26 + $0x58] sm:$0xff] %vm3294_vm1, %v3191_v7 }
 0x2e0   : > { %3305 = vst.msk [vmem:[%s7986_s26 + $0x50] sm:$0xff] %vm3294_vm1, %v3186_v19 }
 0x2ea   : > { %v4401_v27 = vpop.f32.mrb[10].mxu1 }
 0x2eb   : > { %v3271_v50 = vadd.f32 %v4401_v27, %v7967_v12  ;;  %v3265_v0 = vpop.f32.mrb[11].mxu1 }
 0x2ec   : > { %v3266_v9 = vadd.f32 %v7967_v12, %v3265_v0 }
 0x2ed   : > { %3322 = vst.msk [vmem:[%s7986_s26 + $0xd8] sm:$0xff] %vm3294_vm1, %v3271_v50 }
 0x2ee   : > { %3321 = vst.msk [vmem:[%s7986_s26 + $0xd0] sm:$0xff] %vm3294_vm1, %v3266_v9 }
 0x312   : > { %v4380_v60 = vpop.f32.mrb[12].mxu0 }
 0x313   : > { %v3201_v36 = vadd.f32 %v4380_v60, %v7967_v12  ;;  %v3195_v54 = vpop.f32.mrb[13].mxu0 }
 0x314   : > { %v3196_v58 = vadd.f32 %v7967_v12, %v3195_v54 }
 0x315   : > { %3308 = vst.msk [vmem:[%s7986_s26 + $0x68] sm:$0xff] %vm3294_vm1, %v3201_v36 }
 0x316   : > { %3307 = vst.msk [vmem:[%s7986_s26 + $0x60] sm:$0xff] %vm3294_vm1, %v3196_v58 }
 0x31f   : > { %v4404_v13 = vpop.f32.mrb[12].mxu1 }
 0x320   : > { %v3281_v24 = vadd.f32 %v4404_v13, %v7967_v12  ;;  %v3275_v31 = vpop.f32.mrb[13].mxu1 }
 0x321   : > { %v3276_v63 = vadd.f32 %v7967_v12, %v3275_v31 }
 0x322   : > { %3324 = vst.msk [vmem:[%s7986_s26 + $0xe8] sm:$0xff] %vm3294_vm1, %v3281_v24 }
 0x323   : > { %3323 = vst.msk [vmem:[%s7986_s26 + $0xe0] sm:$0xff] %vm3294_vm1, %v3276_v63 }
 0x348   : > { %v4383_v40 = vpop.f32.mrb[14].mxu0 }
 0x349   : > { %v3211_v28 = vadd.f32 %v4383_v40, %v7967_v12  ;;  %v3205_v41 = vpop.f32.mrb[15].mxu0 }
 0x34a   : > { %v3206_v5 = vadd.f32 %v7967_v12, %v3205_v41 }
 0x34b   : > { %3310 = vst.msk [vmem:[%s7986_s26 + $0x78] sm:$0xff] %vm3294_vm1, %v3211_v28 }
 0x34c   : > { %3309 = vst.msk [vmem:[%s7986_s26 + $0x70] sm:$0xff] %vm3294_vm1, %v3206_v5 }
 0x354   : > { %v4407_v10 = vpop.f32.mrb[14].mxu1 }
 0x355   : > { %v3291_v35 = vadd.f32 %v4407_v10, %v7967_v12  ;;  %v3285_v55 = vpop.f32.mrb[15].mxu1 }
 0x356   : > { %v3286_v14 = vadd.f32 %v7967_v12, %v3285_v55 }
 0x357   : > { %3326 = vst.msk [vmem:[%s7986_s26 + $0xf8] sm:$0xff] %vm3294_vm1, %v3291_v35 }
 0x358   : > { %3325 = vst.msk [vmem:[%s7986_s26 + $0xf0] sm:$0xff] %vm3294_vm1, %v3286_v14 }
 0x359   : > { %4677 = shalt.err (!%p4674_p12)
}
 0x35a   : > { %s4678_s28 = scalar_lea.hbm %s8147_s11, 4096  ;;  %s4682_s5 = scalar_lea.hbm %s9315_s14, 16384 }
 0x35b   : > { %p4679_p4 = scmp.ne.s32.totalorder %s8147_s11, %s4678_s28  ;;  %p4683_p0 = scmp.lt.u32.totalorder %s8147_s11, %s9315_s14 }
 0x35c   : > { %p4684_p1 = scmp.lt.u32.totalorder %s4682_s5, %s4678_s28  ;;  %p4686_p10 = scmp.lt.u32.totalorder %s4678_s28, %s8147_s11 }
 0x35d   : > { %p4680_p7 = pnand %p4679_p4, %p9316_p2 }
 0x35e   : > { %p4685_p11 = por %p4684_p1, %p4683_p0 }
 0x35f   : > { %p4681_p3 = pneg %p4680_p7 }
 0x360   : > { %p4687_p9 = por %p4686_p10, %p4685_p11 }
 0x362   : > { %p4688_p5 = pnand %p4687_p9, %p4681_p3 }
 0x364   : > { %4691 = shalt.err (!%p4688_p5)
}
 0x365   : > { %s4803_s15 = smov 128   ;;  %s4804_s1 = smov 8  }
 0x366   : > { %4427 = dma.vmem_to_hbm [thread:$0]  (%p9316_p2), %s8149_s18, 4096, %s8147_s11, %s8158_s21, %s4803_s15, %s4803_s15, %s4804_s1  }
 0x367 PF: > { %s9317_s8 = sld [smem:[#allocation15_spill]]  ;;  %s9318_s13 = sld [smem:[#allocation18_spill]] }
 0x368   : > { %p4454_p13 = scmp.ge.s32.totalorder %s4794_s25, 2 }
 0x36d   : > { %s3358_s2 = sand.u32 1, %s9317_s8   ;;  %p9319_p6 = scmp.ne.s32.totalorder %s9318_s13, 0 }
 0x36e   : > { %s3359_s30 = scalar_lea.sflag [#allocation4], %s3358_s2 }
 0x36f   : > { %p4444_p8 = pnand %p4454_p13, %p9319_p6 }
 0x371   : > { %4749 = dma.done.wait (!%p4444_p8), %s3359_s30, 4096  }
 0x372   : > { %4751 = vsyncadd (!%p4444_p8), %s3359_s30, 4294963200  ;;  %s22_s25 = sadd.s32 1, %s4794_s25   ;;  %s9320_s27 = smov %s9336_s22 }
 0x373   : > { %p19_p12 = scmp.ge.s32.totalorder %s22_s25, 6   ;;  %s9321_s15 = smov %s4758_s16 }
 0x374   : > { %s9322_s16 = smov %s4762_s17  ;;  %s9323_s17 = smov %s5031_s4 }
 0x375   : > { %s9324_s18 = smov %s4770_s19  ;;  %s9325_s19 = smov %s4774_s20 }
 0x376   : > { %s9326_s20 = smov %s5026_s9  ;;  %s9327_s21 = smov %s4786_s23 }
 0x377   : > { %s9328_s22 = smov %s4790_s24  ;;  %s9329_s23 = smov %s9332_s6 }
 0x378   : > { %s9330_s24 = smov %s9320_s27  ;;  %21 = sbr.rel (!%p19_p12) target bundleno = 15 (0xf), region = 102 }
 0x37f   :  { %3364 = vsyncpa [#allocation3], 1 }
 0x380   :  { %3366 = vsyncpa [#allocation3 + $0x1], 1 }
 0x381   :  { %3367 = vsyncpa [#allocation6], 1 }
 0x382   :  { %3368 = vsyncpa [#allocation9], 1 }
 0x383   :  { %3369 = vsyncpa [#allocation4], 1 }
 0x384   :  { %3371 = vsyncpa [#allocation4 + $0x1], 1 }

</bundles_post_ra>
